<compile_context>
chip_gen: v6e
topology: v6e:2x2x1
jax: 0.10.0
libtpu: 0.0.40
codegen_flags: <defaults>
</compile_context>

<pallas_src>
import jax
import jax.numpy as jnp
from jax.experimental import pallas as pl
from jax.experimental.pallas import tpu as pltpu

# ----- hyper-parameters (small, consistent with the module) -----
N_MOD = 3            # input_t, input_a, input_v
B = 2                # batch
L = 8                # sequence length (shared by all modalities)
D_MODEL = 32
N_HEAD = 2
D_K = 16
D_V = 16
D_INNER = 64         # pos_ffn hidden dim (constructor arg)
D_READ_HID = 2048    # readout FFN hidden dim (hard-coded default in the module)
READ_L = 2           # readout attends over the 2 query modalities
N_LAYERS = 1
EPS = 1e-6           # every LayerNorm in the module uses eps=1e-06

BL = B * L                   # 16 rows per modality
R = N_MOD * BL               # 48 rows total
QR = 2 * BL                  # query rows per key modality (the two other mods)
HDK = N_HEAD * D_K           # 32
HDV = N_HEAD * D_V           # 32
R_CHUNK = 512                # readout-FFN hidden chunk width
N_RCHUNK = D_READ_HID // R_CHUNK


def _layernorm(x, gamma, beta):
    mu = jnp.mean(x, axis=-1, keepdims=True)
    var = jnp.mean((x - mu) ** 2, axis=-1, keepdims=True)
    return (x - mu) * jax.lax.rsqrt(var + EPS) * gamma + beta


# --------------------------------------------------------------------------
# Pallas kernel: one CrossGlobalEncoderLayer per grid step; out_ref is the
# resident activation carry across layers.
# --------------------------------------------------------------------------
def cross_global_layer_kernel(
        x_ref, mask_ref,
        w_q_ref, w_kh_ref, w_vfc_ref, w_rv_ref, w_read_ref,
        w_r1_ref, b_r1_ref, w_r2_ref, b_r2_ref,
        w_p1_ref, b_p1_ref, w_p2_ref, b_p2_ref, ln_ref,
        out_ref):
    f32 = jnp.float32

    # layer 0: seed the resident activation carry from the kernel input.
    @pl.when(pl.program_id(0) == 0)
    def _():
        out_ref[...] = x_ref[...]

    x = out_ref[...]                                   # (R, D) current activations
    mask = mask_ref[...]                               # (QR, BL) additive batch mask

    ln = ln_ref[...]                                   # (8, D)
    g_attn, b_attn = ln[0:1, :], ln[1:2, :]
    g_ro, b_ro = ln[2:3, :], ln[3:4, :]
    g_rf, b_rf = ln[4:5, :], ln[5:6, :]
    g_p, b_p = ln[6:7, :], ln[7:8, :]

    # ---- projections (all matmul operands start at lane offset 0) ----
    # per-query-modality Q (weights pre-scaled by 1/sqrt(d_k))
    q = [jnp.dot(x[m * BL:(m + 1) * BL, :], w_q_ref[m],
                 preferred_element_type=f32) for m in range(N_MOD)]       # (BL, HDK)
    # per-head K: W_k with the other head's output columns zeroed (host-side)
    k_h = [jnp.dot(x, w_kh_ref[h], preferred_element_type=f32)
           for h in range(N_HEAD)]                                        # (R, HDK)
    # per-head V already pushed through fc: W_vfc_h = mask_h(W_v) @ W_fc
    vfc_h = [jnp.dot(x, w_vfc_ref[h], preferred_element_type=f32)
             for h in range(N_HEAD)]                                      # (R, D)

    trans_b = (((1,), (1,)), ((), ()))                                    # A @ B^T

    # ---- cross attention: key modality i, queries = the two other modalities ----
    slot0, slot1 = [], []
    for i in range(N_MOD):
        ja, jb = [j for j in range(N_MOD) if j != i]                      # ascending
        q_i = jnp.concatenate([q[ja], q[jb]], axis=0)                     # (QR, HDK)
        o_i = None
        for h in range(N_HEAD):
            k_hi = k_h[h][i * BL:(i + 1) * BL, :]                         # (BL, HDK)
            vfc_hi = vfc_h[h][i * BL:(i + 1) * BL, :]                     # (BL, D)
            s = jax.lax.dot_general(q_i, k_hi, trans_b,
                                    preferred_element_type=f32)           # (QR, BL)
            s = s + mask                          # keep coupled with max-subtraction
            s = s - jnp.max(s, axis=-1, keepdims=True)
            e = jnp.exp(s)
            p = e / jnp.sum(e, axis=-1, keepdims=True)
            pv = jnp.dot(p, vfc_hi, preferred_element_type=f32)           # (QR, D)
            o_i = pv if o_i is None else o_i + pv
        o_i = _layernorm(o_i, g_attn, b_attn)                             # (QR, D)
        slot0.append(o_i[:BL, :])                                         # query mod ja
        slot1.append(o_i[BL:, :])                                         # query mod jb

    s0 = jnp.concatenate(slot0, axis=0)                                   # (R, D)
    s1 = jnp.concatenate(slot1, axis=0)                                   # (R, D)

    # ---- readout attention over the 2 slots (w_read pre-scaled 1/sqrt(d_model)) ----
    rv0 = jnp.dot(s0, w_rv_ref[...], preferred_element_type=f32)          # (R, D)
    rv1 = jnp.dot(s1, w_rv_ref[...], preferred_element_type=f32)
    a0 = jnp.dot(s0, w_read_ref[0], preferred_element_type=f32)           # (R, 1)
    a1 = jnp.dot(s1, w_read_ref[1], preferred_element_type=f32)           # (R, 1)
    mx = jnp.maximum(a0, a1)
    e0 = jnp.exp(a0 - mx)
    e1 = jnp.exp(a1 - mx)
    inv = 1.0 / (e0 + e1)
    ro = _layernorm((e0 * inv) * rv0 + (e1 * inv) * rv1, g_ro, b_ro)      # (R, D)

    # ---- readout FFN (32 -> 2048 -> 32): bf16 weights, hidden dim chunked ----
    acc = None
    for c in range(N_RCHUNK):
        hc = jnp.dot(ro, w_r1_ref[c].astype(f32), preferred_element_type=f32)
        hc = jnp.maximum(hc + b_r1_ref[c], 0.0)                           # (R, R_CHUNK)
        pc = jnp.dot(hc, w_r2_ref[c].astype(f32), preferred_element_type=f32)
        acc = pc if acc is None else acc + pc
    res = _layernorm(acc + b_r2_ref[...] + ro, g_rf, b_rf)                # (R, D)

    # ---- encoder-level shared pos_ffn1 (32 -> 64 -> 32) ----
    hp = jnp.maximum(jnp.dot(res, w_p1_ref[...], preferred_element_type=f32)
                     + b_p1_ref[...], 0.0)
    fp = jnp.dot(hp, w_p2_ref[...], preferred_element_type=f32) + b_p2_ref[...] + res
    out_ref[...] = _layernorm(fp, g_p, b_p)                               # (R, D)


# --------------------------------------------------------------------------
# Wrapper: one pallas_call over grid=(n_layers,)
# --------------------------------------------------------------------------
def cross_global_encoder_call(x_stack, kp, batch_mask):
    n_layers = kp['w_q'].shape[0]
    x_flat = x_stack.reshape(R, D_MODEL)

    def shared_spec(shape):
        nd = len(shape)
        return pl.BlockSpec(shape, lambda l, _n=nd: (0,) * _n)

    def layer_spec(arr):
        nd = arr.ndim - 1
        return pl.BlockSpec((None,) + arr.shape[1:],
                            lambda l, _n=nd: (l,) + (0,) * _n)

    weight_keys = ('w_q', 'w_kh', 'w_vfc', 'w_rv', 'w_read',
                   'w_r1', 'b_r1', 'w_r2', 'b_r2',
                   'w_p1', 'b_p1', 'w_p2', 'b_p2', 'ln')
    in_specs = [shared_spec((R, D_MODEL)), shared_spec((QR, BL))] + \
               [layer_spec(kp[k]) for k in weight_keys]

    out = pl.pallas_call(
        cross_global_layer_kernel,
        out_shape=jax.ShapeDtypeStruct((R, D_MODEL), jnp.float32),
        grid_spec=pltpu.PrefetchScalarGridSpec(
            num_scalar_prefetch=0,
            grid=(n_layers,),
            in_specs=in_specs,
            out_specs=pl.BlockSpec((R, D_MODEL), lambda l: (0, 0)),
        ),
        compiler_params=pltpu.CompilerParams(
            dimension_semantics=("arbitrary",)),
    )(x_flat, batch_mask, *[kp[k] for k in weight_keys])
    return out.reshape(N_MOD, B, L, D_MODEL)


cross_global_encoder = jax.jit(cross_global_encoder_call)


def make_batch_mask():
    # query row p (of the 2*BL rows) attends only keys of its own batch.
    rb = (jax.lax.broadcasted_iota(jnp.int32, (QR, BL), 0) // L) % B
    cb = jax.lax.broadcasted_iota(jnp.int32, (QR, BL), 1) // L
    return jnp.where(rb == cb, 0.0, -1e9).astype(jnp.float32)


# --------------------------------------------------------------------------
# Parameters
# --------------------------------------------------------------------------
def make_layer_params(key):
    ks = jax.random.split(key, 20)

    def lin(k, fi, fo):
        return jax.random.normal(k, (fi, fo), jnp.float32) * (fi ** -0.5)

    def ln(k, n):
        kg, kb = jax.random.split(k)
        return (1.0 + 0.1 * jax.random.normal(kg, (n,), jnp.float32),
                0.1 * jax.random.normal(kb, (n,), jnp.float32))

    def bf16_vals(w):
        # kernel streams these weights as bf16; quantize the master copy so the
        # f32 reference uses identical values (comparison tests kernel math).
        return w.astype(jnp.bfloat16).astype(jnp.float32)

    g_attn, b_attn = ln(ks[6], D_MODEL)
    g_ro, b_ro = ln(ks[9], D_MODEL)
    g_rf, b_rf = ln(ks[12], D_MODEL)
    g_p, b_p = ln(ks[17], D_MODEL)
    return dict(
        w_q=jnp.stack([lin(ks[0], D_MODEL, HDK),
                       lin(ks[1], D_MODEL, HDK),
                       lin(ks[2], D_MODEL, HDK)]),            # per-modality W_q
        w_k=lin(ks[3], D_MODEL, HDK),                         # shared (w_ks[0])
        w_v=lin(ks[4], D_MODEL, HDV),                         # shared (w_vs[0])
        w_fc=lin(ks[5], HDV, D_MODEL),                        # shared (fc[0])
        g_attn=g_attn, b_attn=b_attn,                         # layer_norm[0]
        w_rv=lin(ks[7], D_MODEL, D_MODEL),                    # readout.v
        w_read=jax.random.normal(ks[8], (READ_L, D_MODEL), jnp.float32)
               * (D_MODEL ** -0.5),                           # readout.w (1,1,1,2,D)
        g_ro=g_ro, b_ro=b_ro,                                 # readout.layer_norm
        w_r1=bf16_vals(lin(ks[10], D_MODEL, D_READ_HID)),
        b_r1=0.1 * jax.random.normal(ks[13], (D_READ_HID,), jnp.float32),
        w_r2=bf16_vals(lin(ks[11], D_READ_HID, D_MODEL)),
        b_r2=0.1 * jax.random.normal(ks[14], (D_MODEL,), jnp.float32),
        g_rf=g_rf, b_rf=b_rf,                                 # readout.ffn.layer_norm
        w_p1=lin(ks[15], D_MODEL, D_INNER),
        b_p1=0.1 * jax.random.normal(ks[18], (D_INNER,), jnp.float32),
        w_p2=lin(ks[16], D_INNER, D_MODEL),
        b_p2=0.1 * jax.random.normal(ks[19], (D_MODEL,), jnp.float32),
        g_p=g_p, b_p=b_p,                                     # pos_ffn1.layer_norm
    )


def prepare_kernel_params(raw_layers):
    """Fuse/scale raw per-layer params and stack them along a leading layer axis."""
    inv_t = 1.0 / (D_K ** 0.5)
    inv_m = 1.0 / (D_MODEL ** 0.5)

    def one(p):
        w_q = jnp.stack([p['w_q'][m] * inv_t for m in range(N_MOD)])     # (3, D, HDK)
        kh, vfc = [], []
        for h in range(N_HEAD):
            mk = jnp.zeros((HDK,), jnp.float32).at[h * D_K:(h + 1) * D_K].set(1.0)
            mv = jnp.zeros((HDV,), jnp.float32).at[h * D_V:(h + 1) * D_V].set(1.0)
            kh.append(p['w_k'] * mk[None, :])                 # head-masked K weight
            vfc.append((p['w_v'] * mv[None, :]) @ p['w_fc'])  # head concat+fc folded
        w_r1 = jnp.transpose(p['w_r1'].reshape(D_MODEL, N_RCHUNK, R_CHUNK),
                             (1, 0, 2)).astype(jnp.bfloat16)            # (4, D, 512)
        w_r2 = p['w_r2'].reshape(N_RCHUNK, R_CHUNK, D_MODEL).astype(jnp.bfloat16)
        return dict(
            w_q=w_q,
            w_kh=jnp.stack(kh),                                          # (2, D, HDK)
            w_vfc=jnp.stack(vfc),                                        # (2, D, D)
            w_rv=p['w_rv'],
            w_read=(p['w_read'] * inv_m)[:, :, None],                    # (2, D, 1)
            w_r1=w_r1, b_r1=p['b_r1'].reshape(N_RCHUNK, 1, R_CHUNK),
            w_r2=w_r2, b_r2=p['b_r2'].reshape(1, D_MODEL),
            w_p1=p['w_p1'], b_p1=p['b_p1'].reshape(1, D_INNER),
            w_p2=p['w_p2'], b_p2=p['b_p2'].reshape(1, D_MODEL),
            ln=jnp.stack([p['g_attn'], p['b_attn'], p['g_ro'], p['b_ro'],
                          p['g_rf'], p['b_rf'], p['g_p'], p['b_p']]),    # (8, D)
        )

    per = [one(p) for p in raw_layers]
    return {k: jnp.stack([d[k] for d in per]) for k in per[0]}


# --------------------------------------------------------------------------
# Pure-JAX reference matching the PyTorch forward (eval mode, no mask)
# --------------------------------------------------------------------------
def _reference_layer(x_stack, p):
    HI = jax.lax.Precision.HIGHEST
    mm = lambda a, b: jnp.matmul(a, b, precision=HI)
    lis = [x_stack[i] for i in range(N_MOD)]
    inv_t = 1.0 / (D_K ** 0.5)
    res = []
    for i in range(N_MOD):
        k = mm(lis[i], p['w_k']).reshape(B, L, N_HEAD, D_K).transpose(0, 2, 1, 3)
        v = mm(lis[i], p['w_v']).reshape(B, L, N_HEAD, D_V).transpose(0, 2, 1, 3)
        slots = []
        for j in range(N_MOD):
            if j == i:
                continue
            q = mm(lis[j], p['w_q'][j]).reshape(B, L, N_HEAD, D_K).transpose(0, 2, 1, 3)
            attn = jnp.einsum('bhqd,bhkd->bhqk', q * inv_t, k, precision=HI)
            attn = jax.nn.softmax(attn, axis=-1)
            o = jnp.einsum('bhqk,bhkd->bhqd', attn, v, precision=HI)
            o = o.transpose(0, 2, 1, 3).reshape(B, L, HDV)
            o = mm(o, p['w_fc'])
            slots.append(_layernorm(o, p['g_attn'], p['b_attn']))
        x2 = jnp.stack(slots, axis=2)                                 # (B, L, 2, D)
        rv = mm(x2, p['w_rv'])
        logits = jnp.sum(x2 * (D_MODEL ** -0.5) * p['w_read'], axis=-1)   # (B, L, 2)
        a = jax.nn.softmax(logits, axis=-1)
        ro = jnp.einsum('bls,blsd->bld', a, rv, precision=HI)
        ro = _layernorm(ro, p['g_ro'], p['b_ro'])
        hr = jax.nn.relu(mm(ro, p['w_r1']) + p['b_r1'])
        fr = mm(hr, p['w_r2']) + p['b_r2'] + ro
        res.append(_layernorm(fr, p['g_rf'], p['b_rf']))
    outs = []
    for i in range(N_MOD):
        hp = jax.nn.relu(mm(res[i], p['w_p1']) + p['b_p1'])
        fp = mm(hp, p['w_p2']) + p['b_p2'] + res[i]
        outs.append(_layernorm(fp, p['g_p'], p['b_p']))
    return jnp.stack(outs, axis=0)


def reference_encoder(x_stack, raw_layer_params):
    x = x_stack
    for p in raw_layer_params:
        x = _reference_layer(x, p)
    return x


if __name__ == "__main__":
    key = jax.random.PRNGKey(0)
    kx, kp = jax.random.split(key)
    # output_t, output_a, output_v : each (B, L, D_MODEL)
    input_t = jax.random.normal(jax.random.fold_in(kx, 0), (B, L, D_MODEL), jnp.float32)
    input_a = jax.random.normal(jax.random.fold_in(kx, 1), (B, L, D_MODEL), jnp.float32)
    input_v = jax.random.normal(jax.random.fold_in(kx, 2), (B, L, D_MODEL), jnp.float32)
    x_stack = jnp.stack([input_t, input_a, input_v], axis=0)          # (3, B, L, D)

    raw_layers = [make_layer_params(k) for k in jax.random.split(kp, N_LAYERS)]
    kernel_params = prepare_kernel_params(raw_layers)
    batch_mask = make_batch_mask()

    out = jax.block_until_ready(
        cross_global_encoder(x_stack, kernel_params, batch_mask))

    ref = jax.block_until_ready(reference_encoder(x_stack, raw_layers))
    max_err = float(jnp.max(jnp.abs(out - ref)))
    assert max_err < 1e-2, f"mismatch vs reference: {max_err}"

    # unpack like the PyTorch module's return (output_t, output_a, output_v)
    out_t, out_a, out_v = out[0], out[1], out[2]
    print("KERNEL_OK")
</pallas_src>

<mosaic_0001>
module attributes {stable_mosaic.version = 11 : i64} {
  func.func @cross_global_layer_kernel(%arg0: i32, %arg1: memref<48x32xf32, #tpu.memory_space<vmem>>, %arg2: memref<32x16xf32, #tpu.memory_space<vmem>>, %arg3: memref<1x3x32x32xf32, #tpu.memory_space<vmem>>, %arg4: memref<1x2x32x32xf32, #tpu.memory_space<vmem>>, %arg5: memref<1x2x32x32xf32, #tpu.memory_space<vmem>>, %arg6: memref<1x32x32xf32, #tpu.memory_space<vmem>>, %arg7: memref<1x2x32x1xf32, #tpu.memory_space<vmem>>, %arg8: memref<1x4x32x512xbf16, #tpu.memory_space<vmem>>, %arg9: memref<1x4x1x512xf32, #tpu.memory_space<vmem>>, %arg10: memref<1x4x512x32xbf16, #tpu.memory_space<vmem>>, %arg11: memref<1x1x32xf32, #tpu.memory_space<vmem>>, %arg12: memref<1x32x64xf32, #tpu.memory_space<vmem>>, %arg13: memref<1x1x64xf32, #tpu.memory_space<vmem>>, %arg14: memref<1x64x32xf32, #tpu.memory_space<vmem>>, %arg15: memref<1x1x32xf32, #tpu.memory_space<vmem>>, %arg16: memref<1x8x32xf32, #tpu.memory_space<vmem>>, %arg17: memref<48x32xf32, #tpu.memory_space<vmem>>) attributes {dimension_semantics = [#tpu.dimension_semantics<arbitrary>], iteration_bounds = array<i64: 1>, scalar_prefetch = 0 : i64, scratch_operands = 0 : i64, tpu.core_type = #tpu.core_type<tc>, window_params = [{pipeline_mode = #tpu.pipeline_mode<synchronous>, transform_indices = @transform_0, window_bounds = array<i64: 48, 32>}, {pipeline_mode = #tpu.pipeline_mode<synchronous>, transform_indices = @transform_1, window_bounds = array<i64: 32, 16>}, {transform_indices = @transform_2, window_bounds = array<i64: 1, 3, 32, 32>}, {transform_indices = @transform_3, window_bounds = array<i64: 1, 2, 32, 32>}, {transform_indices = @transform_4, window_bounds = array<i64: 1, 2, 32, 32>}, {transform_indices = @transform_5, window_bounds = array<i64: 1, 32, 32>}, {transform_indices = @transform_6, window_bounds = array<i64: 1, 2, 32, 1>}, {transform_indices = @transform_7, window_bounds = array<i64: 1, 4, 32, 512>}, {transform_indices = @transform_8, window_bounds = array<i64: 1, 4, 1, 512>}, {transform_indices = @transform_9, window_bounds = array<i64: 1, 4, 512, 32>}, {transform_indices = @transform_10, window_bounds = array<i64: 1, 1, 32>}, {transform_indices = @transform_11, window_bounds = array<i64: 1, 32, 64>}, {transform_indices = @transform_12, window_bounds = array<i64: 1, 1, 64>}, {transform_indices = @transform_13, window_bounds = array<i64: 1, 64, 32>}, {transform_indices = @transform_14, window_bounds = array<i64: 1, 1, 32>}, {transform_indices = @transform_15, window_bounds = array<i64: 1, 8, 32>}, {pipeline_mode = #tpu.pipeline_mode<synchronous>, transform_indices = @transform_16, window_bounds = array<i64: 48, 32>}]} {
    %c0_i32 = arith.constant 0 : i32
    %0 = arith.cmpi eq, %arg0, %c0_i32 : i32
    %1 = arith.extui %0 : i1 to i32
    %c0_i32_0 = arith.constant 0 : i32
    %2 = arith.cmpi ne, %1, %c0_i32_0 : i32
    scf.if %2 {
      %c0_191 = arith.constant 0 : index
      %c0_192 = arith.constant 0 : index
      %378 = vector.load %arg1[%c0_191, %c0_192] : memref<48x32xf32, #tpu.memory_space<vmem>>, vector<48x32xf32>
      %c0_193 = arith.constant 0 : index
      %c0_194 = arith.constant 0 : index
      %379 = vector.load %arg17[%c0_193, %c0_194] : memref<48x32xf32, #tpu.memory_space<vmem>>, vector<48x32xf32>
      tpu.vector_store %arg17[%c0_193, %c0_194], %378 {strides = array<i32>} : memref<48x32xf32, #tpu.memory_space<vmem>>, vector<48x32xf32>,
    } else {
    }
    %c0 = arith.constant 0 : index
    %c0_1 = arith.constant 0 : index
    %3 = vector.load %arg17[%c0, %c0_1] : memref<48x32xf32, #tpu.memory_space<vmem>>, vector<48x32xf32>
    %c0_2 = arith.constant 0 : index
    %c0_3 = arith.constant 0 : index
    %4 = vector.load %arg2[%c0_2, %c0_3] : memref<32x16xf32, #tpu.memory_space<vmem>>, vector<32x16xf32>
    %c0_4 = arith.constant 0 : index
    %c0_5 = arith.constant 0 : index
    %c0_6 = arith.constant 0 : index
    %5 = vector.load %arg16[%c0_4, %c0_5, %c0_6] : memref<1x8x32xf32, #tpu.memory_space<vmem>>, vector<1x8x32xf32>
    %6 = vector.shape_cast %5 : vector<1x8x32xf32> to vector<8x32xf32>
    %7 = vector.extract_strided_slice %6 {offsets = [0, 0], sizes = [1, 32], strides = [1, 1]} : vector<8x32xf32> to vector<1x32xf32>
    %8 = vector.extract_strided_slice %6 {offsets = [1, 0], sizes = [1, 32], strides = [1, 1]} : vector<8x32xf32> to vector<1x32xf32>
    %9 = vector.extract_strided_slice %6 {offsets = [2, 0], sizes = [1, 32], strides = [1, 1]} : vector<8x32xf32> to vector<1x32xf32>
    %10 = vector.extract_strided_slice %6 {offsets = [3, 0], sizes = [1, 32], strides = [1, 1]} : vector<8x32xf32> to vector<1x32xf32>
    %11 = vector.extract_strided_slice %6 {offsets = [4, 0], sizes = [1, 32], strides = [1, 1]} : vector<8x32xf32> to vector<1x32xf32>
    %12 = vector.extract_strided_slice %6 {offsets = [5, 0], sizes = [1, 32], strides = [1, 1]} : vector<8x32xf32> to vector<1x32xf32>
    %13 = vector.extract_strided_slice %6 {offsets = [6, 0], sizes = [1, 32], strides = [1, 1]} : vector<8x32xf32> to vector<1x32xf32>
    %14 = vector.extract_strided_slice %6 {offsets = [7, 0], sizes = [1, 32], strides = [1, 1]} : vector<8x32xf32> to vector<1x32xf32>
    %15 = vector.extract_strided_slice %3 {offsets = [0, 0], sizes = [16, 32], strides = [1, 1]} : vector<48x32xf32> to vector<16x32xf32>
    %c0_7 = arith.constant 0 : index
    %c0_8 = arith.constant 0 : index
    %c0_9 = arith.constant 0 : index
    %c0_10 = arith.constant 0 : index
    %16 = vector.load %arg3[%c0_7, %c0_8, %c0_9, %c0_10] : memref<1x3x32x32xf32, #tpu.memory_space<vmem>>, vector<1x1x32x32xf32>
    %17 = vector.shape_cast %16 : vector<1x1x32x32xf32> to vector<32x32xf32>
    %cst = arith.constant dense<0.000000e+00> : vector<16x32xf32>
    %18 = tpu.matmul %15, %17, %cst {dimension_numbers = #tpu.dot_dimension_numbers<[1], [0], [0], [1], [0, 0, 1, 1], [], []>} : vector<16x32xf32>, vector<32x32xf32>, vector<16x32xf32> -> vector<16x32xf32>
    %19 = vector.extract_strided_slice %3 {offsets = [16, 0], sizes = [16, 32], strides = [1, 1]} : vector<48x32xf32> to vector<16x32xf32>
    %c0_11 = arith.constant 0 : index
    %c1 = arith.constant 1 : index
    %c0_12 = arith.constant 0 : index
    %c0_13 = arith.constant 0 : index
    %20 = vector.load %arg3[%c0_11, %c1, %c0_12, %c0_13] : memref<1x3x32x32xf32, #tpu.memory_space<vmem>>, vector<1x1x32x32xf32>
    %21 = vector.shape_cast %20 : vector<1x1x32x32xf32> to vector<32x32xf32>
    %cst_14 = arith.constant dense<0.000000e+00> : vector<16x32xf32>
    %22 = tpu.matmul %19, %21, %cst_14 {dimension_numbers = #tpu.dot_dimension_numbers<[1], [0], [0], [1], [0, 0, 1, 1], [], []>} : vector<16x32xf32>, vector<32x32xf32>, vector<16x32xf32> -> vector<16x32xf32>
    %23 = vector.extract_strided_slice %3 {offsets = [32, 0], sizes = [16, 32], strides = [1, 1]} : vector<48x32xf32> to vector<16x32xf32>
    %c0_15 = arith.constant 0 : index
    %c2 = arith.constant 2 : index
    %c0_16 = arith.constant 0 : index
    %c0_17 = arith.constant 0 : index
    %24 = vector.load %arg3[%c0_15, %c2, %c0_16, %c0_17] : memref<1x3x32x32xf32, #tpu.memory_space<vmem>>, vector<1x1x32x32xf32>
    %25 = vector.shape_cast %24 : vector<1x1x32x32xf32> to vector<32x32xf32>
    %cst_18 = arith.constant dense<0.000000e+00> : vector<16x32xf32>
    %26 = tpu.matmul %23, %25, %cst_18 {dimension_numbers = #tpu.dot_dimension_numbers<[1], [0], [0], [1], [0, 0, 1, 1], [], []>} : vector<16x32xf32>, vector<32x32xf32>, vector<16x32xf32> -> vector<16x32xf32>
    %c0_19 = arith.constant 0 : index
    %c0_20 = arith.constant 0 : index
    %c0_21 = arith.constant 0 : index
    %c0_22 = arith.constant 0 : index
    %27 = vector.load %arg4[%c0_19, %c0_20, %c0_21, %c0_22] : memref<1x2x32x32xf32, #tpu.memory_space<vmem>>, vector<1x1x32x32xf32>
    %28 = vector.shape_cast %27 : vector<1x1x32x32xf32> to vector<32x32xf32>
    %cst_23 = arith.constant dense<0.000000e+00> : vector<48x32xf32>
    %29 = tpu.matmul %3, %28, %cst_23 {dimension_numbers = #tpu.dot_dimension_numbers<[1], [0], [0], [1], [0, 0, 1, 1], [], []>} : vector<48x32xf32>, vector<32x32xf32>, vector<48x32xf32> -> vector<48x32xf32>
    %c0_24 = arith.constant 0 : index
    %c1_25 = arith.constant 1 : index
    %c0_26 = arith.constant 0 : index
    %c0_27 = arith.constant 0 : index
    %30 = vector.load %arg4[%c0_24, %c1_25, %c0_26, %c0_27] : memref<1x2x32x32xf32, #tpu.memory_space<vmem>>, vector<1x1x32x32xf32>
    %31 = vector.shape_cast %30 : vector<1x1x32x32xf32> to vector<32x32xf32>
    %cst_28 = arith.constant dense<0.000000e+00> : vector<48x32xf32>
    %32 = tpu.matmul %3, %31, %cst_28 {dimension_numbers = #tpu.dot_dimension_numbers<[1], [0], [0], [1], [0, 0, 1, 1], [], []>} : vector<48x32xf32>, vector<32x32xf32>, vector<48x32xf32> -> vector<48x32xf32>
    %c0_29 = arith.constant 0 : index
    %c0_30 = arith.constant 0 : index
    %c0_31 = arith.constant 0 : index
    %c0_32 = arith.constant 0 : index
    %33 = vector.load %arg5[%c0_29, %c0_30, %c0_31, %c0_32] : memref<1x2x32x32xf32, #tpu.memory_space<vmem>>, vector<1x1x32x32xf32>
    %34 = vector.shape_cast %33 : vector<1x1x32x32xf32> to vector<32x32xf32>
    %cst_33 = arith.constant dense<0.000000e+00> : vector<48x32xf32>
    %35 = tpu.matmul %3, %34, %cst_33 {dimension_numbers = #tpu.dot_dimension_numbers<[1], [0], [0], [1], [0, 0, 1, 1], [], []>} : vector<48x32xf32>, vector<32x32xf32>, vector<48x32xf32> -> vector<48x32xf32>
    %c0_34 = arith.constant 0 : index
    %c1_35 = arith.constant 1 : index
    %c0_36 = arith.constant 0 : index
    %c0_37 = arith.constant 0 : index
    %36 = vector.load %arg5[%c0_34, %c1_35, %c0_36, %c0_37] : memref<1x2x32x32xf32, #tpu.memory_space<vmem>>, vector<1x1x32x32xf32>
    %37 = vector.shape_cast %36 : vector<1x1x32x32xf32> to vector<32x32xf32>
    %cst_38 = arith.constant dense<0.000000e+00> : vector<48x32xf32>
    %38 = tpu.matmul %3, %37, %cst_38 {dimension_numbers = #tpu.dot_dimension_numbers<[1], [0], [0], [1], [0, 0, 1, 1], [], []>} : vector<48x32xf32>, vector<32x32xf32>, vector<48x32xf32> -> vector<48x32xf32>
    %39 = tpu.concatenate %22, %26 in 0 : vector<16x32xf32>, vector<16x32xf32> -> vector<32x32xf32>
    %40 = vector.extract_strided_slice %29 {offsets = [0, 0], sizes = [16, 32], strides = [1, 1]} : vector<48x32xf32> to vector<16x32xf32>
    %41 = vector.extract_strided_slice %35 {offsets = [0, 0], sizes = [16, 32], strides = [1, 1]} : vector<48x32xf32> to vector<16x32xf32>
    %cst_39 = arith.constant dense<0.000000e+00> : vector<32x16xf32>
    %42 = tpu.matmul %39, %40, %cst_39 {dimension_numbers = #tpu.dot_dimension_numbers<[1], [1], [0], [0], [0, 0, 1, 0], [], []>} : vector<32x32xf32>, vector<16x32xf32>, vector<32x16xf32> -> vector<32x16xf32>
    %43 = arith.addf %42, %4 : vector<32x16xf32>
    %cst_40 = arith.constant dense<0xFF800000> : vector<32xf32>
    %44 = vector.multi_reduction <maximumf>, %43, %cst_40 [1] : vector<32x16xf32> to vector<32xf32>
    %45 = vector.shape_cast %44 : vector<32xf32> to vector<32x1xf32>
    %46 = vector.broadcast %45 : vector<32x1xf32> to vector<32x16xf32>
    %47 = arith.subf %43, %46 : vector<32x16xf32>
    %48 = math.exp %47 : vector<32x16xf32>
    %cst_41 = arith.constant dense<0.000000e+00> : vector<32xf32>
    %49 = vector.multi_reduction <add>, %48, %cst_41 [1] : vector<32x16xf32> to vector<32xf32>
    %50 = vector.shape_cast %49 : vector<32xf32> to vector<32x1xf32>
    %51 = vector.broadcast %50 : vector<32x1xf32> to vector<32x16xf32>
    %52 = arith.divf %48, %51 : vector<32x16xf32>
    %cst_42 = arith.constant dense<0.000000e+00> : vector<32x32xf32>
    %53 = tpu.matmul %52, %41, %cst_42 {dimension_numbers = #tpu.dot_dimension_numbers<[1], [0], [0], [1], [0, 0, 1, 1], [], []>} : vector<32x16xf32>, vector<16x32xf32>, vector<32x32xf32> -> vector<32x32xf32>
    %54 = vector.extract_strided_slice %32 {offsets = [0, 0], sizes = [16, 32], strides = [1, 1]} : vector<48x32xf32> to vector<16x32xf32>
    %55 = vector.extract_strided_slice %38 {offsets = [0, 0], sizes = [16, 32], strides = [1, 1]} : vector<48x32xf32> to vector<16x32xf32>
    %cst_43 = arith.constant dense<0.000000e+00> : vector<32x16xf32>
    %56 = tpu.matmul %39, %54, %cst_43 {dimension_numbers = #tpu.dot_dimension_numbers<[1], [1], [0], [0], [0, 0, 1, 0], [], []>} : vector<32x32xf32>, vector<16x32xf32>, vector<32x16xf32> -> vector<32x16xf32>
    %57 = arith.addf %56, %4 : vector<32x16xf32>
    %cst_44 = arith.constant dense<0xFF800000> : vector<32xf32>
    %58 = vector.multi_reduction <maximumf>, %57, %cst_44 [1] : vector<32x16xf32> to vector<32xf32>
    %59 = vector.shape_cast %58 : vector<32xf32> to vector<32x1xf32>
    %60 = vector.broadcast %59 : vector<32x1xf32> to vector<32x16xf32>
    %61 = arith.subf %57, %60 : vector<32x16xf32>
    %62 = math.exp %61 : vector<32x16xf32>
    %cst_45 = arith.constant dense<0.000000e+00> : vector<32xf32>
    %63 = vector.multi_reduction <add>, %62, %cst_45 [1] : vector<32x16xf32> to vector<32xf32>
    %64 = vector.shape_cast %63 : vector<32xf32> to vector<32x1xf32>
    %65 = vector.broadcast %64 : vector<32x1xf32> to vector<32x16xf32>
    %66 = arith.divf %62, %65 : vector<32x16xf32>
    %cst_46 = arith.constant dense<0.000000e+00> : vector<32x32xf32>
    %67 = tpu.matmul %66, %55, %cst_46 {dimension_numbers = #tpu.dot_dimension_numbers<[1], [0], [0], [1], [0, 0, 1, 1], [], []>} : vector<32x16xf32>, vector<16x32xf32>, vector<32x32xf32> -> vector<32x32xf32>
    %68 = arith.addf %53, %67 : vector<32x32xf32>
    %cst_47 = arith.constant dense<0.000000e+00> : vector<32xf32>
    %69 = vector.multi_reduction <add>, %68, %cst_47 [1] : vector<32x32xf32> to vector<32xf32>
    %70 = vector.shape_cast %69 : vector<32xf32> to vector<32x1xf32>
    %cst_48 = arith.constant 3.200000e+01 : f32
    %71 = vector.broadcast %cst_48 : f32 to vector<32x1xf32>
    %72 = arith.divf %70, %71 : vector<32x1xf32>
    %73 = vector.broadcast %72 : vector<32x1xf32> to vector<32x32xf32>
    %74 = arith.subf %68, %73 : vector<32x32xf32>
    %75 = arith.mulf %74, %74 : vector<32x32xf32>
    %cst_49 = arith.constant dense<0.000000e+00> : vector<32xf32>
    %76 = vector.multi_reduction <add>, %75, %cst_49 [1] : vector<32x32xf32> to vector<32xf32>
    %77 = vector.shape_cast %76 : vector<32xf32> to vector<32x1xf32>
    %cst_50 = arith.constant 3.200000e+01 : f32
    %78 = vector.broadcast %cst_50 : f32 to vector<32x1xf32>
    %79 = arith.divf %77, %78 : vector<32x1xf32>
    %80 = vector.broadcast %72 : vector<32x1xf32> to vector<32x32xf32>
    %81 = arith.subf %68, %80 : vector<32x32xf32>
    %cst_51 = arith.constant 9.99999997E-7 : f32
    %82 = vector.broadcast %cst_51 : f32 to vector<32x1xf32>
    %83 = arith.addf %79, %82 : vector<32x1xf32>
    %84 = math.rsqrt %83 : vector<32x1xf32>
    %85 = vector.broadcast %84 : vector<32x1xf32> to vector<32x32xf32>
    %86 = arith.mulf %81, %85 : vector<32x32xf32>
    %87 = vector.broadcast %7 : vector<1x32xf32> to vector<32x32xf32>
    %88 = arith.mulf %86, %87 : vector<32x32xf32>
    %89 = vector.broadcast %8 : vector<1x32xf32> to vector<32x32xf32>
    %90 = arith.addf %88, %89 : vector<32x32xf32>
    %91 = vector.extract_strided_slice %90 {offsets = [0, 0], sizes = [16, 32], strides = [1, 1]} : vector<32x32xf32> to vector<16x32xf32>
    %92 = vector.extract_strided_slice %90 {offsets = [16, 0], sizes = [16, 32], strides = [1, 1]} : vector<32x32xf32> to vector<16x32xf32>
    %93 = tpu.concatenate %18, %26 in 0 : vector<16x32xf32>, vector<16x32xf32> -> vector<32x32xf32>
    %94 = vector.extract_strided_slice %29 {offsets = [16, 0], sizes = [16, 32], strides = [1, 1]} : vector<48x32xf32> to vector<16x32xf32>
    %95 = vector.extract_strided_slice %35 {offsets = [16, 0], sizes = [16, 32], strides = [1, 1]} : vector<48x32xf32> to vector<16x32xf32>
    %cst_52 = arith.constant dense<0.000000e+00> : vector<32x16xf32>
    %96 = tpu.matmul %93, %94, %cst_52 {dimension_numbers = #tpu.dot_dimension_numbers<[1], [1], [0], [0], [0, 0, 1, 0], [], []>} : vector<32x32xf32>, vector<16x32xf32>, vector<32x16xf32> -> vector<32x16xf32>
    %97 = arith.addf %96, %4 : vector<32x16xf32>
    %cst_53 = arith.constant dense<0xFF800000> : vector<32xf32>
    %98 = vector.multi_reduction <maximumf>, %97, %cst_53 [1] : vector<32x16xf32> to vector<32xf32>
    %99 = vector.shape_cast %98 : vector<32xf32> to vector<32x1xf32>
    %100 = vector.broadcast %99 : vector<32x1xf32> to vector<32x16xf32>
    %101 = arith.subf %97, %100 : vector<32x16xf32>
    %102 = math.exp %101 : vector<32x16xf32>
    %cst_54 = arith.constant dense<0.000000e+00> : vector<32xf32>
    %103 = vector.multi_reduction <add>, %102, %cst_54 [1] : vector<32x16xf32> to vector<32xf32>
    %104 = vector.shape_cast %103 : vector<32xf32> to vector<32x1xf32>
    %105 = vector.broadcast %104 : vector<32x1xf32> to vector<32x16xf32>
    %106 = arith.divf %102, %105 : vector<32x16xf32>
    %cst_55 = arith.constant dense<0.000000e+00> : vector<32x32xf32>
    %107 = tpu.matmul %106, %95, %cst_55 {dimension_numbers = #tpu.dot_dimension_numbers<[1], [0], [0], [1], [0, 0, 1, 1], [], []>} : vector<32x16xf32>, vector<16x32xf32>, vector<32x32xf32> -> vector<32x32xf32>
    %108 = vector.extract_strided_slice %32 {offsets = [16, 0], sizes = [16, 32], strides = [1, 1]} : vector<48x32xf32> to vector<16x32xf32>
    %109 = vector.extract_strided_slice %38 {offsets = [16, 0], sizes = [16, 32], strides = [1, 1]} : vector<48x32xf32> to vector<16x32xf32>
    %cst_56 = arith.constant dense<0.000000e+00> : vector<32x16xf32>
    %110 = tpu.matmul %93, %108, %cst_56 {dimension_numbers = #tpu.dot_dimension_numbers<[1], [1], [0], [0], [0, 0, 1, 0], [], []>} : vector<32x32xf32>, vector<16x32xf32>, vector<32x16xf32> -> vector<32x16xf32>
    %111 = arith.addf %110, %4 : vector<32x16xf32>
    %cst_57 = arith.constant dense<0xFF800000> : vector<32xf32>
    %112 = vector.multi_reduction <maximumf>, %111, %cst_57 [1] : vector<32x16xf32> to vector<32xf32>
    %113 = vector.shape_cast %112 : vector<32xf32> to vector<32x1xf32>
    %114 = vector.broadcast %113 : vector<32x1xf32> to vector<32x16xf32>
    %115 = arith.subf %111, %114 : vector<32x16xf32>
    %116 = math.exp %115 : vector<32x16xf32>
    %cst_58 = arith.constant dense<0.000000e+00> : vector<32xf32>
    %117 = vector.multi_reduction <add>, %116, %cst_58 [1] : vector<32x16xf32> to vector<32xf32>
    %118 = vector.shape_cast %117 : vector<32xf32> to vector<32x1xf32>
    %119 = vector.broadcast %118 : vector<32x1xf32> to vector<32x16xf32>
    %120 = arith.divf %116, %119 : vector<32x16xf32>
    %cst_59 = arith.constant dense<0.000000e+00> : vector<32x32xf32>
    %121 = tpu.matmul %120, %109, %cst_59 {dimension_numbers = #tpu.dot_dimension_numbers<[1], [0], [0], [1], [0, 0, 1, 1], [], []>} : vector<32x16xf32>, vector<16x32xf32>, vector<32x32xf32> -> vector<32x32xf32>
    %122 = arith.addf %107, %121 : vector<32x32xf32>
    %cst_60 = arith.constant dense<0.000000e+00> : vector<32xf32>
    %123 = vector.multi_reduction <add>, %122, %cst_60 [1] : vector<32x32xf32> to vector<32xf32>
    %124 = vector.shape_cast %123 : vector<32xf32> to vector<32x1xf32>
    %cst_61 = arith.constant 3.200000e+01 : f32
    %125 = vector.broadcast %cst_61 : f32 to vector<32x1xf32>
    %126 = arith.divf %124, %125 : vector<32x1xf32>
    %127 = vector.broadcast %126 : vector<32x1xf32> to vector<32x32xf32>
    %128 = arith.subf %122, %127 : vector<32x32xf32>
    %129 = arith.mulf %128, %128 : vector<32x32xf32>
    %cst_62 = arith.constant dense<0.000000e+00> : vector<32xf32>
    %130 = vector.multi_reduction <add>, %129, %cst_62 [1] : vector<32x32xf32> to vector<32xf32>
    %131 = vector.shape_cast %130 : vector<32xf32> to vector<32x1xf32>
    %cst_63 = arith.constant 3.200000e+01 : f32
    %132 = vector.broadcast %cst_63 : f32 to vector<32x1xf32>
    %133 = arith.divf %131, %132 : vector<32x1xf32>
    %134 = vector.broadcast %126 : vector<32x1xf32> to vector<32x32xf32>
    %135 = arith.subf %122, %134 : vector<32x32xf32>
    %cst_64 = arith.constant 9.99999997E-7 : f32
    %136 = vector.broadcast %cst_64 : f32 to vector<32x1xf32>
    %137 = arith.addf %133, %136 : vector<32x1xf32>
    %138 = math.rsqrt %137 : vector<32x1xf32>
    %139 = vector.broadcast %138 : vector<32x1xf32> to vector<32x32xf32>
    %140 = arith.mulf %135, %139 : vector<32x32xf32>
    %141 = vector.broadcast %7 : vector<1x32xf32> to vector<32x32xf32>
    %142 = arith.mulf %140, %141 : vector<32x32xf32>
    %143 = vector.broadcast %8 : vector<1x32xf32> to vector<32x32xf32>
    %144 = arith.addf %142, %143 : vector<32x32xf32>
    %145 = vector.extract_strided_slice %144 {offsets = [0, 0], sizes = [16, 32], strides = [1, 1]} : vector<32x32xf32> to vector<16x32xf32>
    %146 = vector.extract_strided_slice %144 {offsets = [16, 0], sizes = [16, 32], strides = [1, 1]} : vector<32x32xf32> to vector<16x32xf32>
    %147 = tpu.concatenate %18, %22 in 0 : vector<16x32xf32>, vector<16x32xf32> -> vector<32x32xf32>
    %148 = vector.extract_strided_slice %29 {offsets = [32, 0], sizes = [16, 32], strides = [1, 1]} : vector<48x32xf32> to vector<16x32xf32>
    %149 = vector.extract_strided_slice %35 {offsets = [32, 0], sizes = [16, 32], strides = [1, 1]} : vector<48x32xf32> to vector<16x32xf32>
    %cst_65 = arith.constant dense<0.000000e+00> : vector<32x16xf32>
    %150 = tpu.matmul %147, %148, %cst_65 {dimension_numbers = #tpu.dot_dimension_numbers<[1], [1], [0], [0], [0, 0, 1, 0], [], []>} : vector<32x32xf32>, vector<16x32xf32>, vector<32x16xf32> -> vector<32x16xf32>
    %151 = arith.addf %150, %4 : vector<32x16xf32>
    %cst_66 = arith.constant dense<0xFF800000> : vector<32xf32>
    %152 = vector.multi_reduction <maximumf>, %151, %cst_66 [1] : vector<32x16xf32> to vector<32xf32>
    %153 = vector.shape_cast %152 : vector<32xf32> to vector<32x1xf32>
    %154 = vector.broadcast %153 : vector<32x1xf32> to vector<32x16xf32>
    %155 = arith.subf %151, %154 : vector<32x16xf32>
    %156 = math.exp %155 : vector<32x16xf32>
    %cst_67 = arith.constant dense<0.000000e+00> : vector<32xf32>
    %157 = vector.multi_reduction <add>, %156, %cst_67 [1] : vector<32x16xf32> to vector<32xf32>
    %158 = vector.shape_cast %157 : vector<32xf32> to vector<32x1xf32>
    %159 = vector.broadcast %158 : vector<32x1xf32> to vector<32x16xf32>
    %160 = arith.divf %156, %159 : vector<32x16xf32>
    %cst_68 = arith.constant dense<0.000000e+00> : vector<32x32xf32>
    %161 = tpu.matmul %160, %149, %cst_68 {dimension_numbers = #tpu.dot_dimension_numbers<[1], [0], [0], [1], [0, 0, 1, 1], [], []>} : vector<32x16xf32>, vector<16x32xf32>, vector<32x32xf32> -> vector<32x32xf32>
    %162 = vector.extract_strided_slice %32 {offsets = [32, 0], sizes = [16, 32], strides = [1, 1]} : vector<48x32xf32> to vector<16x32xf32>
    %163 = vector.extract_strided_slice %38 {offsets = [32, 0], sizes = [16, 32], strides = [1, 1]} : vector<48x32xf32> to vector<16x32xf32>
    %cst_69 = arith.constant dense<0.000000e+00> : vector<32x16xf32>
    %164 = tpu.matmul %147, %162, %cst_69 {dimension_numbers = #tpu.dot_dimension_numbers<[1], [1], [0], [0], [0, 0, 1, 0], [], []>} : vector<32x32xf32>, vector<16x32xf32>, vector<32x16xf32> -> vector<32x16xf32>
    %165 = arith.addf %164, %4 : vector<32x16xf32>
    %cst_70 = arith.constant dense<0xFF800000> : vector<32xf32>
    %166 = vector.multi_reduction <maximumf>, %165, %cst_70 [1] : vector<32x16xf32> to vector<32xf32>
    %167 = vector.shape_cast %166 : vector<32xf32> to vector<32x1xf32>
    %168 = vector.broadcast %167 : vector<32x1xf32> to vector<32x16xf32>
    %169 = arith.subf %165, %168 : vector<32x16xf32>
    %170 = math.exp %169 : vector<32x16xf32>
    %cst_71 = arith.constant dense<0.000000e+00> : vector<32xf32>
    %171 = vector.multi_reduction <add>, %170, %cst_71 [1] : vector<32x16xf32> to vector<32xf32>
    %172 = vector.shape_cast %171 : vector<32xf32> to vector<32x1xf32>
    %173 = vector.broadcast %172 : vector<32x1xf32> to vector<32x16xf32>
    %174 = arith.divf %170, %173 : vector<32x16xf32>
    %cst_72 = arith.constant dense<0.000000e+00> : vector<32x32xf32>
    %175 = tpu.matmul %174, %163, %cst_72 {dimension_numbers = #tpu.dot_dimension_numbers<[1], [0], [0], [1], [0, 0, 1, 1], [], []>} : vector<32x16xf32>, vector<16x32xf32>, vector<32x32xf32> -> vector<32x32xf32>
    %176 = arith.addf %161, %175 : vector<32x32xf32>
    %cst_73 = arith.constant dense<0.000000e+00> : vector<32xf32>
    %177 = vector.multi_reduction <add>, %176, %cst_73 [1] : vector<32x32xf32> to vector<32xf32>
    %178 = vector.shape_cast %177 : vector<32xf32> to vector<32x1xf32>
    %cst_74 = arith.constant 3.200000e+01 : f32
    %179 = vector.broadcast %cst_74 : f32 to vector<32x1xf32>
    %180 = arith.divf %178, %179 : vector<32x1xf32>
    %181 = vector.broadcast %180 : vector<32x1xf32> to vector<32x32xf32>
    %182 = arith.subf %176, %181 : vector<32x32xf32>
    %183 = arith.mulf %182, %182 : vector<32x32xf32>
    %cst_75 = arith.constant dense<0.000000e+00> : vector<32xf32>
    %184 = vector.multi_reduction <add>, %183, %cst_75 [1] : vector<32x32xf32> to vector<32xf32>
    %185 = vector.shape_cast %184 : vector<32xf32> to vector<32x1xf32>
    %cst_76 = arith.constant 3.200000e+01 : f32
    %186 = vector.broadcast %cst_76 : f32 to vector<32x1xf32>
    %187 = arith.divf %185, %186 : vector<32x1xf32>
    %188 = vector.broadcast %180 : vector<32x1xf32> to vector<32x32xf32>
    %189 = arith.subf %176, %188 : vector<32x32xf32>
    %cst_77 = arith.constant 9.99999997E-7 : f32
    %190 = vector.broadcast %cst_77 : f32 to vector<32x1xf32>
    %191 = arith.addf %187, %190 : vector<32x1xf32>
    %192 = math.rsqrt %191 : vector<32x1xf32>
    %193 = vector.broadcast %192 : vector<32x1xf32> to vector<32x32xf32>
    %194 = arith.mulf %189, %193 : vector<32x32xf32>
    %195 = vector.broadcast %7 : vector<1x32xf32> to vector<32x32xf32>
    %196 = arith.mulf %194, %195 : vector<32x32xf32>
    %197 = vector.broadcast %8 : vector<1x32xf32> to vector<32x32xf32>
    %198 = arith.addf %196, %197 : vector<32x32xf32>
    %199 = vector.extract_strided_slice %198 {offsets = [0, 0], sizes = [16, 32], strides = [1, 1]} : vector<32x32xf32> to vector<16x32xf32>
    %200 = vector.extract_strided_slice %198 {offsets = [16, 0], sizes = [16, 32], strides = [1, 1]} : vector<32x32xf32> to vector<16x32xf32>
    %201 = tpu.concatenate %91, %145, %199 in 0 : vector<16x32xf32>, vector<16x32xf32>, vector<16x32xf32> -> vector<48x32xf32>
    %202 = tpu.concatenate %92, %146, %200 in 0 : vector<16x32xf32>, vector<16x32xf32>, vector<16x32xf32> -> vector<48x32xf32>
    %c0_78 = arith.constant 0 : index
    %c0_79 = arith.constant 0 : index
    %c0_80 = arith.constant 0 : index
    %203 = vector.load %arg6[%c0_78, %c0_79, %c0_80] : memref<1x32x32xf32, #tpu.memory_space<vmem>>, vector<1x32x32xf32>
    %204 = vector.shape_cast %203 : vector<1x32x32xf32> to vector<32x32xf32>
    %cst_81 = arith.constant dense<0.000000e+00> : vector<48x32xf32>
    %205 = tpu.matmul %201, %204, %cst_81 {dimension_numbers = #tpu.dot_dimension_numbers<[1], [0], [0], [1], [0, 0, 1, 1], [], []>} : vector<48x32xf32>, vector<32x32xf32>, vector<48x32xf32> -> vector<48x32xf32>
    %c0_82 = arith.constant 0 : index
    %c0_83 = arith.constant 0 : index
    %c0_84 = arith.constant 0 : index
    %206 = vector.load %arg6[%c0_82, %c0_83, %c0_84] : memref<1x32x32xf32, #tpu.memory_space<vmem>>, vector<1x32x32xf32>
    %207 = vector.shape_cast %206 : vector<1x32x32xf32> to vector<32x32xf32>
    %cst_85 = arith.constant dense<0.000000e+00> : vector<48x32xf32>
    %208 = tpu.matmul %202, %207, %cst_85 {dimension_numbers = #tpu.dot_dimension_numbers<[1], [0], [0], [1], [0, 0, 1, 1], [], []>} : vector<48x32xf32>, vector<32x32xf32>, vector<48x32xf32> -> vector<48x32xf32>
    %c0_86 = arith.constant 0 : index
    %c0_87 = arith.constant 0 : index
    %c0_88 = arith.constant 0 : index
    %c0_89 = arith.constant 0 : index
    %209 = vector.load %arg7[%c0_86, %c0_87, %c0_88, %c0_89] : memref<1x2x32x1xf32, #tpu.memory_space<vmem>>, vector<1x1x32x1xf32>
    %210 = vector.shape_cast %209 : vector<1x1x32x1xf32> to vector<32x1xf32>
    %cst_90 = arith.constant dense<0.000000e+00> : vector<48x1xf32>
    %211 = tpu.matmul %201, %210, %cst_90 {dimension_numbers = #tpu.dot_dimension_numbers<[1], [0], [0], [1], [0, 0, 1, 1], [], []>} : vector<48x32xf32>, vector<32x1xf32>, vector<48x1xf32> -> vector<48x1xf32>
    %c0_91 = arith.constant 0 : index
    %c1_92 = arith.constant 1 : index
    %c0_93 = arith.constant 0 : index
    %c0_94 = arith.constant 0 : index
    %212 = vector.load %arg7[%c0_91, %c1_92, %c0_93, %c0_94] : memref<1x2x32x1xf32, #tpu.memory_space<vmem>>, vector<1x1x32x1xf32>
    %213 = vector.shape_cast %212 : vector<1x1x32x1xf32> to vector<32x1xf32>
    %cst_95 = arith.constant dense<0.000000e+00> : vector<48x1xf32>
    %214 = tpu.matmul %202, %213, %cst_95 {dimension_numbers = #tpu.dot_dimension_numbers<[1], [0], [0], [1], [0, 0, 1, 1], [], []>} : vector<48x32xf32>, vector<32x1xf32>, vector<48x1xf32> -> vector<48x1xf32>
    %215 = arith.maximumf %211, %214 : vector<48x1xf32>
    %216 = arith.subf %211, %215 : vector<48x1xf32>
    %217 = math.exp %216 : vector<48x1xf32>
    %218 = arith.subf %214, %215 : vector<48x1xf32>
    %219 = math.exp %218 : vector<48x1xf32>
    %220 = arith.addf %217, %219 : vector<48x1xf32>
    %cst_96 = arith.constant 1.000000e+00 : f32
    %221 = vector.broadcast %cst_96 : f32 to vector<48x1xf32>
    %222 = arith.divf %221, %220 : vector<48x1xf32>
    %223 = arith.mulf %217, %222 : vector<48x1xf32>
    %224 = vector.broadcast %223 : vector<48x1xf32> to vector<48x32xf32>
    %225 = arith.mulf %224, %205 : vector<48x32xf32>
    %226 = arith.mulf %219, %222 : vector<48x1xf32>
    %227 = vector.broadcast %226 : vector<48x1xf32> to vector<48x32xf32>
    %228 = arith.mulf %227, %208 : vector<48x32xf32>
    %229 = arith.addf %225, %228 : vector<48x32xf32>
    %cst_97 = arith.constant dense<0.000000e+00> : vector<48xf32>
    %230 = vector.multi_reduction <add>, %229, %cst_97 [1] : vector<48x32xf32> to vector<48xf32>
    %231 = vector.shape_cast %230 : vector<48xf32> to vector<48x1xf32>
    %cst_98 = arith.constant 3.200000e+01 : f32
    %232 = vector.broadcast %cst_98 : f32 to vector<48x1xf32>
    %233 = arith.divf %231, %232 : vector<48x1xf32>
    %234 = vector.broadcast %233 : vector<48x1xf32> to vector<48x32xf32>
    %235 = arith.subf %229, %234 : vector<48x32xf32>
    %236 = arith.mulf %235, %235 : vector<48x32xf32>
    %cst_99 = arith.constant dense<0.000000e+00> : vector<48xf32>
    %237 = vector.multi_reduction <add>, %236, %cst_99 [1] : vector<48x32xf32> to vector<48xf32>
    %238 = vector.shape_cast %237 : vector<48xf32> to vector<48x1xf32>
    %cst_100 = arith.constant 3.200000e+01 : f32
    %239 = vector.broadcast %cst_100 : f32 to vector<48x1xf32>
    %240 = arith.divf %238, %239 : vector<48x1xf32>
    %241 = vector.broadcast %233 : vector<48x1xf32> to vector<48x32xf32>
    %242 = arith.subf %229, %241 : vector<48x32xf32>
    %cst_101 = arith.constant 9.99999997E-7 : f32
    %243 = vector.broadcast %cst_101 : f32 to vector<48x1xf32>
    %244 = arith.addf %240, %243 : vector<48x1xf32>
    %245 = math.rsqrt %244 : vector<48x1xf32>
    %246 = vector.broadcast %245 : vector<48x1xf32> to vector<48x32xf32>
    %247 = arith.mulf %242, %246 : vector<48x32xf32>
    %248 = vector.broadcast %9 : vector<1x32xf32> to vector<48x32xf32>
    %249 = arith.mulf %247, %248 : vector<48x32xf32>
    %250 = vector.broadcast %10 : vector<1x32xf32> to vector<48x32xf32>
    %251 = arith.addf %249, %250 : vector<48x32xf32>
    %c0_102 = arith.constant 0 : index
    %c0_103 = arith.constant 0 : index
    %c0_104 = arith.constant 0 : index
    %c0_105 = arith.constant 0 : index
    %252 = vector.load %arg8[%c0_102, %c0_103, %c0_104, %c0_105] : memref<1x4x32x512xbf16, #tpu.memory_space<vmem>>, vector<1x1x32x512xbf16>
    %253 = vector.shape_cast %252 : vector<1x1x32x512xbf16> to vector<32x512xbf16>
    %254 = arith.extf %253 : vector<32x512xbf16> to vector<32x512xf32>
    %cst_106 = arith.constant dense<0.000000e+00> : vector<48x512xf32>
    %255 = tpu.matmul %251, %254, %cst_106 {dimension_numbers = #tpu.dot_dimension_numbers<[1], [0], [0], [1], [0, 0, 1, 1], [], []>} : vector<48x32xf32>, vector<32x512xf32>, vector<48x512xf32> -> vector<48x512xf32>
    %c0_107 = arith.constant 0 : index
    %c0_108 = arith.constant 0 : index
    %c0_109 = arith.constant 0 : index
    %c0_110 = arith.constant 0 : index
    %256 = vector.load %arg9[%c0_107, %c0_108, %c0_109, %c0_110] : memref<1x4x1x512xf32, #tpu.memory_space<vmem>>, vector<1x1x1x512xf32>
    %257 = vector.shape_cast %256 : vector<1x1x1x512xf32> to vector<1x512xf32>
    %258 = vector.broadcast %257 : vector<1x512xf32> to vector<48x512xf32>
    %259 = arith.addf %255, %258 : vector<48x512xf32>
    %cst_111 = arith.constant 0.000000e+00 : f32
    %260 = vector.broadcast %cst_111 : f32 to vector<48x512xf32>
    %261 = arith.maximumf %259, %260 : vector<48x512xf32>
    %c0_112 = arith.constant 0 : index
    %c0_113 = arith.constant 0 : index
    %c0_114 = arith.constant 0 : index
    %c0_115 = arith.constant 0 : index
    %262 = vector.load %arg10[%c0_112, %c0_113, %c0_114, %c0_115] : memref<1x4x512x32xbf16, #tpu.memory_space<vmem>>, vector<1x1x512x32xbf16>
    %263 = vector.shape_cast %262 : vector<1x1x512x32xbf16> to vector<512x32xbf16>
    %264 = arith.extf %263 : vector<512x32xbf16> to vector<512x32xf32>
    %cst_116 = arith.constant dense<0.000000e+00> : vector<48x32xf32>
    %265 = tpu.matmul %261, %264, %cst_116 {dimension_numbers = #tpu.dot_dimension_numbers<[1], [0], [0], [1], [0, 0, 1, 1], [], []>} : vector<48x512xf32>, vector<512x32xf32>, vector<48x32xf32> -> vector<48x32xf32>
    %c0_117 = arith.constant 0 : index
    %c1_118 = arith.constant 1 : index
    %c0_119 = arith.constant 0 : index
    %c0_120 = arith.constant 0 : index
    %266 = vector.load %arg8[%c0_117, %c1_118, %c0_119, %c0_120] : memref<1x4x32x512xbf16, #tpu.memory_space<vmem>>, vector<1x1x32x512xbf16>
    %267 = vector.shape_cast %266 : vector<1x1x32x512xbf16> to vector<32x512xbf16>
    %268 = arith.extf %267 : vector<32x512xbf16> to vector<32x512xf32>
    %cst_121 = arith.constant dense<0.000000e+00> : vector<48x512xf32>
    %269 = tpu.matmul %251, %268, %cst_121 {dimension_numbers = #tpu.dot_dimension_numbers<[1], [0], [0], [1], [0, 0, 1, 1], [], []>} : vector<48x32xf32>, vector<32x512xf32>, vector<48x512xf32> -> vector<48x512xf32>
    %c0_122 = arith.constant 0 : index
    %c1_123 = arith.constant 1 : index
    %c0_124 = arith.constant 0 : index
    %c0_125 = arith.constant 0 : index
    %270 = vector.load %arg9[%c0_122, %c1_123, %c0_124, %c0_125] : memref<1x4x1x512xf32, #tpu.memory_space<vmem>>, vector<1x1x1x512xf32>
    %271 = vector.shape_cast %270 : vector<1x1x1x512xf32> to vector<1x512xf32>
    %272 = vector.broadcast %271 : vector<1x512xf32> to vector<48x512xf32>
    %273 = arith.addf %269, %272 : vector<48x512xf32>
    %cst_126 = arith.constant 0.000000e+00 : f32
    %274 = vector.broadcast %cst_126 : f32 to vector<48x512xf32>
    %275 = arith.maximumf %273, %274 : vector<48x512xf32>
    %c0_127 = arith.constant 0 : index
    %c1_128 = arith.constant 1 : index
    %c0_129 = arith.constant 0 : index
    %c0_130 = arith.constant 0 : index
    %276 = vector.load %arg10[%c0_127, %c1_128, %c0_129, %c0_130] : memref<1x4x512x32xbf16, #tpu.memory_space<vmem>>, vector<1x1x512x32xbf16>
    %277 = vector.shape_cast %276 : vector<1x1x512x32xbf16> to vector<512x32xbf16>
    %278 = arith.extf %277 : vector<512x32xbf16> to vector<512x32xf32>
    %cst_131 = arith.constant dense<0.000000e+00> : vector<48x32xf32>
    %279 = tpu.matmul %275, %278, %cst_131 {dimension_numbers = #tpu.dot_dimension_numbers<[1], [0], [0], [1], [0, 0, 1, 1], [], []>} : vector<48x512xf32>, vector<512x32xf32>, vector<48x32xf32> -> vector<48x32xf32>
    %280 = arith.addf %265, %279 : vector<48x32xf32>
    %c0_132 = arith.constant 0 : index
    %c2_133 = arith.constant 2 : index
    %c0_134 = arith.constant 0 : index
    %c0_135 = arith.constant 0 : index
    %281 = vector.load %arg8[%c0_132, %c2_133, %c0_134, %c0_135] : memref<1x4x32x512xbf16, #tpu.memory_space<vmem>>, vector<1x1x32x512xbf16>
    %282 = vector.shape_cast %281 : vector<1x1x32x512xbf16> to vector<32x512xbf16>
    %283 = arith.extf %282 : vector<32x512xbf16> to vector<32x512xf32>
    %cst_136 = arith.constant dense<0.000000e+00> : vector<48x512xf32>
    %284 = tpu.matmul %251, %283, %cst_136 {dimension_numbers = #tpu.dot_dimension_numbers<[1], [0], [0], [1], [0, 0, 1, 1], [], []>} : vector<48x32xf32>, vector<32x512xf32>, vector<48x512xf32> -> vector<48x512xf32>
    %c0_137 = arith.constant 0 : index
    %c2_138 = arith.constant 2 : index
    %c0_139 = arith.constant 0 : index
    %c0_140 = arith.constant 0 : index
    %285 = vector.load %arg9[%c0_137, %c2_138, %c0_139, %c0_140] : memref<1x4x1x512xf32, #tpu.memory_space<vmem>>, vector<1x1x1x512xf32>
    %286 = vector.shape_cast %285 : vector<1x1x1x512xf32> to vector<1x512xf32>
    %287 = vector.broadcast %286 : vector<1x512xf32> to vector<48x512xf32>
    %288 = arith.addf %284, %287 : vector<48x512xf32>
    %cst_141 = arith.constant 0.000000e+00 : f32
    %289 = vector.broadcast %cst_141 : f32 to vector<48x512xf32>
    %290 = arith.maximumf %288, %289 : vector<48x512xf32>
    %c0_142 = arith.constant 0 : index
    %c2_143 = arith.constant 2 : index
    %c0_144 = arith.constant 0 : index
    %c0_145 = arith.constant 0 : index
    %291 = vector.load %arg10[%c0_142, %c2_143, %c0_144, %c0_145] : memref<1x4x512x32xbf16, #tpu.memory_space<vmem>>, vector<1x1x512x32xbf16>
    %292 = vector.shape_cast %291 : vector<1x1x512x32xbf16> to vector<512x32xbf16>
    %293 = arith.extf %292 : vector<512x32xbf16> to vector<512x32xf32>
    %cst_146 = arith.constant dense<0.000000e+00> : vector<48x32xf32>
    %294 = tpu.matmul %290, %293, %cst_146 {dimension_numbers = #tpu.dot_dimension_numbers<[1], [0], [0], [1], [0, 0, 1, 1], [], []>} : vector<48x512xf32>, vector<512x32xf32>, vector<48x32xf32> -> vector<48x32xf32>
    %295 = arith.addf %280, %294 : vector<48x32xf32>
    %c0_147 = arith.constant 0 : index
    %c3 = arith.constant 3 : index
    %c0_148 = arith.constant 0 : index
    %c0_149 = arith.constant 0 : index
    %296 = vector.load %arg8[%c0_147, %c3, %c0_148, %c0_149] : memref<1x4x32x512xbf16, #tpu.memory_space<vmem>>, vector<1x1x32x512xbf16>
    %297 = vector.shape_cast %296 : vector<1x1x32x512xbf16> to vector<32x512xbf16>
    %298 = arith.extf %297 : vector<32x512xbf16> to vector<32x512xf32>
    %cst_150 = arith.constant dense<0.000000e+00> : vector<48x512xf32>
    %299 = tpu.matmul %251, %298, %cst_150 {dimension_numbers = #tpu.dot_dimension_numbers<[1], [0], [0], [1], [0, 0, 1, 1], [], []>} : vector<48x32xf32>, vector<32x512xf32>, vector<48x512xf32> -> vector<48x512xf32>
    %c0_151 = arith.constant 0 : index
    %c3_152 = arith.constant 3 : index
    %c0_153 = arith.constant 0 : index
    %c0_154 = arith.constant 0 : index
    %300 = vector.load %arg9[%c0_151, %c3_152, %c0_153, %c0_154] : memref<1x4x1x512xf32, #tpu.memory_space<vmem>>, vector<1x1x1x512xf32>
    %301 = vector.shape_cast %300 : vector<1x1x1x512xf32> to vector<1x512xf32>
    %302 = vector.broadcast %301 : vector<1x512xf32> to vector<48x512xf32>
    %303 = arith.addf %299, %302 : vector<48x512xf32>
    %cst_155 = arith.constant 0.000000e+00 : f32
    %304 = vector.broadcast %cst_155 : f32 to vector<48x512xf32>
    %305 = arith.maximumf %303, %304 : vector<48x512xf32>
    %c0_156 = arith.constant 0 : index
    %c3_157 = arith.constant 3 : index
    %c0_158 = arith.constant 0 : index
    %c0_159 = arith.constant 0 : index
    %306 = vector.load %arg10[%c0_156, %c3_157, %c0_158, %c0_159] : memref<1x4x512x32xbf16, #tpu.memory_space<vmem>>, vector<1x1x512x32xbf16>
    %307 = vector.shape_cast %306 : vector<1x1x512x32xbf16> to vector<512x32xbf16>
    %308 = arith.extf %307 : vector<512x32xbf16> to vector<512x32xf32>
    %cst_160 = arith.constant dense<0.000000e+00> : vector<48x32xf32>
    %309 = tpu.matmul %305, %308, %cst_160 {dimension_numbers = #tpu.dot_dimension_numbers<[1], [0], [0], [1], [0, 0, 1, 1], [], []>} : vector<48x512xf32>, vector<512x32xf32>, vector<48x32xf32> -> vector<48x32xf32>
    %310 = arith.addf %295, %309 : vector<48x32xf32>
    %c0_161 = arith.constant 0 : index
    %c0_162 = arith.constant 0 : index
    %c0_163 = arith.constant 0 : index
    %311 = vector.load %arg11[%c0_161, %c0_162, %c0_163] : memref<1x1x32xf32, #tpu.memory_space<vmem>>, vector<1x1x32xf32>
    %312 = vector.shape_cast %311 : vector<1x1x32xf32> to vector<1x32xf32>
    %313 = vector.broadcast %312 : vector<1x32xf32> to vector<48x32xf32>
    %314 = arith.addf %310, %313 : vector<48x32xf32>
    %315 = arith.addf %314, %251 : vector<48x32xf32>
    %cst_164 = arith.constant dense<0.000000e+00> : vector<48xf32>
    %316 = vector.multi_reduction <add>, %315, %cst_164 [1] : vector<48x32xf32> to vector<48xf32>
    %317 = vector.shape_cast %316 : vector<48xf32> to vector<48x1xf32>
    %cst_165 = arith.constant 3.200000e+01 : f32
    %318 = vector.broadcast %cst_165 : f32 to vector<48x1xf32>
    %319 = arith.divf %317, %318 : vector<48x1xf32>
    %320 = vector.broadcast %319 : vector<48x1xf32> to vector<48x32xf32>
    %321 = arith.subf %315, %320 : vector<48x32xf32>
    %322 = arith.mulf %321, %321 : vector<48x32xf32>
    %cst_166 = arith.constant dense<0.000000e+00> : vector<48xf32>
    %323 = vector.multi_reduction <add>, %322, %cst_166 [1] : vector<48x32xf32> to vector<48xf32>
    %324 = vector.shape_cast %323 : vector<48xf32> to vector<48x1xf32>
    %cst_167 = arith.constant 3.200000e+01 : f32
    %325 = vector.broadcast %cst_167 : f32 to vector<48x1xf32>
    %326 = arith.divf %324, %325 : vector<48x1xf32>
    %327 = vector.broadcast %319 : vector<48x1xf32> to vector<48x32xf32>
    %328 = arith.subf %315, %327 : vector<48x32xf32>
    %cst_168 = arith.constant 9.99999997E-7 : f32
    %329 = vector.broadcast %cst_168 : f32 to vector<48x1xf32>
    %330 = arith.addf %326, %329 : vector<48x1xf32>
    %331 = math.rsqrt %330 : vector<48x1xf32>
    %332 = vector.broadcast %331 : vector<48x1xf32> to vector<48x32xf32>
    %333 = arith.mulf %328, %332 : vector<48x32xf32>
    %334 = vector.broadcast %11 : vector<1x32xf32> to vector<48x32xf32>
    %335 = arith.mulf %333, %334 : vector<48x32xf32>
    %336 = vector.broadcast %12 : vector<1x32xf32> to vector<48x32xf32>
    %337 = arith.addf %335, %336 : vector<48x32xf32>
    %c0_169 = arith.constant 0 : index
    %c0_170 = arith.constant 0 : index
    %c0_171 = arith.constant 0 : index
    %338 = vector.load %arg12[%c0_169, %c0_170, %c0_171] : memref<1x32x64xf32, #tpu.memory_space<vmem>>, vector<1x32x64xf32>
    %339 = vector.shape_cast %338 : vector<1x32x64xf32> to vector<32x64xf32>
    %cst_172 = arith.constant dense<0.000000e+00> : vector<48x64xf32>
    %340 = tpu.matmul %337, %339, %cst_172 {dimension_numbers = #tpu.dot_dimension_numbers<[1], [0], [0], [1], [0, 0, 1, 1], [], []>} : vector<48x32xf32>, vector<32x64xf32>, vector<48x64xf32> -> vector<48x64xf32>
    %c0_173 = arith.constant 0 : index
    %c0_174 = arith.constant 0 : index
    %c0_175 = arith.constant 0 : index
    %341 = vector.load %arg13[%c0_173, %c0_174, %c0_175] : memref<1x1x64xf32, #tpu.memory_space<vmem>>, vector<1x1x64xf32>
    %342 = vector.shape_cast %341 : vector<1x1x64xf32> to vector<1x64xf32>
    %343 = vector.broadcast %342 : vector<1x64xf32> to vector<48x64xf32>
    %344 = arith.addf %340, %343 : vector<48x64xf32>
    %cst_176 = arith.constant 0.000000e+00 : f32
    %345 = vector.broadcast %cst_176 : f32 to vector<48x64xf32>
    %346 = arith.maximumf %344, %345 : vector<48x64xf32>
    %c0_177 = arith.constant 0 : index
    %c0_178 = arith.constant 0 : index
    %c0_179 = arith.constant 0 : index
    %347 = vector.load %arg14[%c0_177, %c0_178, %c0_179] : memref<1x64x32xf32, #tpu.memory_space<vmem>>, vector<1x64x32xf32>
    %348 = vector.shape_cast %347 : vector<1x64x32xf32> to vector<64x32xf32>
    %cst_180 = arith.constant dense<0.000000e+00> : vector<48x32xf32>
    %349 = tpu.matmul %346, %348, %cst_180 {dimension_numbers = #tpu.dot_dimension_numbers<[1], [0], [0], [1], [0, 0, 1, 1], [], []>} : vector<48x64xf32>, vector<64x32xf32>, vector<48x32xf32> -> vector<48x32xf32>
    %c0_181 = arith.constant 0 : index
    %c0_182 = arith.constant 0 : index
    %c0_183 = arith.constant 0 : index
    %350 = vector.load %arg15[%c0_181, %c0_182, %c0_183] : memref<1x1x32xf32, #tpu.memory_space<vmem>>, vector<1x1x32xf32>
    %351 = vector.shape_cast %350 : vector<1x1x32xf32> to vector<1x32xf32>
    %352 = vector.broadcast %351 : vector<1x32xf32> to vector<48x32xf32>
    %353 = arith.addf %349, %352 : vector<48x32xf32>
    %354 = arith.addf %353, %337 : vector<48x32xf32>
    %cst_184 = arith.constant dense<0.000000e+00> : vector<48xf32>
    %355 = vector.multi_reduction <add>, %354, %cst_184 [1] : vector<48x32xf32> to vector<48xf32>
    %356 = vector.shape_cast %355 : vector<48xf32> to vector<48x1xf32>
    %cst_185 = arith.constant 3.200000e+01 : f32
    %357 = vector.broadcast %cst_185 : f32 to vector<48x1xf32>
    %358 = arith.divf %356, %357 : vector<48x1xf32>
    %359 = vector.broadcast %358 : vector<48x1xf32> to vector<48x32xf32>
    %360 = arith.subf %354, %359 : vector<48x32xf32>
    %361 = arith.mulf %360, %360 : vector<48x32xf32>
    %cst_186 = arith.constant dense<0.000000e+00> : vector<48xf32>
    %362 = vector.multi_reduction <add>, %361, %cst_186 [1] : vector<48x32xf32> to vector<48xf32>
    %363 = vector.shape_cast %362 : vector<48xf32> to vector<48x1xf32>
    %cst_187 = arith.constant 3.200000e+01 : f32
    %364 = vector.broadcast %cst_187 : f32 to vector<48x1xf32>
    %365 = arith.divf %363, %364 : vector<48x1xf32>
    %366 = vector.broadcast %358 : vector<48x1xf32> to vector<48x32xf32>
    %367 = arith.subf %354, %366 : vector<48x32xf32>
    %cst_188 = arith.constant 9.99999997E-7 : f32
    %368 = vector.broadcast %cst_188 : f32 to vector<48x1xf32>
    %369 = arith.addf %365, %368 : vector<48x1xf32>
    %370 = math.rsqrt %369 : vector<48x1xf32>
    %371 = vector.broadcast %370 : vector<48x1xf32> to vector<48x32xf32>
    %372 = arith.mulf %367, %371 : vector<48x32xf32>
    %373 = vector.broadcast %13 : vector<1x32xf32> to vector<48x32xf32>
    %374 = arith.mulf %372, %373 : vector<48x32xf32>
    %375 = vector.broadcast %14 : vector<1x32xf32> to vector<48x32xf32>
    %376 = arith.addf %374, %375 : vector<48x32xf32>
    %c0_189 = arith.constant 0 : index
    %c0_190 = arith.constant 0 : index
    %377 = vector.load %arg17[%c0_189, %c0_190] : memref<48x32xf32, #tpu.memory_space<vmem>>, vector<48x32xf32>
    tpu.vector_store %arg17[%c0_189, %c0_190], %376 {strides = array<i32>} : memref<48x32xf32, #tpu.memory_space<vmem>>, vector<48x32xf32>,
    return
  }
  func.func @transform_0(%arg0: i32) -> (i32, i32) {
    %c0_i32 = arith.constant 0 : i32
    %c0_i32_0 = arith.constant 0 : i32
    %c0_i32_1 = arith.constant 0 : i32
    return %c0_i32, %c0_i32_0 : i32, i32
  }
  func.func @transform_1(%arg0: i32) -> (i32, i32) {
    %c0_i32 = arith.constant 0 : i32
    %c0_i32_0 = arith.constant 0 : i32
    %c0_i32_1 = arith.constant 0 : i32
    return %c0_i32, %c0_i32_0 : i32, i32
  }
  func.func @transform_2(%arg0: i32) -> (i32, i32, i32, i32) {
    %c0_i32 = arith.constant 0 : i32
    %c0_i32_0 = arith.constant 0 : i32
    %c0_i32_1 = arith.constant 0 : i32
    %c0_i32_2 = arith.constant 0 : i32
    return %arg0, %c0_i32, %c0_i32_0, %c0_i32_1 : i32, i32, i32, i32
  }
  func.func @transform_3(%arg0: i32) -> (i32, i32, i32, i32) {
    %c0_i32 = arith.constant 0 : i32
    %c0_i32_0 = arith.constant 0 : i32
    %c0_i32_1 = arith.constant 0 : i32
    %c0_i32_2 = arith.constant 0 : i32
    return %arg0, %c0_i32, %c0_i32_0, %c0_i32_1 : i32, i32, i32, i32
  }
  func.func @transform_4(%arg0: i32) -> (i32, i32, i32, i32) {
    %c0_i32 = arith.constant 0 : i32
    %c0_i32_0 = arith.constant 0 : i32
    %c0_i32_1 = arith.constant 0 : i32
    %c0_i32_2 = arith.constant 0 : i32
    return %arg0, %c0_i32, %c0_i32_0, %c0_i32_1 : i32, i32, i32, i32
  }
  func.func @transform_5(%arg0: i32) -> (i32, i32, i32) {
    %c0_i32 = arith.constant 0 : i32
    %c0_i32_0 = arith.constant 0 : i32
    %c0_i32_1 = arith.constant 0 : i32
    return %arg0, %c0_i32, %c0_i32_0 : i32, i32, i32
  }
  func.func @transform_6(%arg0: i32) -> (i32, i32, i32, i32) {
    %c0_i32 = arith.constant 0 : i32
    %c0_i32_0 = arith.constant 0 : i32
    %c0_i32_1 = arith.constant 0 : i32
    %c0_i32_2 = arith.constant 0 : i32
    return %arg0, %c0_i32, %c0_i32_0, %c0_i32_1 : i32, i32, i32, i32
  }
  func.func @transform_7(%arg0: i32) -> (i32, i32, i32, i32) {
    %c0_i32 = arith.constant 0 : i32
    %c0_i32_0 = arith.constant 0 : i32
    %c0_i32_1 = arith.constant 0 : i32
    %c0_i32_2 = arith.constant 0 : i32
    return %arg0, %c0_i32, %c0_i32_0, %c0_i32_1 : i32, i32, i32, i32
  }
  func.func @transform_8(%arg0: i32) -> (i32, i32, i32, i32) {
    %c0_i32 = arith.constant 0 : i32
    %c0_i32_0 = arith.constant 0 : i32
    %c0_i32_1 = arith.constant 0 : i32
    %c0_i32_2 = arith.constant 0 : i32
    return %arg0, %c0_i32, %c0_i32_0, %c0_i32_1 : i32, i32, i32, i32
  }
  func.func @transform_9(%arg0: i32) -> (i32, i32, i32, i32) {
    %c0_i32 = arith.constant 0 : i32
    %c0_i32_0 = arith.constant 0 : i32
    %c0_i32_1 = arith.constant 0 : i32
    %c0_i32_2 = arith.constant 0 : i32
    return %arg0, %c0_i32, %c0_i32_0, %c0_i32_1 : i32, i32, i32, i32
  }
  func.func @transform_10(%arg0: i32) -> (i32, i32, i32) {
    %c0_i32 = arith.constant 0 : i32
    %c0_i32_0 = arith.constant 0 : i32
    %c0_i32_1 = arith.constant 0 : i32
    return %arg0, %c0_i32, %c0_i32_0 : i32, i32, i32
  }
  func.func @transform_11(%arg0: i32) -> (i32, i32, i32) {
    %c0_i32 = arith.constant 0 : i32
    %c0_i32_0 = arith.constant 0 : i32
    %c0_i32_1 = arith.constant 0 : i32
    return %arg0, %c0_i32, %c0_i32_0 : i32, i32, i32
  }
  func.func @transform_12(%arg0: i32) -> (i32, i32, i32) {
    %c0_i32 = arith.constant 0 : i32
    %c0_i32_0 = arith.constant 0 : i32
    %c0_i32_1 = arith.constant 0 : i32
    return %arg0, %c0_i32, %c0_i32_0 : i32, i32, i32
  }
  func.func @transform_13(%arg0: i32) -> (i32, i32, i32) {
    %c0_i32 = arith.constant 0 : i32
    %c0_i32_0 = arith.constant 0 : i32
    %c0_i32_1 = arith.constant 0 : i32
    return %arg0, %c0_i32, %c0_i32_0 : i32, i32, i32
  }
  func.func @transform_14(%arg0: i32) -> (i32, i32, i32) {
    %c0_i32 = arith.constant 0 : i32
    %c0_i32_0 = arith.constant 0 : i32
    %c0_i32_1 = arith.constant 0 : i32
    return %arg0, %c0_i32, %c0_i32_0 : i32, i32, i32
  }
  func.func @transform_15(%arg0: i32) -> (i32, i32, i32) {
    %c0_i32 = arith.constant 0 : i32
    %c0_i32_0 = arith.constant 0 : i32
    %c0_i32_1 = arith.constant 0 : i32
    return %arg0, %c0_i32, %c0_i32_0 : i32, i32, i32
  }
  func.func @transform_16(%arg0: i32) -> (i32, i32) {
    %c0_i32 = arith.constant 0 : i32
    %c0_i32_0 = arith.constant 0 : i32
    %c0_i32_1 = arith.constant 0 : i32
    return %c0_i32, %c0_i32_0 : i32, i32
  }
}

</mosaic_0001>

<bundles_post_ra>
// kernel: cross_global_encoder_call.1
= control target key start
LH: loop header
LB: loop body
LE: loop exit
PB: predicated region body
PF: predicated region fallthrough
CT: control target
= control target key end

     0   :  { %s10146_s0 = inlined_call_operand.vmem [shape: f32[48,32], index: 0, kind: input, shape index: {}]   ;;  %s10147_s1 = inlined_call_operand.vmem [shape: f32[32,16], index: 1, kind: input, shape index: {}]   ;;  %s10148_s2 = inlined_call_operand.vmem [shape: f32[1,3,32,32], index: 2, kind: input, shape index: {}]   ;;  %s10149_s3 = inlined_call_operand.vmem [shape: f32[1,2,32,32], index: 3, kind: input, shape index: {}]   ;;  %s10150_s4 = inlined_call_operand.vmem [shape: f32[1,2,32,32], index: 4, kind: input, shape index: {}]   ;;  %s10151_s5 = inlined_call_operand.vmem [shape: f32[1,32,32], index: 5, kind: input, shape index: {}]   ;;  %s10152_s6 = inlined_call_operand.vmem [shape: f32[1,2,32,1], index: 6, kind: input, shape index: {}]   ;;  %s10153_s7 = inlined_call_operand.vmem [shape: bf16[1,4,32,512], index: 7, kind: input, shape index: {}]   ;;  %s10154_s8 = inlined_call_operand.vmem [shape: f32[1,4,1,512], index: 8, kind: input, shape index: {}]   ;;  %s10155_s9 = inlined_call_operand.vmem [shape: bf16[1,4,512,32], index: 9, kind: input, shape index: {}]   ;;  %s10156_s10 = inlined_call_operand.vmem [shape: f32[1,1,32], index: 10, kind: input, shape index: {}]   ;;  %s10157_s11 = inlined_call_operand.vmem [shape: f32[1,32,64], index: 11, kind: input, shape index: {}]   ;;  %s10158_s12 = inlined_call_operand.vmem [shape: f32[1,1,64], index: 12, kind: input, shape index: {}]   ;;  %s10159_s13 = inlined_call_operand.vmem [shape: f32[1,64,32], index: 13, kind: input, shape index: {}]   ;;  %s10160_s14 = inlined_call_operand.vmem [shape: f32[1,1,32], index: 14, kind: input, shape index: {}]   ;;  %s10161_s15 = inlined_call_operand.vmem [shape: f32[1,8,32], index: 15, kind: input, shape index: {}]   ;;  %s10162_s16 = inlined_call_operand.hbm [shape: f32[48,32], index: 16, kind: output, shape index: {}]  }
   0x1   :  { %10176 = sst [smem:[#allocation10_spill]] %s10146_s0 }
   0x2   :  { %v85_v0 = vld [vmem:[%s10148_s2 + $0x18] sm:$0xff]  ;;  %v84_v2 = vld [vmem:[%s10148_s2 + $0x10] sm:$0xff]  ;;  %vm64_vm0 = vcmask 261120   ;;  %v83_v4 = vld [vmem:[%s10148_s2 + $0x8] sm:$0xff]  ;;  %s10177_s20 = sld [smem:[#allocation10_spill]] }
   0x3   :  { %v5921_v1 = vld [vmem:[%s10148_s2 + $0x38] sm:$0xff]  ;;  %7565 = vmatprep.subr.mxu0 %v85_v0  ;;  %v5920_v3 = vld [vmem:[%s10148_s2 + $0x30] sm:$0xff]  ;;  %v5919_v5 = vld [vmem:[%s10148_s2 + $0x28] sm:$0xff] }
   0x4   :  { %7576 = vmatprep.subr.mxu1 %v5921_v1  ;;  %7566 = vmatpush3.msra.mxu0 %v85_v0  ;;  %v82_v7 = vld [vmem:[%s10148_s2] sm:$0xff]  ;;  %v5927_v12 = vld [vmem:[%s10148_s2 + $0x58] sm:$0xff]  ;;  %v5926_v18 = vld [vmem:[%s10148_s2 + $0x50] sm:$0xff] }
   0x5   :  { %7577 = vmatpush3.msra.mxu1 %v5921_v1  ;;  %7567 = vmatprep.subr.mxu0 %v84_v2  ;;  %v5918_v9 = vld [vmem:[%s10148_s2 + $0x20] sm:$0xff]  ;;  %v343_v13 = vld [vmem:[%s10149_s3 + $0x18] sm:$0xff]  ;;  %v342_v19 = vld [vmem:[%s10149_s3 + $0x10] sm:$0xff] }
   0x6   :  { %7578 = vmatprep.subr.mxu1 %v5920_v3  ;;  %7568 = vmatpush3.msra.mxu0 %v84_v2 }
   0x7   :  { %7579 = vmatpush3.msra.mxu1 %v5920_v3  ;;  %7569 = vmatprep.subr.mxu0 %v83_v4 }
   0x8   :  { %v58_v6 = vld [vmem:[%s10177_s20] sm:$0xff]  ;;  %v60_v8 = vld [vmem:[%s10177_s20 + $0x10] sm:$0xff]  ;;  %v59_v10 = vld [vmem:[%s10177_s20 + $0x8] sm:$0xff]  ;;  %7580 = vmatprep.subr.mxu1 %v5919_v5  ;;  %7570 = vmatpush3.msra.mxu0 %v83_v4 }
   0x9   :  { %65 = vst.msk [vmem:[#allocation2] sm:$0xff] %vm64_vm0, %v58_v6  ;;  %67 = vst.msk [vmem:[#allocation2 + $0x10] sm:$0xff] %vm64_vm0, %v60_v8  ;;  %v61_v11 = vld [vmem:[%s10177_s20 + $0x18] sm:$0xff]  ;;  %7581 = vmatpush3.msra.mxu1 %v5919_v5  ;;  %v62_v14 = vld [vmem:[%s10177_s20 + $0x20] sm:$0xff]  ;;  %7571 = vmatprep.subr.mxu0 %v82_v7 }
   0xa   :  { %66 = vst.msk [vmem:[#allocation2 + $0x8] sm:$0xff] %vm64_vm0, %v59_v10  ;;  %68 = vst.msk [vmem:[#allocation2 + $0x18] sm:$0xff] %vm64_vm0, %v61_v11  ;;  %7582 = vmatprep.subr.mxu1 %v5918_v9  ;;  %v63_v15 = vld [vmem:[%s10177_s20 + $0x28] sm:$0xff]  ;;  %7572 = vmatpush3.msra.mxu0 %v82_v7 }
   0xb   :  { %69 = vst.msk [vmem:[#allocation2 + $0x20] sm:$0xff] %vm64_vm0, %v62_v14  ;;  %7583 = vmatpush3.msra.mxu1 %v5918_v9  ;;  %70 = vst.msk [vmem:[#allocation2 + $0x28] sm:$0xff] %vm64_vm0, %v63_v15  ;;  %7587 = vmatprep.subr.mxu0 %v5927_v12 }
   0xc   :  { %7598 = vmatprep.subr.mxu1 %v343_v13 }
  0x10   :  { %v8266_v16 = vld [vmem:[#allocation2] sm:$0xff]  ;;  %v8270_v17 = vld [vmem:[#allocation2 + $0x10] sm:$0xff] }
  0x11   :  { %7573 = vmatprep.mubr.msk.f32.mxu0 %vm64_vm0, %v8266_v16  ;;  %7584 = vmatprep.mubr.msk.f32.mxu1 %vm64_vm0, %v8270_v17  ;;  %v8280_v20 = vld [vmem:[#allocation2 + $0x8] sm:$0xff]  ;;  %v8282_v21 = vld [vmem:[#allocation2 + $0x18] sm:$0xff] }
  0x12   :  { %21 = vsyncpa [#allocation3], 0  ;;  %7574 = vmatmul.mubr.msk.f32.vlgmr.msra.gmra.mxu0 %vm64_vm0, %v8280_v20  ;;  %7585 = vmatmul.mubr.msk.f32.vlgmr.msra.gmra.mxu1 %vm64_vm0, %v8282_v21  ;;  %v5925_v22 = vld [vmem:[%s10148_s2 + $0x48] sm:$0xff]  ;;  %v5924_v24 = vld [vmem:[%s10148_s2 + $0x40] sm:$0xff]  ;;  %vm841_vm1 = vcmask 130048   ;;  %vm5676_vm2 = vcmask 523264  }
  0x13   :  { %7588 = vmatpush3.msra.mxu0 %v5927_v12  ;;  %7599 = vmatpush3.msra.mxu1 %v343_v13  ;;  %v341_v23 = vld [vmem:[%s10149_s3 + $0x8] sm:$0xff]  ;;  %v340_v25 = vld [vmem:[%s10149_s3] sm:$0xff]  ;;  %v5939_v28 = vld [vmem:[%s10149_s3 + $0x38] sm:$0xff] }
  0x14   :  { %7589 = vmatprep.subr.mxu0 %v5926_v18  ;;  %7600 = vmatprep.subr.mxu1 %v342_v19  ;;  %v8300_v26 = vld [vmem:[#allocation2 + $0x20] sm:$0xff]  ;;  %v8302_v27 = vld [vmem:[#allocation2 + $0x28] sm:$0xff]  ;;  %v5938_v29 = vld [vmem:[%s10149_s3 + $0x30] sm:$0xff] }
  0x15   :  { %7590 = vmatpush3.msra.mxu0 %v5926_v18  ;;  %7601 = vmatpush3.msra.mxu1 %v342_v19  ;;  %v542_v30 = vld [vmem:[%s10150_s4 + $0x18] sm:$0xff]  ;;  %v5937_v31 = vld [vmem:[%s10149_s3 + $0x28] sm:$0xff]  ;;  %v541_v32 = vld [vmem:[%s10150_s4 + $0x10] sm:$0xff] }
  0x16   :  { %7591 = vmatprep.subr.mxu0 %v5925_v22  ;;  %7602 = vmatprep.subr.mxu1 %v341_v23  ;;  %v5936_v33 = vld [vmem:[%s10149_s3 + $0x20] sm:$0xff]  ;;  %v5955_v34 = vld [vmem:[%s10150_s4 + $0x38] sm:$0xff]  ;;  %v5954_v35 = vld [vmem:[%s10150_s4 + $0x30] sm:$0xff] }
  0x17   :  { %7592 = vmatpush3.msra.mxu0 %v5925_v22  ;;  %7603 = vmatpush3.msra.mxu1 %v341_v23  ;;  %v540_v36 = vld [vmem:[%s10150_s4 + $0x8] sm:$0xff]  ;;  %v539_v38 = vld [vmem:[%s10150_s4] sm:$0xff]  ;;  %v8486_v19 = vld [vmem:[%s10147_s1 + $0x10] sm:$0xff] }
  0x18   :  { %7593 = vmatprep.subr.mxu0 %v5924_v24  ;;  %7604 = vmatprep.subr.mxu1 %v340_v25  ;;  %v5953_v37 = vld [vmem:[%s10150_s4 + $0x28] sm:$0xff]  ;;  %v5952_v39 = vld [vmem:[%s10150_s4 + $0x20] sm:$0xff] }
  0x19   :  { %7594 = vmatpush3.msra.mxu0 %v5924_v24  ;;  %7595 = vmatprep.mubr.msk.f32.mxu0 %vm64_vm0, %v8300_v26  ;;  %v8465_v3 = vld [vmem:[%s10147_s1 + $0x8] sm:$0xff]  ;;  %v8472_v6 = vld [vmem:[%s10147_s1] sm:$0xff] }
  0x1a   :  { %7605 = vmatpush3.msra.mxu1 %v340_v25  ;;  %7606 = vmatprep.mubr.msk.f32.mxu1 %vm64_vm0, %v8266_v16 }
  0x1b   :  { %7596 = vmatmul.mubr.msk.f32.vlgmr.msra.gmra.mxu0 %vm64_vm0, %v8302_v27  ;;  %7607 = vmatmul.mubr.msk.f32.vlgmr.msra.gmra.mxu1 %vm64_vm0, %v8280_v20 }
  0x1c   :  { %7615 = vmatprep.subr.mxu0 %v5939_v28  ;;  %7623 = vmatprep.mubr.msk.f32.mxu0 %vm64_vm0, %v8266_v16 }
  0x1d   :  { %7616 = vmatpush3.msra.mxu0 %v5939_v28  ;;  %7609 = vmatprep.mubr.msk.f32.mxu1 %vm64_vm0, %v8270_v17 }
  0x1e   :  { %7617 = vmatprep.subr.mxu0 %v5938_v29  ;;  %7632 = vmatprep.subr.mxu1 %v542_v30 }
  0x1f   :  { %7618 = vmatpush3.msra.mxu0 %v5938_v29  ;;  %7610 = vmatmul.mubr.msk.f32.gmra.mxu1 %vm64_vm0, %v8282_v21 }
  0x20   :  { %7619 = vmatprep.subr.mxu0 %v5937_v31  ;;  %7633 = vmatpush3.msra.mxu1 %v542_v30 }
  0x21   :  { %7620 = vmatpush3.msra.mxu0 %v5937_v31  ;;  %7634 = vmatprep.subr.mxu1 %v541_v32 }
  0x22   :  { %7621 = vmatprep.subr.mxu0 %v5936_v33  ;;  %7612 = vmatprep.mubr.msk.f32.mxu1 %vm64_vm0, %v8300_v26 }
  0x23   :  { %7622 = vmatpush3.msra.mxu0 %v5936_v33  ;;  %7635 = vmatpush3.msra.mxu1 %v541_v32 }
  0x24   :  { %7624 = vmatmul.mubr.msk.f32.vlgmr.msra.gmra.mxu0 %vm64_vm0, %v8280_v20  ;;  %7649 = vmatprep.subr.mxu0 %v5955_v34 }
  0x25   :  { %7626 = vmatprep.mubr.msk.f32.mxu0 %vm64_vm0, %v8270_v17  ;;  %7650 = vmatpush3.msra.mxu0 %v5955_v34 }
  0x26   :  { %7651 = vmatprep.subr.mxu0 %v5954_v35  ;;  %7613 = vmatmul.mubr.msk.f32.gmra.mxu1 %vm64_vm0, %v8302_v27 }
  0x27   :  { %7652 = vmatpush3.msra.mxu0 %v5954_v35  ;;  %7636 = vmatprep.subr.mxu1 %v540_v36 }
  0x28   :  { %7627 = vmatmul.mubr.msk.f32.gmra.mxu0 %vm64_vm0, %v8282_v21  ;;  %7653 = vmatprep.subr.mxu0 %v5953_v37 }
  0x29   :  { %7629 = vmatprep.mubr.msk.f32.mxu0 %vm64_vm0, %v8300_v26  ;;  %7637 = vmatpush3.msra.mxu1 %v540_v36 }
  0x2a   :  { %7654 = vmatpush3.msra.mxu0 %v5953_v37  ;;  %7638 = vmatprep.subr.mxu1 %v539_v38 }
  0x2b   :  { %7655 = vmatprep.subr.mxu0 %v5952_v39  ;;  %7639 = vmatpush3.msra.mxu1 %v539_v38 }
  0x2c   :  { %7630 = vmatmul.mubr.msk.f32.gmra.mxu0 %vm64_vm0, %v8302_v27  ;;  %7640 = vmatprep.mubr.msk.f32.mxu1 %vm64_vm0, %v8266_v16 }
  0x2d   :  { %7656 = vmatpush3.msra.mxu0 %v5952_v39  ;;  %7657 = vmatprep.mubr.msk.f32.mxu0 %vm64_vm0, %v8266_v16 }
  0x2e   :  { %7641 = vmatmul.mubr.msk.f32.vlgmr.msra.gmra.mxu1 %vm64_vm0, %v8280_v20 }
  0x2f   :  { %7643 = vmatprep.mubr.msk.f32.mxu1 %vm64_vm0, %v8270_v17 }
  0x30   :  { %7658 = vmatmul.mubr.msk.f32.vlgmr.msra.gmra.mxu0 %vm64_vm0, %v8280_v20 }
  0x31   :  { %7660 = vmatprep.mubr.msk.f32.mxu0 %vm64_vm0, %v8270_v17 }
  0x32   :  { %7644 = vmatmul.mubr.msk.f32.gmra.mxu1 %vm64_vm0, %v8282_v21 }
  0x33   :  { %7646 = vmatprep.mubr.msk.f32.mxu1 %vm64_vm0, %v8300_v26 }
  0x34   :  { %7661 = vmatmul.mubr.msk.f32.gmra.mxu0 %vm64_vm0, %v8282_v21 }
  0x35   :  { %7663 = vmatprep.mubr.msk.f32.mxu0 %vm64_vm0, %v8300_v26 }
  0x36   :  { %7647 = vmatmul.mubr.msk.f32.gmra.mxu1 %vm64_vm0, %v8302_v27 }
  0x38   :  { %7664 = vmatmul.mubr.msk.f32.gmra.mxu0 %vm64_vm0, %v8302_v27  ;;  %v8496_v27 = vld [vmem:[%s10147_s1 + $0x18] sm:$0xff] }
  0xd2   :  { %v8392_v40 = vpop.f32.mrf.mxu1  ;;  %v8400_v42 = vpop.f32.mrf.mxu0 }
  0xd4   :  { %v8394_v41 = vpop.f32.mrf.mxu1  ;;  %v8402_v44 = vpop.f32.mrf.mxu0 }
  0xd5   :  { %7670 = vmatprep.mubr.msk.f32.mxu1 %vm64_vm0, %v8394_v41  ;;  %7680 = vmatprep.mubr.msk.f32.mxu0 %vm64_vm0, %v8394_v41 }
  0xdb   :  { %v7608_v43 = vpop.f32.mrf.mxu1  ;;  %v8406_v46 = vpop.f32.mrf.mxu0 }
  0xdc   :  { %7666 = vmatprep.subr.msk.mxu1 %vm64_vm0, %v7608_v43 }
  0xdd   :  { %7667 = vmatpush3.xpose.msk.msra.mxu1 %vm64_vm0, %v7608_v43  ;;  %v410_v45 = vpop.f32.mrf.mxu1  ;;  %v8412_v48 = vpop.f32.mrf.mxu0 }
  0xde   :  { %7668 = vmatprep.subr.msk.mxu1 %vm64_vm0, %v410_v45 }
  0xdf   :  { %v8409_v47 = vpop.f32.mrf.mxu1 }
  0xe1   :  { %7669 = vmatpush3.xpose.msk.msra.mxu1 %vm64_vm0, %v410_v45  ;;  %v8414_v49 = vpop.f32.mrf.mxu1 }
  0xe4   :  { %v7625_v50 = vpop.f32.mrf.mxu0  ;;  %7671 = vmatmul.mubr.msk.f32.vlgmr.msra.gmra.mxu1 %vm64_vm0, %v8392_v40 }
  0xe5   :  { %7676 = vmatprep.subr.msk.mxu0 %vm64_vm0, %v7625_v50  ;;  %7896 = vmatprep.subr.msk.mxu1 %vm64_vm0, %v7625_v50 }
  0xe6   :  { %v510_v51 = vpop.f32.mrf.mxu0  ;;  %7673 = vmatprep.mubr.msk.f32.mxu1 %vm64_vm0, %v8412_v48  ;;  %7677 = vmatpush3.xpose.msk.msra.mxu0 %vm64_vm0, %v7625_v50  ;;  %v8423_v52 = vpop.f32.mrf.mxu1 }
  0xe7   :  { %7898 = vmatpush3.xpose.msk.msra.mxu1 %vm64_vm0, %v7625_v50  ;;  %7678 = vmatprep.subr.msk.mxu0 %vm64_vm0, %v510_v51 }
  0xe8   :  { %7897 = vmatprep.subr.msk.mxu1 %vm64_vm0, %v510_v51  ;;  %7674 = vmatmul.mubr.msk.f32.gmra.mxu1 %vm64_vm0, %v8406_v46  ;;  %v8430_v53 = vpop.f32.mrf.mxu0  ;;  %v8437_v55 = vpop.f32.mrf.mxu1 }
  0xe9   :  { %7683 = vmatprep.mubr.msk.f32.mxu1 %vm64_vm0, %v8412_v48 }
  0xea   :  { %7679 = vmatpush3.xpose.msk.msra.mxu0 %vm64_vm0, %v510_v51  ;;  %v8435_v54 = vpop.f32.mrf.mxu0 }
  0xeb   :  { %7899 = vmatpush3.xpose.msk.msra.mxu1 %vm64_vm0, %v510_v51 }
  0xec   :  { %v8440_v56 = vpop.f32.mrf.mxu0 }
  0xed   :  { %7681 = vmatmul.mubr.msk.f32.vlgmr.msra.gmra.mxu0 %vm64_vm0, %v8392_v40 }
  0xee   :  { %7684 = vmatmul.mubr.msk.f32.vlgmr.msra.gmra.mxu1 %vm64_vm0, %v8406_v46  ;;  %v8446_v57 = vpop.f32.mrf.mxu0  ;;  %v7642_v58 = vpop.f32.mrf.mxu1 }
  0xef   :  { %7696 = vmatprep.subr.mxu0 %v7642_v58 }
  0xf0   :  { %v7659_v59 = vpop.f32.mrf.mxu0  ;;  %v609_v60 = vpop.f32.mrf.mxu1  ;;  %7697 = vmatpush3.msra.mxu0 %v7642_v58 }
  0xf1   :  { %7686 = vmatprep.subr.mxu1 %v7659_v59  ;;  %7698 = vmatprep.subr.mxu0 %v609_v60 }
  0xf2   :  { %v709_v61 = vpop.f32.mrf.mxu0  ;;  %7687 = vmatpush3.msra.mxu1 %v7659_v59  ;;  %7699 = vmatpush3.msra.mxu0 %v609_v60  ;;  %v8452_v62 = vpop.f32.mrf.mxu1 }
  0xf3   :  { %7688 = vmatprep.subr.mxu1 %v709_v61  ;;  %7716 = vmatprep.subr.msk.mxu0 %vm64_vm0, %v8430_v53 }
  0xf4   :  { %7689 = vmatpush3.msra.mxu1 %v709_v61  ;;  %v8454_v63 = vpop.f32.mrf.mxu1  ;;  %v8458_v1 = vpop.f32.mrf.mxu0 }
  0xf5   :  { %7706 = vmatprep.subr.msk.mxu1 %vm64_vm0, %v8409_v47 }
  0xf6   :  { %v8456_v0 = vpop.f32.mrf.mxu1  ;;  %v8467_v4 = vpop.f32.mrf.mxu0 }
  0xf8   :  { %v8460_v2 = vpop.f32.mrf.mxu1  ;;  %v8476_v10 = vpop.f32.mrf.mxu0 }
  0xfa   :  { %v8480_v15 = vpop.f32.mrf.mxu0 }
 0x1a4   :  { %v7672_v5 = vpop.f32.mrf.mxu1 }
 0x1a5   :  { %v828_v7 = vadd.f32 %v7672_v5, %v8465_v3 }
 0x1a6   :  { %v822_v8 = vpop.f32.mrf.mxu1 }
 0x1a7   :  { %v845_v9 = vsel %vm841_vm1, %v828_v7, -inf  ;;  %v823_v11 = vadd.f32 %v822_v8, %v8472_v6 }
 0x1a8   :  { %846 = vmax.xlane.f32.xlu1 %v845_v9  ;;  %v7675_v12 = vpop.f32.mrf.mxu1 }
 0x1a9   :  { %v842_v13 = vsel %vm841_vm1, %v823_v11, -inf  ;;  %v838_v30 = vadd.f32 %v7675_v12, %v8496_v27 }
 0x1aa   :  { %843 = vmax.xlane.f32.xlu0 %v842_v13  ;;  %v832_v14 = vpop.f32.mrf.mxu1 }
 0x1ab   :  { %v833_v25 = vadd.f32 %v832_v14, %v8486_v19  ;;  %v851_v33 = vsel %vm841_vm1, %v838_v30, -inf }
 0x1ad   :  { %v7682_v16 = vpop.f32.mrf.mxu0  ;;  %v848_v31 = vsel %vm841_vm1, %v833_v25, -inf }
 0x1ae   :  { %v964_v17 = vadd.f32 %v7682_v16, %v8465_v3  ;;  %v7685_v18 = vpop.f32.mrf.mxu1 }
 0x1af   :  { %v958_v20 = vpop.f32.mrf.mxu0  ;;  %v974_v28 = vadd.f32 %v7685_v18, %v8496_v27 }
 0x1b0   :  { %v959_v21 = vadd.f32 %v958_v20, %v8472_v6  ;;  %v968_v22 = vpop.f32.mrf.mxu1  ;;  %v980_v23 = vsel %vm841_vm1, %v964_v17, -inf }
 0x1b1   :  { %v969_v24 = vadd.f32 %v968_v22, %v8486_v19  ;;  %981 = vmax.xlane.f32.xlu1 %v980_v23  ;;  %v986_v32 = vsel %vm841_vm1, %v974_v28, -inf }
 0x1b2   :  { %v977_v26 = vsel %vm841_vm1, %v959_v21, -inf }
 0x1b3   :  { %978 = vmax.xlane.f32.xlu0 %v977_v26  ;;  %v983_v29 = vsel %vm841_vm1, %v969_v24, -inf }
 0x1b5   :  { %984 = vmax.xlane.f32.xlu1 %v983_v29 }
 0x1b7   :  { %849 = vmax.xlane.f32.xlu0 %v848_v31 }
 0x1b9   :  { %987 = vmax.xlane.f32.xlu1 %v986_v32 }
 0x1bb   :  { %852 = vmax.xlane.f32.xlu0 %v851_v33 }
 0x231   :  { %v847_v34 = vpop.xlane.xlu1 %846 }
 0x232   :  { %v855_v35 = vsub.f32 %v828_v7, %v847_v34 }
 0x233   :  { %v844_v36 = vpop.xlane.xlu0 %843 }
 0x234   :  { %v860_v37 = vmul.f32 1.442695, %v855_v35  ;;  %v854_v38 = vsub.f32 %v823_v11, %v844_v36 }
 0x236   :  { %7907 = vpow2.f32 %v860_v37  ;;  %v858_v39 = vmul.f32 1.442695, %v854_v38 }
 0x238   :  { %7909 = vpow2.f32 %v858_v39 }
 0x23a   :  { %v982_v43 = vpop.xlane.xlu1 %981 }
 0x23b   :  { %v990_v45 = vsub.f32 %v964_v17, %v982_v43 }
 0x23c   :  { %v979_v50 = vpop.xlane.xlu0 %978 }
 0x23d   :  { %v995_v51 = vmul.f32 1.442695, %v990_v45  ;;  %v989_v58 = vsub.f32 %v959_v21, %v979_v50 }
 0x23e   :  { %v985_v59 = vpop.xlane.xlu1 %984 }
 0x23f   :  { %7911 = vpow2.f32 %v995_v51  ;;  %v993_v60 = vmul.f32 1.442695, %v989_v58  ;;  %v991_v61 = vsub.f32 %v969_v24, %v985_v59 }
 0x240   :  { %v850_v5 = vpop.xlane.xlu0 %849 }
 0x241   :  { %7913 = vpow2.f32 %v993_v60  ;;  %v997_v8 = vmul.f32 1.442695, %v991_v61  ;;  %v856_v9 = vsub.f32 %v833_v25, %v850_v5 }
 0x242   :  { %v988_v7 = vpop.xlane.xlu1 %987 }
 0x243   :  { %v7908_v12 = vpop.eup %7907  ;;  %v862_v13 = vmul.f32 1.442695, %v856_v9  ;;  %v992_v11 = vsub.f32 %v974_v28, %v988_v7  ;;  %7915 = vpow2.f32 %v997_v8 }
 0x244   :  { %v853_v14 = vpop.xlane.xlu0 %852  ;;  %v869_v16 = vsel %vm841_vm1, %v7908_v12, 0.0 }
 0x245   :  { %v7910_v17 = vpop.eup %7909  ;;  %7917 = vpow2.f32 %v862_v13  ;;  %v999_v18 = vmul.f32 1.442695, %v992_v11  ;;  %v857_v20 = vsub.f32 %v838_v30, %v853_v14  ;;  %870 = vadd.xlane.f32.xlu0 %v869_v16 }
 0x246   :  { %v866_v22 = vsel %vm841_vm1, %v7910_v17, 0.0 }
 0x247   :  { %v864_v21 = vmul.f32 1.442695, %v857_v20  ;;  %7919 = vpow2.f32 %v999_v18 }
 0x249   :  { %7921 = vpow2.f32 %v864_v21  ;;  %867 = vadd.xlane.f32.xlu0 %v866_v22 }
 0x24c   :  { %v7912_v23 = vpop.eup %7911 }
 0x24d   :  { %v1004_v24 = vsel %vm841_vm1, %v7912_v23, 0.0 }
 0x24e   :  { %v7914_v25 = vpop.eup %7913  ;;  %1005 = vadd.xlane.f32.xlu1 %v1004_v24 }
 0x24f   :  { %v1001_v28 = vsel %vm841_vm1, %v7914_v25, 0.0 }
 0x250   :  { %v7916_v26 = vpop.eup %7915 }
 0x251   :  { %v1007_v32 = vsel %vm841_vm1, %v7916_v26, 0.0 }
 0x252   :  { %v7918_v29 = vpop.eup %7917  ;;  %1002 = vadd.xlane.f32.xlu1 %v1001_v28 }
 0x253   :  { %v872_v31 = vsel %vm841_vm1, %v7918_v29, 0.0 }
 0x254   :  { %873 = vadd.xlane.f32.xlu0 %v872_v31  ;;  %v7920_v30 = vpop.eup %7919 }
 0x255   :  { %v1010_v35 = vsel %vm841_vm1, %v7920_v30, 0.0 }
 0x256   :  { %v7922_v33 = vpop.eup %7921  ;;  %1008 = vadd.xlane.f32.xlu1 %v1007_v32 }
 0x257   :  { %v875_v34 = vsel %vm841_vm1, %v7922_v33, 0.0 }
 0x258   :  { %876 = vadd.xlane.f32.xlu0 %v875_v34 }
 0x25a   :  { %1011 = vadd.xlane.f32.xlu1 %v1010_v35 }
 0x2ce   :  { %v871_v36 = vpop.xlane.xlu0 %870 }
 0x2cf   :  { %7923 = vrcp.f32 %v871_v36 }
 0x2d2   :  { %v868_v37 = vpop.xlane.xlu0 %867 }
 0x2d3   :  { %7925 = vrcp.f32 %v868_v37 }
 0x2d7   :  { %v1006_v38 = vpop.xlane.xlu1 %1005 }
 0x2d8   :  { %7927 = vrcp.f32 %v1006_v38 }
 0x2db   :  { %v1003_v39 = vpop.xlane.xlu1 %1002 }
 0x2dc   :  { %7929 = vrcp.f32 %v1003_v39  ;;  %v7924_v45 = vpop.eup %7923 }
 0x2dd   :  { %v874_v43 = vpop.xlane.xlu0 %873  ;;  %v881_v60 = vmul.f32 %v7924_v45, %v7908_v12 }
 0x2de   :  { %7931 = vrcp.f32 %v874_v43 }
 0x2df   :  { %v1009_v50 = vpop.xlane.xlu1 %1008 }
 0x2e0   :  { %v7926_v51 = vpop.eup %7925  ;;  %7933 = vrcp.f32 %v1009_v50 }
 0x2e1   :  { %v877_v58 = vpop.xlane.xlu0 %876  ;;  %v879_v59 = vmul.f32 %v7926_v51, %v7910_v17 }
 0x2e2   :  { %7935 = vrcp.f32 %v877_v58 }
 0x2e3   :  { %v1012_v61 = vpop.xlane.xlu1 %1011  ;;  %7700 = vmatprep.mubr.msk.f32.mxu0 %vm841_vm1, %v879_v59 }
 0x2e4   :  { %7937 = vrcp.f32 %v1012_v61  ;;  %7701 = vmatmul.mubr.msk.f32.vlgmr.msra.gmra.mxu0 %vm841_vm1, %v881_v60 }
 0x2e5   :  { %7717 = vmatpush3.xpose.msk.msra.mxu0 %vm64_vm0, %v8430_v53  ;;  %v7928_v5 = vpop.eup %7927 }
 0x2e6   :  { %7718 = vmatprep.subr.msk.mxu0 %vm64_vm0, %v8435_v54  ;;  %v1016_v12 = vmul.f32 %v7928_v5, %v7912_v23 }
 0x2e9   :  { %v7930_v8 = vpop.eup %7929  ;;  %7719 = vmatpush3.xpose.msk.msra.mxu0 %vm64_vm0, %v8435_v54 }
 0x2ea   :  { %7736 = vmatprep.subr.mxu0 %v8452_v62  ;;  %v1014_v9 = vmul.f32 %v7930_v8, %v7914_v25 }
 0x2eb   :  { %v7932_v7 = vpop.eup %7931 }
 0x2ec   :  { %7690 = vmatprep.mubr.msk.f32.mxu1 %vm841_vm1, %v1014_v9  ;;  %v883_v13 = vmul.f32 %v7932_v7, %v7918_v29 }
 0x2ed   :  { %v7934_v11 = vpop.eup %7933  ;;  %7691 = vmatmul.mubr.msk.f32.vlgmr.msra.gmra.mxu1 %vm841_vm1, %v1016_v12 }
 0x2ee   :  { %7707 = vmatpush3.xpose.msk.msra.mxu1 %vm64_vm0, %v8409_v47  ;;  %7703 = vmatprep.mubr.msk.f32.mxu0 %vm841_vm1, %v883_v13  ;;  %v1018_v53 = vmul.f32 %v7934_v11, %v7916_v26 }
 0x2ef   :  { %v7936_v14 = vpop.eup %7935  ;;  %7708 = vmatprep.subr.msk.mxu1 %vm64_vm0, %v8414_v49 }
 0x2f0   :  { %7693 = vmatprep.mubr.msk.f32.mxu1 %vm841_vm1, %v1018_v53  ;;  %v885_v54 = vmul.f32 %v7936_v14, %v7922_v33 }
 0x2f1   :  { %v7938_v16 = vpop.eup %7937 }
 0x2f2   :  { %7709 = vmatpush3.xpose.msk.msra.mxu1 %vm64_vm0, %v8414_v49  ;;  %7704 = vmatmul.mubr.msk.f32.gmra.mxu0 %vm841_vm1, %v885_v54  ;;  %v1020_v17 = vmul.f32 %v7938_v16, %v7920_v30 }
 0x2f3   :  { %7726 = vmatprep.subr.mxu1 %v8458_v1  ;;  %7720 = vmatprep.mubr.msk.f32.mxu0 %vm64_vm0, %v8402_v44 }
 0x2f4   :  { %7694 = vmatmul.mubr.msk.f32.gmra.mxu1 %vm841_vm1, %v1020_v17 }
 0x2f5   :  { %7710 = vmatprep.mubr.msk.f32.mxu1 %vm64_vm0, %v8402_v44 }
 0x2f6   :  { %7721 = vmatmul.mubr.msk.f32.vlgmr.msra.gmra.mxu0 %vm64_vm0, %v8400_v42 }
 0x2f7   :  { %7737 = vmatpush3.msra.mxu0 %v8452_v62  ;;  %7723 = vmatprep.mubr.msk.f32.mxu0 %vm64_vm0, %v8412_v48 }
 0x2f8   :  { %7738 = vmatprep.subr.mxu0 %v8454_v63  ;;  %7711 = vmatmul.mubr.msk.f32.vlgmr.msra.gmra.mxu1 %vm64_vm0, %v8400_v42 }
 0x2f9   :  { %7727 = vmatpush3.msra.mxu1 %v8458_v1  ;;  %7739 = vmatpush3.msra.mxu0 %v8454_v63 }
 0x2fa   :  { %7713 = vmatprep.mubr.msk.f32.mxu1 %vm64_vm0, %v8412_v48  ;;  %7728 = vmatprep.subr.mxu1 %v8467_v4 }
 0x2fb   :  { %7756 = vmatprep.subr.msk.mxu0 %vm64_vm0, %v8440_v56  ;;  %7724 = vmatmul.mubr.msk.f32.gmra.mxu0 %vm64_vm0, %v8406_v46 }
 0x2fc   :  { %7729 = vmatpush3.msra.mxu1 %v8467_v4 }
 0x2fd   :  { %7746 = vmatprep.subr.msk.mxu1 %vm64_vm0, %v8423_v52  ;;  %7714 = vmatmul.mubr.msk.f32.gmra.mxu1 %vm64_vm0, %v8406_v46 }
 0x3a4   :  { %v7702_v47 = vpop.f32.mrf.mxu0 }
 0x3a6   :  { %v8562_v48 = vpop.f32.mrf.mxu0 }
 0x3ad   :  { %v7692_v49 = vpop.f32.mrf.mxu1 }
 0x3ae   :  { %v8560_v62 = vadd.f32 %v7702_v47, %v7692_v49 }
 0x3af   :  { %v8564_v63 = vpop.f32.mrf.mxu1 }
 0x3b2   :  { %v7705_v1 = vpop.f32.mrf.mxu0 }
 0x3b4   :  { %v7695_v18 = vpop.f32.mrf.mxu1  ;;  %v8566_v20 = vpop.f32.mrf.mxu0 }
 0x3b5   :  { %v8568_v21 = vadd.f32 %v7705_v1, %v7695_v18 }
 0x3b6   :  { %v8570_v4 = vpop.f32.mrf.mxu1  ;;  %v7722_v22 = vpop.f32.mrf.mxu0 }
 0x3b7   :  { %v1503_v23 = vadd.f32 %v7722_v22, %v8465_v3 }
 0x3b8   :  { %v7712_v46 = vpop.f32.mrf.mxu1  ;;  %v1497_v24 = vpop.f32.mrf.mxu0 }
 0x3b9   :  { %v1368_v25 = vadd.f32 %v7712_v46, %v8465_v3  ;;  %v1498_v26 = vadd.f32 %v1497_v24, %v8472_v6  ;;  %v1519_v28 = vsel %vm841_vm1, %v1503_v23, -inf }
 0x3ba   :  { %v1362_v29 = vpop.f32.mrf.mxu1  ;;  %1520 = vmax.xlane.f32.xlu1 %v1519_v28 }
 0x3bb   :  { %v1363_v31 = vadd.f32 %v1362_v29, %v8472_v6  ;;  %v7725_v30 = vpop.f32.mrf.mxu0  ;;  %v1384_v32 = vsel %vm841_vm1, %v1368_v25, -inf  ;;  %v1516_v35 = vsel %vm841_vm1, %v1498_v26, -inf }
 0x3bc   :  { %1385 = vmax.xlane.f32.xlu0 %v1384_v32  ;;  %v1513_v43 = vadd.f32 %v7725_v30, %v8496_v27 }
 0x3bd   :  { %v7715_v33 = vpop.f32.mrf.mxu1  ;;  %v1507_v34 = vpop.f32.mrf.mxu0  ;;  %v1381_v38 = vsel %vm841_vm1, %v1363_v31, -inf }
 0x3be   :  { %v1508_v36 = vadd.f32 %v1507_v34, %v8486_v19  ;;  %1517 = vmax.xlane.f32.xlu1 %v1516_v35  ;;  %v1378_v50 = vadd.f32 %v7715_v33, %v8496_v27  ;;  %v1525_v58 = vsel %vm841_vm1, %v1513_v43, -inf }
 0x3bf   :  { %v1372_v37 = vpop.f32.mrf.mxu1 }
 0x3c0   :  { %v1373_v39 = vadd.f32 %v1372_v37, %v8486_v19  ;;  %1382 = vmax.xlane.f32.xlu0 %v1381_v38  ;;  %v1522_v45 = vsel %vm841_vm1, %v1508_v36, -inf  ;;  %v1390_v59 = vsel %vm841_vm1, %v1378_v50, -inf }
 0x3c2   :  { %1523 = vmax.xlane.f32.xlu1 %v1522_v45  ;;  %v1387_v51 = vsel %vm841_vm1, %v1373_v39, -inf }
 0x3c4   :  { %1388 = vmax.xlane.f32.xlu0 %v1387_v51 }
 0x3c6   :  { %1526 = vmax.xlane.f32.xlu1 %v1525_v58 }
 0x3c8   :  { %1391 = vmax.xlane.f32.xlu0 %v1390_v59 }
 0x443   :  { %v1521_v60 = vpop.xlane.xlu1 %1520 }
 0x444   :  { %v1529_v61 = vsub.f32 %v1503_v23, %v1521_v60 }
 0x445   :  { %v1386_v5 = vpop.xlane.xlu0 %1385 }
 0x446   :  { %v1534_v8 = vmul.f32 1.442695, %v1529_v61  ;;  %v1394_v9 = vsub.f32 %v1368_v25, %v1386_v5 }
 0x447   :  { %v1518_v7 = vpop.xlane.xlu1 %1517 }
 0x448   :  { %7939 = vpow2.f32 %v1534_v8  ;;  %v1399_v12 = vmul.f32 1.442695, %v1394_v9  ;;  %v1528_v13 = vsub.f32 %v1498_v26, %v1518_v7 }
 0x449   :  { %v1383_v11 = vpop.xlane.xlu0 %1382 }
 0x44a   :  { %7941 = vpow2.f32 %v1399_v12  ;;  %v1532_v53 = vmul.f32 1.442695, %v1528_v13  ;;  %v1393_v14 = vsub.f32 %v1363_v31, %v1383_v11 }
 0x44b   :  { %v1524_v54 = vpop.xlane.xlu1 %1523 }
 0x44c   :  { %7943 = vpow2.f32 %v1532_v53  ;;  %v1397_v16 = vmul.f32 1.442695, %v1393_v14  ;;  %v1530_v17 = vsub.f32 %v1508_v36, %v1524_v54 }
 0x44d   :  { %v1389_v47 = vpop.xlane.xlu0 %1388 }
 0x44e   :  { %7945 = vpow2.f32 %v1397_v16  ;;  %v1536_v49 = vmul.f32 1.442695, %v1530_v17  ;;  %v1395_v1 = vsub.f32 %v1373_v39, %v1389_v47 }
 0x44f   :  { %v1527_v18 = vpop.xlane.xlu1 %1526 }
 0x450   :  { %7947 = vpow2.f32 %v1536_v49  ;;  %v1401_v22 = vmul.f32 1.442695, %v1395_v1  ;;  %v1531_v23 = vsub.f32 %v1513_v43, %v1527_v18 }
 0x451   :  { %v1392_v46 = vpop.xlane.xlu0 %1391 }
 0x452   :  { %7949 = vpow2.f32 %v1401_v22  ;;  %v1538_v24 = vmul.f32 1.442695, %v1531_v23  ;;  %v1396_v25 = vsub.f32 %v1378_v50, %v1392_v46 }
 0x454   :  { %7951 = vpow2.f32 %v1538_v24  ;;  %v1403_v26 = vmul.f32 1.442695, %v1396_v25 }
 0x455   :  { %v7940_v28 = vpop.eup %7939 }
 0x456   :  { %7953 = vpow2.f32 %v1403_v26  ;;  %v1543_v29 = vsel %vm841_vm1, %v7940_v28, 0.0 }
 0x457   :  { %v7942_v31 = vpop.eup %7941  ;;  %1544 = vadd.xlane.f32.xlu1 %v1543_v29 }
 0x458   :  { %v1408_v30 = vsel %vm841_vm1, %v7942_v31, 0.0 }
 0x459   :  { %v7944_v32 = vpop.eup %7943  ;;  %1409 = vadd.xlane.f32.xlu0 %v1408_v30 }
 0x45a   :  { %v1540_v33 = vsel %vm841_vm1, %v7944_v32, 0.0 }
 0x45b   :  { %v7946_v34 = vpop.eup %7945  ;;  %1541 = vadd.xlane.f32.xlu1 %v1540_v33 }
 0x45c   :  { %v1405_v35 = vsel %vm841_vm1, %v7946_v34, 0.0 }
 0x45d   :  { %v7948_v36 = vpop.eup %7947  ;;  %1406 = vadd.xlane.f32.xlu0 %v1405_v35 }
 0x45e   :  { %v1546_v37 = vsel %vm841_vm1, %v7948_v36, 0.0 }
 0x45f   :  { %v7950_v38 = vpop.eup %7949  ;;  %1547 = vadd.xlane.f32.xlu1 %v1546_v37 }
 0x460   :  { %v1411_v39 = vsel %vm841_vm1, %v7950_v38, 0.0 }
 0x461   :  { %v7952_v43 = vpop.eup %7951  ;;  %1412 = vadd.xlane.f32.xlu0 %v1411_v39 }
 0x462   :  { %v1549_v45 = vsel %vm841_vm1, %v7952_v43, 0.0 }
 0x463   :  { %v7954_v50 = vpop.eup %7953  ;;  %1550 = vadd.xlane.f32.xlu1 %v1549_v45 }
 0x464   :  { %v1414_v51 = vsel %vm841_vm1, %v7954_v50, 0.0 }
 0x465   :  { %1415 = vadd.xlane.f32.xlu0 %v1414_v51 }
 0x4e0   :  { %v1545_v58 = vpop.xlane.xlu1 %1544 }
 0x4e1   :  { %7955 = vrcp.f32 %v1545_v58 }
 0x4e2   :  { %v1410_v59 = vpop.xlane.xlu0 %1409 }
 0x4e4   :  { %v1542_v60 = vpop.xlane.xlu1 %1541 }
 0x4e5   :  { %7957 = vrcp.f32 %v1542_v60 }
 0x4e6   :  { %7959 = vrcp.f32 %v1410_v59  ;;  %v1407_v61 = vpop.xlane.xlu0 %1406 }
 0x4e7   :  { %7961 = vrcp.f32 %v1407_v61 }
 0x4e8   :  { %v1548_v5 = vpop.xlane.xlu1 %1547 }
 0x4e9   :  { %7963 = vrcp.f32 %v1548_v5 }
 0x4ea   :  { %v1413_v8 = vpop.xlane.xlu0 %1412 }
 0x4eb   :  { %7965 = vrcp.f32 %v1413_v8 }
 0x4ec   :  { %v1551_v9 = vpop.xlane.xlu1 %1550 }
 0x4ed   :  { %7967 = vrcp.f32 %v1551_v9 }
 0x4ee   :  { %v1416_v7 = vpop.xlane.xlu0 %1415  ;;  %v7956_v12 = vpop.eup %7955 }
 0x4ef   :  { %7969 = vrcp.f32 %v1416_v7  ;;  %v1555_v54 = vmul.f32 %v7956_v12, %v7940_v28 }
 0x4f2   :  { %v7958_v13 = vpop.eup %7957 }
 0x4f3   :  { %v7960_v11 = vpop.eup %7959  ;;  %v1553_v53 = vmul.f32 %v7958_v13, %v7944_v32 }
 0x4f4   :  { %v7962_v14 = vpop.eup %7961  ;;  %v1420_v47 = vmul.f32 %v7960_v11, %v7942_v31 }
 0x4f5   :  { %7730 = vmatprep.mubr.msk.f32.mxu1 %vm841_vm1, %v1553_v53  ;;  %v1418_v16 = vmul.f32 %v7962_v14, %v7946_v34 }
 0x4f6   :  { %v7964_v17 = vpop.eup %7963  ;;  %7731 = vmatmul.mubr.msk.f32.vlgmr.msra.gmra.mxu1 %vm841_vm1, %v1555_v54 }
 0x4f7   :  { %7747 = vmatpush3.xpose.msk.msra.mxu1 %vm64_vm0, %v8423_v52  ;;  %7740 = vmatprep.mubr.msk.f32.mxu0 %vm841_vm1, %v1418_v16  ;;  %v1557_v49 = vmul.f32 %v7964_v17, %v7948_v36 }
 0x4f8   :  { %v7966_v1 = vpop.eup %7965  ;;  %7748 = vmatprep.subr.msk.mxu1 %vm64_vm0, %v8437_v55  ;;  %7741 = vmatmul.mubr.msk.f32.vlgmr.msra.gmra.mxu0 %vm841_vm1, %v1420_v47 }
 0x4f9   :  { %7757 = vmatpush3.xpose.msk.msra.mxu0 %vm64_vm0, %v8440_v56  ;;  %7733 = vmatprep.mubr.msk.f32.mxu1 %vm841_vm1, %v1557_v49  ;;  %v1422_v18 = vmul.f32 %v7966_v1, %v7950_v38 }
 0x4fa   :  { %v7968_v22 = vpop.eup %7967  ;;  %7758 = vmatprep.subr.msk.mxu0 %vm64_vm0, %v8446_v57 }
 0x4fb   :  { %7749 = vmatpush3.xpose.msk.msra.mxu1 %vm64_vm0, %v8437_v55  ;;  %7743 = vmatprep.mubr.msk.f32.mxu0 %vm841_vm1, %v1422_v18  ;;  %v1559_v52 = vmul.f32 %v7968_v22, %v7952_v43 }
 0x4fc   :  { %v7970_v23 = vpop.eup %7969  ;;  %7766 = vmatprep.subr.mxu1 %v8476_v10 }
 0x4fd   :  { %7759 = vmatpush3.xpose.msk.msra.mxu0 %vm64_vm0, %v8446_v57  ;;  %7734 = vmatmul.mubr.msk.f32.gmra.mxu1 %vm841_vm1, %v1559_v52  ;;  %v1424_v56 = vmul.f32 %v7970_v23, %v7954_v50 }
 0x4fe   :  { %7776 = vmatprep.subr.mxu0 %v8456_v0  ;;  %7750 = vmatprep.mubr.msk.f32.mxu1 %vm64_vm0, %v8402_v44 }
 0x4ff   :  { %7744 = vmatmul.mubr.msk.f32.gmra.mxu0 %vm841_vm1, %v1424_v56 }
 0x500   :  { %7760 = vmatprep.mubr.msk.f32.mxu0 %vm64_vm0, %v8402_v44 }
 0x501   :  { %7751 = vmatmul.mubr.msk.f32.vlgmr.msra.gmra.mxu1 %vm64_vm0, %v8400_v42 }
 0x502   :  { %7767 = vmatpush3.msra.mxu1 %v8476_v10  ;;  %7753 = vmatprep.mubr.msk.f32.mxu1 %vm64_vm0, %v8394_v41 }
 0x503   :  { %7768 = vmatprep.subr.mxu1 %v8480_v15  ;;  %7761 = vmatmul.mubr.msk.f32.vlgmr.msra.gmra.mxu0 %vm64_vm0, %v8400_v42 }
 0x504   :  { %7769 = vmatpush3.msra.mxu1 %v8480_v15  ;;  %7777 = vmatpush3.msra.mxu0 %v8456_v0 }
 0x505   :  { %7763 = vmatprep.mubr.msk.f32.mxu0 %vm64_vm0, %v8394_v41  ;;  %7778 = vmatprep.subr.mxu0 %v8460_v2 }
 0x506   :  { %7754 = vmatmul.mubr.msk.f32.gmra.mxu1 %vm64_vm0, %v8392_v40  ;;  %7779 = vmatpush3.msra.mxu0 %v8460_v2 }
 0x507   :  { %7764 = vmatmul.mubr.msk.f32.gmra.mxu0 %vm64_vm0, %v8392_v40 }
 0x5b6   :  { %v7732_v44 = vpop.f32.mrf.mxu1 }
 0x5b8   :  { %v7742_v55 = vpop.f32.mrf.mxu0  ;;  %v8642_v57 = vpop.f32.mrf.mxu1 }
 0x5b9   :  { %v8640_v42 = vadd.f32 %v7742_v55, %v7732_v44 }
 0x5ba   :  { %v8644_v0 = vpop.f32.mrf.mxu0 }
 0x5bd   :  { %v7735_v10 = vpop.f32.mrf.mxu1 }
 0x5bf   :  { %v8646_v41 = vpop.f32.mrf.mxu1  ;;  %v7745_v15 = vpop.f32.mrf.mxu0 }
 0x5c0   :  { %v8648_v46 = vadd.f32 %v7745_v15, %v7735_v10 }
 0x5c1   :  { %v8650_v24 = vpop.f32.mrf.mxu0  ;;  %v7752_v2 = vpop.f32.mrf.mxu1 }
 0x5c2   :  { %v1892_v25 = vadd.f32 %v7752_v2, %v8465_v3 }
 0x5c3   :  { %v1886_v40 = vpop.f32.mrf.mxu1  ;;  %v7762_v26 = vpop.f32.mrf.mxu0 }
 0x5c4   :  { %v1887_v28 = vadd.f32 %v1886_v40, %v8472_v6  ;;  %v2027_v29 = vadd.f32 %v7762_v26, %v8465_v3  ;;  %v1908_v31 = vsel %vm841_vm1, %v1892_v25, -inf }
 0x5c5   :  { %1909 = vmax.xlane.f32.xlu0 %v1908_v31  ;;  %v2021_v30 = vpop.f32.mrf.mxu0 }
 0x5c6   :  { %v7755_v32 = vpop.f32.mrf.mxu1  ;;  %v2022_v33 = vadd.f32 %v2021_v30, %v8472_v6  ;;  %v2043_v34 = vsel %vm841_vm1, %v2027_v29, -inf  ;;  %v1905_v37 = vsel %vm841_vm1, %v1887_v28, -inf }
 0x5c7   :  { %2044 = vmax.xlane.f32.xlu1 %v2043_v34  ;;  %v7765_v35 = vpop.f32.mrf.mxu0  ;;  %v1902_v45 = vadd.f32 %v7755_v32, %v8496_v27 }
 0x5c8   :  { %v1896_v36 = vpop.f32.mrf.mxu1  ;;  %v2040_v43 = vsel %vm841_vm1, %v2022_v33, -inf  ;;  %v2037_v50 = vadd.f32 %v7765_v35, %v8496_v27 }
 0x5c9   :  { %v1897_v38 = vadd.f32 %v1896_v36, %v8486_v19  ;;  %1906 = vmax.xlane.f32.xlu0 %v1905_v37  ;;  %v2031_v39 = vpop.f32.mrf.mxu0  ;;  %v1914_v58 = vsel %vm841_vm1, %v1902_v45, -inf  ;;  %v8687_v36 = vadd.f32 %v8566_v20, %v8570_v4  ;;  %v8702_v20 = vadd.f32 %v8650_v24, %v8646_v41 }
 0x5ca   :  { %v2032_v3 = vadd.f32 %v2031_v39, %v8486_v19  ;;  %v2049_v59 = vsel %vm841_vm1, %v2037_v50, -inf  ;;  %v1224_v4 = vsel %vm64_vm0, %v8568_v21, 0.0  ;;  %v1763_v41 = vsel %vm64_vm0, %v8648_v46, 0.0 }
 0x5cb   :  { %2041 = vmax.xlane.f32.xlu1 %v2040_v43  ;;  %v1911_v6 = vsel %vm841_vm1, %v1897_v38, -inf  ;;  %v1221_v39 = vsel %vm64_vm0, %v8687_v36, 0.0 }
 0x5cc   :  { %v2046_v51 = vsel %vm841_vm1, %v2032_v3, -inf }
 0x5cd   :  { %1912 = vmax.xlane.f32.xlu0 %v1911_v6 }
 0x5cf   :  { %2047 = vmax.xlane.f32.xlu1 %v2046_v51 }
 0x5d1   :  { %1915 = vmax.xlane.f32.xlu0 %v1914_v58 }
 0x5d3   :  { %2050 = vmax.xlane.f32.xlu1 %v2049_v59 }
 0x64e   :  { %v1910_v19 = vpop.xlane.xlu0 %1909 }
 0x64f   :  { %v1918_v60 = vsub.f32 %v1892_v25, %v1910_v19 }
 0x650   :  { %v2045_v61 = vpop.xlane.xlu1 %2044 }
 0x651   :  { %v1923_v5 = vmul.f32 1.442695, %v1918_v60  ;;  %v2053_v8 = vsub.f32 %v2027_v29, %v2045_v61 }
 0x652   :  { %v1907_v9 = vpop.xlane.xlu0 %1906 }
 0x653   :  { %7971 = vpow2.f32 %v1923_v5  ;;  %v2058_v7 = vmul.f32 1.442695, %v2053_v8  ;;  %v1917_v12 = vsub.f32 %v1887_v28, %v1907_v9 }
 0x654   :  { %v2042_v13 = vpop.xlane.xlu1 %2041 }
 0x655   :  { %7973 = vpow2.f32 %v2058_v7  ;;  %v1921_v27 = vmul.f32 1.442695, %v1917_v12  ;;  %v2052_v11 = vsub.f32 %v2022_v33, %v2042_v13  ;;  %v8682_v33 = vadd.f32 %v8562_v48, %v8564_v63 }
 0x656   :  { %v1913_v53 = vpop.xlane.xlu0 %1912  ;;  %v8696_v48 = vadd.f32 %v8644_v0, %v8642_v57  ;;  %v1218_v63 = vsel %vm64_vm0, %v8560_v62, 0.0  ;;  %v1760_v57 = vsel %vm64_vm0, %v8702_v20, 0.0  ;;  %v1757_v0 = vsel %vm64_vm0, %v8640_v42, 0.0 }
 0x657   :  { %7975 = vpow2.f32 %v1921_v27  ;;  %v2056_v14 = vmul.f32 1.442695, %v2052_v11  ;;  %v1919_v54 = vsub.f32 %v1897_v38, %v1913_v53  ;;  %v1215_v38 = vsel %vm64_vm0, %v8682_v33, 0.0 }
 0x658   :  { %v2048_v16 = vpop.xlane.xlu1 %2047 }
 0x659   :  { %7977 = vpow2.f32 %v2056_v14  ;;  %v1925_v17 = vmul.f32 1.442695, %v1919_v54  ;;  %v2054_v47 = vsub.f32 %v2032_v3, %v2048_v16  ;;  %v1754_v3 = vsel %vm64_vm0, %v8696_v48, 0.0 }
 0x65a   :  { %v1916_v49 = vpop.xlane.xlu0 %1915 }
 0x65b   :  { %7979 = vpow2.f32 %v1925_v17  ;;  %v2060_v1 = vmul.f32 1.442695, %v2054_v47  ;;  %v1920_v18 = vsub.f32 %v1902_v45, %v1916_v49 }
 0x65c   :  { %v2051_v22 = vpop.xlane.xlu1 %2050 }
 0x65d   :  { %7981 = vpow2.f32 %v2060_v1  ;;  %v1927_v52 = vmul.f32 1.442695, %v1920_v18  ;;  %v2055_v23 = vsub.f32 %v2037_v50, %v2051_v22 }
 0x65f   :  { %7983 = vpow2.f32 %v1927_v52  ;;  %v2062_v56 = vmul.f32 1.442695, %v2055_v23 }
 0x660   :  { %v8668_v44 = vpop.eup %7971 }
 0x661   :  { %7985 = vpow2.f32 %v2062_v56  ;;  %v1932_v55 = vsel %vm841_vm1, %v8668_v44, 0.0 }
 0x662   :  { %v8672_v10 = vpop.eup %7973  ;;  %1933 = vadd.xlane.f32.xlu0 %v1932_v55 }
 0x663   :  { %v2067_v15 = vsel %vm841_vm1, %v8672_v10, 0.0 }
 0x664   :  { %v7976_v2 = vpop.eup %7975  ;;  %2068 = vadd.xlane.f32.xlu1 %v2067_v15 }
 0x665   :  { %v1929_v25 = vsel %vm841_vm1, %v7976_v2, 0.0 }
 0x666   :  { %v7978_v40 = vpop.eup %7977  ;;  %1930 = vadd.xlane.f32.xlu0 %v1929_v25 }
 0x667   :  { %v2064_v26 = vsel %vm841_vm1, %v7978_v40, 0.0 }
 0x668   :  { %v7980_v28 = vpop.eup %7979  ;;  %2065 = vadd.xlane.f32.xlu1 %v2064_v26 }
 0x669   :  { %v1935_v29 = vsel %vm841_vm1, %v7980_v28, 0.0 }
 0x66a   :  { %v7982_v31 = vpop.eup %7981  ;;  %1936 = vadd.xlane.f32.xlu0 %v1935_v29 }
 0x66b   :  { %v2070_v30 = vsel %vm841_vm1, %v7982_v31, 0.0 }
 0x66c   :  { %v7984_v32 = vpop.eup %7983  ;;  %2071 = vadd.xlane.f32.xlu1 %v2070_v30 }
 0x66d   :  { %v1938_v34 = vsel %vm841_vm1, %v7984_v32, 0.0 }
 0x66e   :  { %v7986_v35 = vpop.eup %7985  ;;  %1939 = vadd.xlane.f32.xlu0 %v1938_v34 }
 0x66f   :  { %v2073_v37 = vsel %vm841_vm1, %v7986_v35, 0.0 }
 0x670   :  { %2074 = vadd.xlane.f32.xlu1 %v2073_v37 }
 0x672   :  { %1216 = vadd.xlane.f32.xlu0 %v1215_v38 }
 0x674   :  { %1222 = vadd.xlane.f32.xlu1 %v1221_v39 }
 0x676   :  { %1219 = vadd.xlane.f32.xlu0 %v1218_v63 }
 0x678   :  { %1225 = vadd.xlane.f32.xlu1 %v1224_v4 }
 0x67a   :  { %1755 = vadd.xlane.f32.xlu0 %v1754_v3 }
 0x67c   :  { %1761 = vadd.xlane.f32.xlu1 %v1760_v57 }
 0x67e   :  { %1758 = vadd.xlane.f32.xlu0 %v1757_v0 }
 0x680   :  { %1764 = vadd.xlane.f32.xlu1 %v1763_v41 }
 0x6eb   :  { %v1934_v24 = vpop.xlane.xlu0 %1933 }
 0x6ec   :  { %7987 = vrcp.f32 %v1934_v24 }
 0x6ed   :  { %v2069_v43 = vpop.xlane.xlu1 %2068 }
 0x6ef   :  { %v1931_v45 = vpop.xlane.xlu0 %1930 }
 0x6f0   :  { %7989 = vrcp.f32 %v1931_v45 }
 0x6f1   :  { %7991 = vrcp.f32 %v2069_v43  ;;  %v2066_v6 = vpop.xlane.xlu1 %2065 }
 0x6f2   :  { %7993 = vrcp.f32 %v2066_v6 }
 0x6f3   :  { %v1937_v50 = vpop.xlane.xlu0 %1936 }
 0x6f4   :  { %7995 = vrcp.f32 %v1937_v50 }
 0x6f5   :  { %v2072_v51 = vpop.xlane.xlu1 %2071 }
 0x6f6   :  { %7997 = vrcp.f32 %v2072_v51 }
 0x6f7   :  { %v1940_v58 = vpop.xlane.xlu0 %1939 }
 0x6f8   :  { %7999 = vrcp.f32 %v1940_v58 }
 0x6f9   :  { %v2075_v59 = vpop.xlane.xlu1 %2074  ;;  %v7988_v19 = vpop.eup %7987 }
 0x6fa   :  { %8001 = vrcp.f32 %v2075_v59  ;;  %v1944_v9 = vmul.f32 %v7988_v19, %v8668_v44 }
 0x6fb   :  { %v1217_v47 = vpop.xlane.xlu0 %1216 }
 0x6fc   :  { %v1228_v52 = vmul.f32 0.03125, %v1217_v47 }
 0x6fd   :  { %v7990_v60 = vpop.eup %7989  ;;  %v1223_v18 = vpop.xlane.xlu1 %1222 }
 0x6fe   :  { %v7992_v61 = vpop.eup %7991  ;;  %v1942_v5 = vmul.f32 %v7990_v60, %v7976_v2  ;;  %v1230_v29 = vmul.f32 0.03125, %v1223_v18 }
 0x6ff   :  { %v7994_v8 = vpop.eup %7993  ;;  %v2079_v13 = vmul.f32 %v7992_v61, %v8672_v10  ;;  %v1220_v49 = vpop.xlane.xlu0 %1219  ;;  %v8727_v10 = vsub.f32 %v8682_v33, %v1228_v52 }
 0x700   :  { %7780 = vmatprep.mubr.msk.f32.mxu0 %vm841_vm1, %v1942_v5  ;;  %v2077_v7 = vmul.f32 %v7994_v8, %v7978_v40  ;;  %v1229_v15 = vmul.f32 0.03125, %v1220_v49  ;;  %v8743_v63 = vsub.f32 %v8687_v36, %v1230_v29  ;;  %v1268_v29 = vlaneseq }
 0x701   :  { %v7996_v12 = vpop.eup %7995  ;;  %7781 = vmatmul.mubr.msk.f32.vlgmr.msra.gmra.mxu0 %vm841_vm1, %v1944_v9  ;;  %v1226_v2 = vpop.xlane.xlu1 %1225 }
 0x702   :  { %7770 = vmatprep.mubr.msk.f32.mxu1 %vm841_vm1, %v2077_v7  ;;  %v1946_v27 = vmul.f32 %v7996_v12, %v7980_v28  ;;  %v1231_v4 = vmul.f32 0.03125, %v1226_v2  ;;  %v1238_v6 = vmul.f32 %v8743_v63, %v8743_v63 }
 0x703   :  { %v7998_v11 = vpop.eup %7997  ;;  %7771 = vmatmul.mubr.msk.f32.vlgmr.msra.gmra.mxu1 %vm841_vm1, %v2079_v13  ;;  %v1756_v55 = vpop.xlane.xlu0 %1755 }
 0x704   :  { %7783 = vmatprep.mubr.msk.f32.mxu0 %vm841_vm1, %v1946_v27  ;;  %v2081_v53 = vmul.f32 %v7998_v11, %v7982_v31  ;;  %v8734_v31 = vsub.f32 %v8560_v62, %v1229_v15  ;;  %v1766_v30 = vmul.f32 0.03125, %v1756_v55  ;;  %v8756_v36 = vsub.f32 %v8568_v21, %v1231_v4  ;;  %v2340_v27 = vld [vmem:[%s10151_s5 + $0x10] sm:$0xff]  ;;  %v2339_v11 = vld [vmem:[%s10151_s5 + $0x8] sm:$0xff] }
 0x705   :  { %v8000_v14 = vpop.eup %7999  ;;  %v1762_v39 = vpop.xlane.xlu1 %1761  ;;  %v1246_v19 = vsel %vm64_vm0, %v1238_v6, 0.0  ;;  %v8823_v4 = vshrl.u32 %v1268_v29, 7 }
 0x706   :  { %7773 = vmatprep.mubr.msk.f32.mxu1 %vm841_vm1, %v2081_v53  ;;  %v1948_v54 = vmul.f32 %v8000_v14, %v7984_v32  ;;  %v8750_v57 = vsub.f32 %v8696_v48, %v1766_v30  ;;  %v1237_v24 = vmul.f32 %v8734_v31, %v8734_v31  ;;  %v1768_v43 = vmul.f32 0.03125, %v1762_v39  ;;  %v2338_v53 = vld [vmem:[%s10151_s5] sm:$0xff] }
 0x707   :  { %v8002_v16 = vpop.eup %8001  ;;  %v1759_v37 = vpop.xlane.xlu0 %1758  ;;  %v1239_v60 = vmul.f32 %v8756_v36, %v8756_v36  ;;  %10178 = vst [vmem:[#allocation5_spill] sm:$0xff] %v8823_v4  ;;  %v8827_v6 = vsub.s32 0, %v8823_v4 }
 0x708   :  { %7784 = vmatmul.mubr.msk.f32.gmra.mxu0 %vm841_vm1, %v1948_v54  ;;  %v2083_v17 = vmul.f32 %v8002_v16, %v7986_v35  ;;  %v1236_v35 = vmul.f32 %v8727_v10, %v8727_v10  ;;  %v1767_v0 = vmul.f32 0.03125, %v1759_v37  ;;  %v1243_v51 = vsel %vm64_vm0, %v1237_v24, 0.0 }
 0x709   :  { %v1765_v50 = vpop.xlane.xlu1 %1764  ;;  %v1774_v58 = vmul.f32 %v8750_v57, %v8750_v57  ;;  %v8769_v21 = vsub.f32 %v8702_v20, %v1768_v43  ;;  %v1249_v8 = vsel %vm64_vm0, %v1239_v60, 0.0  ;;  %v8835_v60 = vsub.s32 1, %v8823_v4 }
 0x70a   :  { %7774 = vmatmul.mubr.msk.f32.gmra.mxu1 %vm841_vm1, %v2083_v17  ;;  %v1240_v41 = vsel %vm64_vm0, %v1236_v35, 0.0  ;;  %v8763_v48 = vsub.f32 %v8640_v42, %v1767_v0  ;;  %v1769_v59 = vmul.f32 0.03125, %v1765_v50 }
 0x70b   :  { %v1778_v42 = vsel %vm64_vm0, %v1774_v58, 0.0  ;;  %v1776_v20 = vmul.f32 %v8769_v21, %v8769_v21 }
 0x70c   :  { %v1775_v61 = vmul.f32 %v8763_v48, %v8763_v48  ;;  %v8778_v5 = vsub.f32 %v8648_v46, %v1769_v59  ;;  %v2341_v46 = vld [vmem:[%s10151_s5 + $0x18] sm:$0xff] }
 0x70d   :  { %v1784_v7 = vsel %vm64_vm0, %v1776_v20, 0.0  ;;  %7786 = vmatprep.subr.mxu1 %v2341_v46  ;;  %7803 = vmatprep.subr.mxu0 %v2341_v46 }
 0x70e   :  { %v1781_v9 = vsel %vm64_vm0, %v1775_v61, 0.0  ;;  %v1777_v12 = vmul.f32 %v8778_v5, %v8778_v5  ;;  %7787 = vmatpush3.msra.mxu1 %v2341_v46  ;;  %7804 = vmatpush3.msra.mxu0 %v2341_v46 }
 0x70f   :  { %7788 = vmatprep.subr.mxu1 %v2340_v27  ;;  %7805 = vmatprep.subr.mxu0 %v2340_v27 }
 0x710   :  { %v1787_v13 = vsel %vm64_vm0, %v1777_v12, 0.0  ;;  %7789 = vmatpush3.msra.mxu1 %v2340_v27  ;;  %7806 = vmatpush3.msra.mxu0 %v2340_v27 }
 0x711   :  { %7790 = vmatprep.subr.mxu1 %v2339_v11  ;;  %7807 = vmatprep.subr.mxu0 %v2339_v11 }
 0x712   :  { %7791 = vmatpush3.msra.mxu1 %v2339_v11  ;;  %7808 = vmatpush3.msra.mxu0 %v2339_v11 }
 0x713   :  { %7792 = vmatprep.subr.mxu1 %v2338_v53  ;;  %7809 = vmatprep.subr.mxu0 %v2338_v53 }
 0x714   :  { %7793 = vmatpush3.msra.mxu1 %v2338_v53  ;;  %7810 = vmatpush3.msra.mxu0 %v2338_v53 }
 0x7c1   :  { %v7782_v1 = vpop.f32.mrf.mxu0 }
 0x7c3   :  { %v7772_v22 = vpop.f32.mrf.mxu1  ;;  %v2259_v23 = vpop.f32.mrf.mxu0 }
 0x7c4   :  { %v8729_v25 = vadd.f32 %v7782_v1, %v7772_v22 }
 0x7c5   :  { %v2162_v56 = vpop.f32.mrf.mxu1 }
 0x7c6   :  { %v8724_v44 = vadd.f32 %v2259_v23, %v2162_v56  ;;  %v2281_v33 = vsel %vm64_vm0, %v8729_v25, 0.0 }
 0x7c8   :  { %v7785_v40 = vpop.f32.mrf.mxu0  ;;  %v2278_v26 = vsel %vm64_vm0, %v8724_v44, 0.0 }
 0x7c9   :  { %2279 = vadd.xlane.f32.xlu0 %v2278_v26 }
 0x7ca   :  { %v7775_v28 = vpop.f32.mrf.mxu1  ;;  %v2269_v32 = vpop.f32.mrf.mxu0 }
 0x7cb   :  { %v8745_v62 = vadd.f32 %v7785_v40, %v7775_v28 }
 0x7cc   :  { %v2172_v34 = vpop.f32.mrf.mxu1 }
 0x7cd   :  { %v8740_v38 = vadd.f32 %v2269_v32, %v2172_v34  ;;  %2282 = vadd.xlane.f32.xlu0 %v2281_v33  ;;  %v2287_v45 = vsel %vm64_vm0, %v8745_v62, 0.0 }
 0x7cf   :  { %v2284_v3 = vsel %vm64_vm0, %v8740_v38, 0.0 }
 0x7d0   :  { %2285 = vadd.xlane.f32.xlu1 %v2284_v3 }
 0x7d1   :  { %1241 = vadd.xlane.f32.xlu0 %v1240_v41 }
 0x7d4   :  { %2288 = vadd.xlane.f32.xlu1 %v2287_v45 }
 0x7d5   :  { %1244 = vadd.xlane.f32.xlu0 %v1243_v51  ;;  %v8832_v51 = vld [vmem:[%s10161_s15] sm:$0xff] }
 0x7d6   :  { %v8839_v61 = vrot.slane %v8832_v51, %v8827_v6  ;;  %v8844_v12 = vrot.slane %v8832_v51, %v8835_v60 }
 0x7d8   :  { %1247 = vadd.xlane.f32.xlu1 %v1246_v19 }
 0x7d9   :  { %1779 = vadd.xlane.f32.xlu0 %v1778_v42 }
 0x7dc   :  { %1250 = vadd.xlane.f32.xlu1 %v1249_v8 }
 0x7dd   :  { %1782 = vadd.xlane.f32.xlu0 %v1781_v9 }
 0x7e0   :  { %1785 = vadd.xlane.f32.xlu1 %v1784_v7 }
 0x7e4   :  { %1788 = vadd.xlane.f32.xlu1 %v1787_v13 }
 0x852   :  { %v2280_v14 = vpop.xlane.xlu0 %2279 }
 0x853   :  { %v2290_v54 = vmul.f32 0.03125, %v2280_v14 }
 0x855   :  { %v8801_v16 = vsub.f32 %v8724_v44, %v2290_v54 }
 0x856   :  { %v2283_v17 = vpop.xlane.xlu0 %2282 }
 0x857   :  { %v2291_v47 = vmul.f32 0.03125, %v2283_v17  ;;  %v2298_v49 = vmul.f32 %v8801_v16, %v8801_v16 }
 0x859   :  { %v8806_v1 = vsub.f32 %v8729_v25, %v2291_v47  ;;  %v2286_v18 = vpop.xlane.xlu1 %2285  ;;  %v2302_v22 = vsel %vm64_vm0, %v2298_v49, 0.0 }
 0x85a   :  { %v2292_v52 = vmul.f32 0.03125, %v2286_v18  ;;  %2303 = vadd.xlane.f32.xlu0 %v2302_v22  ;;  %v1242_v23 = vpop.xlane.xlu0 %1241 }
 0x85b   :  { %v1252_v56 = vmul.f32 0.03125, %v1242_v23  ;;  %v2299_v55 = vmul.f32 %v8806_v1, %v8806_v1 }
 0x85c   :  { %v8812_v44 = vsub.f32 %v8740_v38, %v2292_v52 }
 0x85d   :  { %v1256_v15 = vadd.f32 1e-06, %v1252_v56  ;;  %v2289_v2 = vpop.xlane.xlu1 %2288  ;;  %v2305_v40 = vsel %vm64_vm0, %v2299_v55, 0.0 }
 0x85e   :  { %v2293_v26 = vmul.f32 0.03125, %v2289_v2  ;;  %2306 = vadd.xlane.f32.xlu0 %v2305_v40  ;;  %v1245_v25 = vpop.xlane.xlu0 %1244  ;;  %v2300_v28 = vmul.f32 %v8812_v44, %v8812_v44 }
 0x85f   :  { %8003 = vrsqrt.f32 %v1256_v15  ;;  %v1253_v30 = vmul.f32 0.03125, %v1245_v25  ;;  %v2570_v25 = vld [vmem:[%s10152_s6 + $0x10] sm:$0xff] }
 0x860   :  { %v8818_v32 = vsub.f32 %v8745_v62, %v2293_v26  ;;  %v2308_v34 = vsel %vm64_vm0, %v2300_v28, 0.0 }
 0x861   :  { %v1257_v33 = vadd.f32 1e-06, %v1253_v30  ;;  %2309 = vadd.xlane.f32.xlu1 %v2308_v34  ;;  %v1248_v35 = vpop.xlane.xlu1 %1247 }
 0x862   :  { %v1254_v37 = vmul.f32 0.03125, %v1248_v35  ;;  %v1780_v38 = vpop.xlane.xlu0 %1779  ;;  %v2301_v39 = vmul.f32 %v8818_v32, %v8818_v32  ;;  %v2568_v35 = vld [vmem:[%s10152_s6] sm:$0xff] }
 0x863   :  { %8005 = vrsqrt.f32 %v1257_v33  ;;  %v1790_v3 = vmul.f32 0.03125, %v1780_v38  ;;  %v2569_v33 = vld [vmem:[%s10152_s6 + $0x8] sm:$0xff] }
 0x864   :  { %v1258_v0 = vadd.f32 1e-06, %v1254_v37  ;;  %v2311_v41 = vsel %vm64_vm0, %v2301_v39, 0.0  ;;  %v6042_v39 = vld [vmem:[%s10152_s6 + $0x30] sm:$0xff] }
 0x865   :  { %v1794_v24 = vadd.f32 1e-06, %v1790_v3  ;;  %2312 = vadd.xlane.f32.xlu1 %v2311_v41  ;;  %v1251_v62 = vpop.xlane.xlu1 %1250  ;;  %v6041_v3 = vld [vmem:[%s10152_s6 + $0x28] sm:$0xff] }
 0x866   :  { %8007 = vrsqrt.f32 %v1258_v0  ;;  %v1255_v43 = vmul.f32 0.03125, %v1251_v62  ;;  %v1783_v45 = vpop.xlane.xlu0 %1782  ;;  %v6040_v0 = vld [vmem:[%s10152_s6 + $0x20] sm:$0xff] }
 0x867   :  { %8009 = vrsqrt.f32 %v1794_v24  ;;  %v1791_v50 = vmul.f32 0.03125, %v1783_v45 }
 0x868   :  { %v1259_v58 = vadd.f32 1e-06, %v1255_v43 }
 0x869   :  { %v1795_v59 = vadd.f32 1e-06, %v1791_v50  ;;  %v1786_v19 = vpop.xlane.xlu1 %1785 }
 0x86a   :  { %8011 = vrsqrt.f32 %v1259_v58  ;;  %v1792_v42 = vmul.f32 0.03125, %v1786_v19 }
 0x86b   :  { %8013 = vrsqrt.f32 %v1795_v59 }
 0x86c   :  { %v8004_v8 = vpop.eup %8003  ;;  %v1796_v20 = vadd.f32 1e-06, %v1792_v42 }
 0x86d   :  { %v1789_v9 = vpop.xlane.xlu1 %1788  ;;  %v1264_v7 = vmul.f32 %v8004_v8, %v8727_v10 }
 0x86e   :  { %8015 = vrsqrt.f32 %v1796_v20  ;;  %v1793_v13 = vmul.f32 0.03125, %v1789_v9 }
 0x86f   :  { %v1272_v46 = vmul.f32 %v8839_v61, %v1264_v7 }
 0x870   :  { %v8006_v27 = vpop.eup %8005  ;;  %v1797_v11 = vadd.f32 1e-06, %v1793_v13 }
 0x871   :  { %v1265_v53 = vmul.f32 %v8006_v27, %v8734_v31  ;;  %v8849_v14 = vadd.f32 %v8844_v12, %v1272_v46 }
 0x872   :  { %8017 = vrsqrt.f32 %v1797_v11 }
 0x873   :  { %v8008_v54 = vpop.eup %8007  ;;  %v1273_v17 = vmul.f32 %v8839_v61, %v1265_v53  ;;  %7794 = vmatprep.mubr.msk.f32.mxu1 %vm64_vm0, %v8849_v14 }
 0x874   :  { %v8010_v10 = vpop.eup %8009  ;;  %v1266_v47 = vmul.f32 %v8008_v54, %v8743_v63 }
 0x875   :  { %v8856_v49 = vadd.f32 %v8844_v12, %v1273_v17  ;;  %v1802_v18 = vmul.f32 %v8010_v10, %v8750_v57 }
 0x876   :  { %v1274_v31 = vmul.f32 %v8839_v61, %v1266_v47 }
 0x877   :  { %v8012_v22 = vpop.eup %8011  ;;  %7795 = vmatmul.mubr.msk.f32.vlgmr.msra.gmra.mxu1 %vm64_vm0, %v8856_v49  ;;  %v1806_v52 = vmul.f32 %v1802_v18, %v8839_v61 }
 0x878   :  { %v8014_v23 = vpop.eup %8013  ;;  %v1267_v56 = vmul.f32 %v8012_v22, %v8756_v36  ;;  %v8865_v55 = vadd.f32 %v8844_v12, %v1274_v31 }
 0x879   :  { %v8868_v63 = vadd.f32 %v1806_v52, %v8844_v12  ;;  %v1803_v15 = vmul.f32 %v8014_v23, %v8763_v48  ;;  %v2571_v48 = vld [vmem:[%s10152_s6 + $0x18] sm:$0xff] }
 0x87a   :  { %v1275_v57 = vmul.f32 %v8839_v61, %v1267_v56  ;;  %7811 = vmatprep.mubr.msk.f32.mxu0 %vm64_vm0, %v8865_v55  ;;  %7820 = vmatprep.subr.mxu1 %v2571_v48 }
 0x87b   :  { %v8016_v2 = vpop.eup %8015  ;;  %7797 = vmatprep.mubr.msk.f32.mxu1 %vm64_vm0, %v8868_v63  ;;  %v1807_v40 = vmul.f32 %v1803_v15, %v8839_v61  ;;  %7821 = vmatpush3.msra.mxu1 %v2571_v48 }
 0x87c   :  { %v8878_v36 = vadd.f32 %v8844_v12, %v1275_v57  ;;  %v1804_v26 = vmul.f32 %v8016_v2, %v8769_v21  ;;  %7822 = vmatprep.subr.mxu1 %v2570_v25 }
 0x87d   :  { %v8888_v28 = vadd.f32 %v1807_v40, %v8844_v12  ;;  %7823 = vmatpush3.msra.mxu1 %v2570_v25 }
 0x87e   :  { %7812 = vmatmul.mubr.msk.f32.vlgmr.msra.gmra.mxu0 %vm64_vm0, %v8878_v36  ;;  %v1808_v29 = vmul.f32 %v1804_v26, %v8839_v61  ;;  %7824 = vmatprep.subr.mxu1 %v2569_v33 }
 0x87f   :  { %v8018_v30 = vpop.eup %8017  ;;  %7798 = vmatmul.mubr.msk.f32.gmra.mxu1 %vm64_vm0, %v8888_v28 }
 0x880   :  { %v8896_v21 = vadd.f32 %v1808_v29, %v8844_v12  ;;  %v1805_v34 = vmul.f32 %v8018_v30, %v8778_v5  ;;  %7825 = vmatpush3.msra.mxu1 %v2569_v33  ;;  %v6043_v5 = vld [vmem:[%s10152_s6 + $0x38] sm:$0xff] }
 0x881   :  { %7826 = vmatprep.subr.mxu1 %v2568_v35  ;;  %7837 = vmatprep.subr.mxu0 %v6043_v5 }
 0x882   :  { %7814 = vmatprep.mubr.msk.f32.mxu0 %vm64_vm0, %v8896_v21  ;;  %v1809_v37 = vmul.f32 %v1805_v34, %v8839_v61  ;;  %7827 = vmatpush3.msra.mxu1 %v2568_v35 }
 0x883   :  { %7838 = vmatpush3.msra.mxu0 %v6043_v5 }
 0x884   :  { %v1813_v38 = vadd.f32 %v1809_v37, %v8844_v12  ;;  %7839 = vmatprep.subr.mxu0 %v6042_v39 }
 0x885   :  { %7840 = vmatpush3.msra.mxu0 %v6042_v39 }
 0x886   :  { %7815 = vmatmul.mubr.msk.f32.gmra.mxu0 %vm64_vm0, %v1813_v38  ;;  %7841 = vmatprep.subr.mxu0 %v6041_v3 }
 0x887   :  { %7842 = vmatpush3.msra.mxu0 %v6041_v3 }
 0x888   :  { %7843 = vmatprep.subr.mxu0 %v6040_v0 }
 0x889   :  { %7844 = vmatpush3.msra.mxu0 %v6040_v0 }
 0x8e3   :  { %v2304_v41 = vpop.xlane.xlu0 %2303 }
 0x8e4   :  { %v2314_v24 = vmul.f32 0.03125, %v2304_v41 }
 0x8e6   :  { %v2318_v62 = vadd.f32 1e-06, %v2314_v24 }
 0x8e7   :  { %v2307_v43 = vpop.xlane.xlu0 %2306 }
 0x8e8   :  { %8019 = vrsqrt.f32 %v2318_v62  ;;  %v2315_v45 = vmul.f32 0.03125, %v2307_v43 }
 0x8ea   :  { %v2319_v50 = vadd.f32 1e-06, %v2315_v45  ;;  %v2310_v58 = vpop.xlane.xlu1 %2309 }
 0x8eb   :  { %v2316_v59 = vmul.f32 0.03125, %v2310_v58 }
 0x8ec   :  { %8021 = vrsqrt.f32 %v2319_v50 }
 0x8ed   :  { %v2320_v19 = vadd.f32 1e-06, %v2316_v59 }
 0x8ee   :  { %v2313_v42 = vpop.xlane.xlu1 %2312 }
 0x8ef   :  { %8023 = vrsqrt.f32 %v2320_v19  ;;  %v2317_v8 = vmul.f32 0.03125, %v2313_v42 }
 0x8f1   :  { %v2321_v20 = vadd.f32 1e-06, %v2317_v8 }
 0x8f3   :  { %8025 = vrsqrt.f32 %v2321_v20 }
 0x8f5   :  { %v8020_v9 = vpop.eup %8019 }
 0x8f6   :  { %v2326_v7 = vmul.f32 %v8020_v9, %v8801_v16 }
 0x8f8   :  { %v2330_v13 = vmul.f32 %v2326_v7, %v8839_v61 }
 0x8f9   :  { %v8022_v46 = vpop.eup %8021 }
 0x8fa   :  { %v2334_v27 = vadd.f32 %v2330_v13, %v8844_v12  ;;  %v2327_v11 = vmul.f32 %v8022_v46, %v8806_v1 }
 0x8fc   :  { %v8024_v53 = vpop.eup %8023  ;;  %7800 = vmatprep.mubr.msk.f32.mxu1 %vm64_vm0, %v2334_v27  ;;  %v2331_v54 = vmul.f32 %v2327_v11, %v8839_v61 }
 0x8fd   :  { %v2328_v17 = vmul.f32 %v8024_v53, %v8812_v44 }
 0x8fe   :  { %v2335_v10 = vadd.f32 %v2331_v54, %v8844_v12 }
 0x8ff   :  { %v2332_v47 = vmul.f32 %v2328_v17, %v8839_v61 }
 0x900   :  { %v8026_v18 = vpop.eup %8025  ;;  %7801 = vmatmul.mubr.msk.f32.gmra.mxu1 %vm64_vm0, %v2335_v10 }
 0x901   :  { %7828 = vmatprep.mubr.msk.f32.mxu1 %vm64_vm0, %v8849_v14  ;;  %v2336_v16 = vadd.f32 %v2332_v47, %v8844_v12  ;;  %v2329_v1 = vmul.f32 %v8026_v18, %v8818_v32  ;;  %v8122_v32 = vmov 0  }
 0x902   :  { %7906 = vset.pattern.permute.xlu1 %v8122_v32  ;;  %7905 = vset.pattern.permute.xlu0 %v8122_v32 }
 0x903   :  { %7817 = vmatprep.mubr.msk.f32.mxu0 %vm64_vm0, %v2336_v16  ;;  %v2333_v31 = vmul.f32 %v2329_v1, %v8839_v61 }
 0x904   :  { %7829 = vmatmul.mubr.msk.f32.vlgmr.msra.gmra.mxu1 %vm64_vm0, %v8856_v49 }
 0x905   :  { %7831 = vmatprep.mubr.msk.f32.mxu1 %vm64_vm0, %v8868_v63  ;;  %v2337_v44 = vadd.f32 %v2333_v31, %v8844_v12 }
 0x907   :  { %7818 = vmatmul.mubr.msk.f32.gmra.mxu0 %vm64_vm0, %v2337_v44 }
 0x908   :  { %7832 = vmatmul.mubr.msk.f32.gmra.mxu1 %vm64_vm0, %v8888_v28  ;;  %7845 = vmatprep.mubr.msk.f32.mxu0 %vm64_vm0, %v8865_v55 }
 0x909   :  { %7834 = vmatprep.mubr.msk.f32.mxu1 %vm64_vm0, %v2334_v27 }
 0x90b   :  { %7846 = vmatmul.mubr.msk.f32.vlgmr.msra.gmra.mxu0 %vm64_vm0, %v8878_v36 }
 0x90c   :  { %7835 = vmatmul.mubr.msk.f32.gmra.mxu1 %vm64_vm0, %v2335_v10  ;;  %7848 = vmatprep.mubr.msk.f32.mxu0 %vm64_vm0, %v8896_v21 }
 0x90f   :  { %7849 = vmatmul.mubr.msk.f32.gmra.mxu0 %vm64_vm0, %v1813_v38 }
 0x910   :  { %7851 = vmatprep.mubr.msk.f32.mxu0 %vm64_vm0, %v2336_v16 }
 0x913   :  { %7852 = vmatmul.mubr.msk.f32.gmra.mxu0 %vm64_vm0, %v2337_v44 }
 0x937   :  { %v8957_v61 = vpop.f32.mrf.mxu1 }
 0x939   :  { %v8959_v12 = vpop.f32.mrf.mxu1 }
 0x93e   :  { %v8963_v49 = vpop.f32.mrf.mxu0 }
 0x93f   :  { %v8961_v14 = vpop.f32.mrf.mxu1 }
 0x940   :  { %v8967_v52 = vpop.f32.mrf.mxu0 }
 0x941   :  { %v8965_v22 = vpop.f32.mrf.mxu1 }
 0x946   :  { %v8971_v56 = vpop.f32.mrf.mxu0 }
 0x948   :  { %v8975_v15 = vpop.f32.mrf.mxu0 }
 0x9c0   :  { %v8969_v23 = vpop.f32.mrf.mxu1 }
 0x9c2   :  { %v8973_v55 = vpop.f32.mrf.mxu1 }
 0x9c4   :  { %v7830_v63 = vpop.f32.mrf.mxu1 }
 0x9c6   :  { %v2638_v57 = vpop.f32.mrf.mxu1 }
 0x9c7   :  { %v8977_v2 = vpop.f32.mrf.mxu0 }
 0x9c8   :  { %v7833_v36 = vpop.f32.mrf.mxu1 }
 0x9c9   :  { %v8979_v40 = vpop.f32.mrf.mxu0 }
 0x9ca   :  { %v2648_v28 = vpop.f32.mrf.mxu1 }
 0x9cb   :  { %v7847_v26 = vpop.f32.mrf.mxu0 }
 0x9cc   :  { %v2768_v48 = vmax.f32 %v7830_v63, %v7847_v26  ;;  %v7836_v3 = vpop.f32.mrf.mxu1 }
 0x9cd   :  { %v2738_v25 = vpop.f32.mrf.mxu0 }
 0x9ce   :  { %v2774_v29 = vsub.f32 %v7830_v63, %v2768_v48  ;;  %v2792_v30 = vsub.f32 %v7847_v26, %v2768_v48  ;;  %v2767_v21 = vmax.f32 %v2638_v57, %v2738_v25  ;;  %v2658_v20 = vpop.f32.mrf.mxu1 }
 0x9cf   :  { %v7850_v34 = vpop.f32.mrf.mxu0 }
 0x9d0   :  { %v2781_v33 = vmul.f32 1.442695, %v2774_v29  ;;  %v2799_v35 = vmul.f32 1.442695, %v2792_v30  ;;  %v2773_v37 = vsub.f32 %v2638_v57, %v2767_v21  ;;  %v2791_v5 = vsub.f32 %v2738_v25, %v2767_v21 }
 0x9d1   :  { %v2770_v38 = vmax.f32 %v7833_v36, %v7850_v34  ;;  %v2748_v39 = vpop.f32.mrf.mxu0 }
 0x9d2   :  { %8027 = vpow2.f32 %v2781_v33  ;;  %v2779_v0 = vmul.f32 1.442695, %v2773_v37  ;;  %v2797_v41 = vmul.f32 1.442695, %v2791_v5  ;;  %v2769_v24 = vmax.f32 %v2648_v28, %v2748_v39 }
 0x9d3   :  { %8029 = vpow2.f32 %v2799_v35  ;;  %v2776_v62 = vsub.f32 %v7833_v36, %v2770_v38  ;;  %v2794_v43 = vsub.f32 %v7850_v34, %v2770_v38  ;;  %v7853_v45 = vpop.f32.mrf.mxu0 }
 0x9d4   :  { %8031 = vpow2.f32 %v2779_v0  ;;  %v2775_v50 = vsub.f32 %v2648_v28, %v2769_v24  ;;  %v2793_v58 = vsub.f32 %v2748_v39, %v2769_v24  ;;  %v2772_v59 = vmax.f32 %v7836_v3, %v7853_v45 }
 0x9d5   :  { %8033 = vpow2.f32 %v2797_v41  ;;  %v2785_v19 = vmul.f32 1.442695, %v2776_v62  ;;  %v2803_v42 = vmul.f32 1.442695, %v2794_v43  ;;  %v2758_v8 = vpop.f32.mrf.mxu0 }
 0x9d6   :  { %v2783_v9 = vmul.f32 1.442695, %v2775_v50  ;;  %v2801_v7 = vmul.f32 1.442695, %v2793_v58  ;;  %v2778_v13 = vsub.f32 %v7836_v3, %v2772_v59  ;;  %v2796_v46 = vsub.f32 %v7853_v45, %v2772_v59 }
 0x9d7   :  { %8035 = vpow2.f32 %v2785_v19  ;;  %v2771_v27 = vmax.f32 %v2658_v20, %v2758_v8 }
 0x9d8   :  { %8037 = vpow2.f32 %v2803_v42  ;;  %v2789_v11 = vmul.f32 1.442695, %v2778_v13  ;;  %v2807_v53 = vmul.f32 1.442695, %v2796_v46 }
 0x9d9   :  { %8039 = vpow2.f32 %v2783_v9  ;;  %v2777_v54 = vsub.f32 %v2658_v20, %v2771_v27  ;;  %v2795_v17 = vsub.f32 %v2758_v8, %v2771_v27 }
 0x9da   :  { %8041 = vpow2.f32 %v2801_v7 }
 0x9db   :  { %8043 = vpow2.f32 %v2789_v11  ;;  %v2787_v10 = vmul.f32 1.442695, %v2777_v54  ;;  %v2805_v47 = vmul.f32 1.442695, %v2795_v17 }
 0x9dc   :  { %8045 = vpow2.f32 %v2807_v53 }
 0x9dd   :  { %8047 = vpow2.f32 %v2787_v10 }
 0x9de   :  { %8049 = vpow2.f32 %v2805_v47 }
 0x9df   :  { %v8028_v18 = vpop.eup %8027 }
 0x9e0   :  { %v8030_v16 = vpop.eup %8029 }
 0x9e1   :  { %v8032_v1 = vpop.eup %8031  ;;  %v2810_v31 = vadd.f32 %v8030_v16, %v8028_v18 }
 0x9e2   :  { %v8034_v44 = vpop.eup %8033 }
 0x9e3   :  { %8051 = vrcp.f32 %v2810_v31  ;;  %v2809_v32 = vadd.f32 %v8034_v44, %v8032_v1 }
 0x9e4   :  { %v8036_v63 = vpop.eup %8035 }
 0x9e5   :  { %v8038_v57 = vpop.eup %8037  ;;  %8053 = vrcp.f32 %v2809_v32 }
 0x9e6   :  { %v8040_v36 = vpop.eup %8039  ;;  %v2812_v28 = vadd.f32 %v8038_v57, %v8036_v63 }
 0x9e7   :  { %v8042_v26 = vpop.eup %8041 }
 0x9e8   :  { %v8044_v48 = vpop.eup %8043  ;;  %8055 = vrcp.f32 %v2812_v28  ;;  %v2811_v33 = vadd.f32 %v8042_v26, %v8040_v36 }
 0x9e9   :  { %v8046_v25 = vpop.eup %8045 }
 0x9ea   :  { %v8048_v29 = vpop.eup %8047  ;;  %v2814_v21 = vadd.f32 %v8046_v25, %v8044_v48 }
 0x9eb   :  { %v8050_v30 = vpop.eup %8049 }
 0x9ec   :  { %v2813_v34 = vadd.f32 %v8050_v30, %v8048_v29 }
 0x9ee   :  { %8057 = vrcp.f32 %v2813_v34 }
 0x9ef   :  { %8059 = vrcp.f32 %v2814_v21 }
 0x9f0   :  { %v8052_v35 = vpop.eup %8051  ;;  %8061 = vrcp.f32 %v2811_v33 }
 0x9f1   :  { %v2828_v37 = vmul.f32 %v8052_v35, %v8028_v18  ;;  %v2870_v39 = vmul.f32 %v8052_v35, %v8030_v16 }
 0x9f2   :  { %v8054_v5 = vpop.eup %8053 }
 0x9f3   :  { %2840 = vperm.xlu1 %7906, %v2828_v37   ;;  %v2827_v38 = vmul.f32 %v8054_v5, %v8032_v1  ;;  %v2869_v3 = vmul.f32 %v8054_v5, %v8034_v44 }
 0x9f5   :  { %2835 = vperm.xlu0 %7905, %v2827_v38   ;;  %v8056_v0 = vpop.eup %8055 }
 0x9f6   :  { %v2830_v43 = vmul.f32 %v8056_v0, %v8036_v63  ;;  %v2872_v19 = vmul.f32 %v8056_v0, %v8038_v57 }
 0x9f7   :  { %2882 = vperm.xlu1 %7906, %v2870_v39  }
 0x9fb   :  { %v8058_v41 = vpop.eup %8057  ;;  %2877 = vperm.xlu1 %7906, %v2869_v3  }
 0x9fc   :  { %v2873_v24 = vmul.f32 %v8058_v41, %v8050_v30  ;;  %v8060_v62 = vpop.eup %8059  ;;  %v2831_v42 = vmul.f32 %v8058_v41, %v8048_v29 }
 0x9fd   :  { %v8062_v45 = vpop.eup %8061  ;;  %v2874_v50 = vmul.f32 %v8060_v62, %v8046_v25  ;;  %v2832_v8 = vmul.f32 %v8060_v62, %v8044_v48 }
 0x9fe   :  { %2897 = vperm.xlu0 %7905, %v2873_v24   ;;  %v2829_v58 = vmul.f32 %v8062_v45, %v8040_v36  ;;  %v2871_v59 = vmul.f32 %v8062_v45, %v8042_v26 }
 0x9ff   :  { %2850 = vperm.xlu1 %7906, %v2830_v43  }
 0xa02   :  { %2902 = vperm.xlu0 %7905, %v2874_v50  }
 0xa03   :  { %2845 = vperm.xlu1 %7906, %v2829_v58  }
 0xa07   :  { %2887 = vperm.xlu1 %7906, %v2871_v59  }
 0xa0b   :  { %2892 = vperm.xlu1 %7906, %v2872_v19  }
 0xa0f   :  { %2855 = vperm.xlu1 %7906, %v2831_v42  }
 0xa13   :  { %2860 = vperm.xlu1 %7906, %v2832_v8  }
 0xa6e   :  { %v2841_v20 = vpop.permute.xlu1 %2840 }
 0xa6f   :  { %v2864_v7 = vmul.f32 %v8957_v61, %v2841_v20 }
 0xa70   :  { %v2836_v46 = vpop.permute.xlu0 %2835 }
 0xa71   :  { %v2863_v53 = vmul.f32 %v2836_v46, %v8959_v12 }
 0xa72   :  { %v2883_v9 = vpop.permute.xlu1 %2882 }
 0xa73   :  { %v2906_v13 = vmul.f32 %v8963_v49, %v2883_v9 }
 0xa75   :  { %v2912_v27 = vadd.f32 %v2906_v13, %v2864_v7 }
 0xa76   :  { %v2878_v11 = vpop.permute.xlu1 %2877 }
 0xa77   :  { %v2905_v54 = vmul.f32 %v2878_v11, %v8967_v52  ;;  %v2920_v17 = vsel %vm64_vm0, %v2912_v27, 0.0  ;;  %v3021_v11 = vld [vmem:[%s10153_s7 + $0x30] sm:$0xff] }
 0xa78   :  { %2921 = vadd.xlane.f32.xlu0 %v2920_v17 }
 0xa79   :  { %v2911_v10 = vadd.f32 %v2905_v54, %v2863_v53  ;;  %v2898_v44 = vpop.permute.xlu0 %2897  ;;  %v3022_v53 = vld [vmem:[%s10153_s7 + $0x38] sm:$0xff]  ;;  %v3036_v54 = vunpack.c.h.bf16 %v3021_v11 }
 0xa7a   :  { %v2851_v47 = vpop.permute.xlu1 %2850  ;;  %v2909_v26 = vmul.f32 %v2898_v44, %v8979_v40  ;;  %v3038_v17 = vunpack.c.h.bf16 %v3022_v53  ;;  %v3017_v44 = vld [vmem:[%s10153_s7 + $0x10] sm:$0xff] }
 0xa7b   :  { %v2917_v18 = vsel %vm64_vm0, %v2911_v10, 0.0  ;;  %v2866_v12 = vmul.f32 %v8961_v14, %v2851_v47  ;;  %v3037_v47 = vunpack.c.l.bf16 %v3022_v53  ;;  %3103 = vmatprep.subr.mxu1 %v3036_v54 }
 0xa7c   :  { %2918 = vadd.xlane.f32.xlu1 %v2917_v18  ;;  %v3019_v18 = vld [vmem:[%s10153_s7 + $0x20] sm:$0xff]  ;;  %3204 = vmatprep.subr.mxu0 %v3038_v17 }
 0xa7d   :  { %v2903_v25 = vpop.permute.xlu0 %2902  ;;  %3205 = vmatpush1.msra.mxu0 %v3037_v47 }
 0xa7e   :  { %v2846_v16 = vpop.permute.xlu1 %2845  ;;  %v2910_v29 = vmul.f32 %v8977_v2, %v2903_v25 }
 0xa7f   :  { %v2865_v61 = vmul.f32 %v2846_v16, %v8965_v22  ;;  %v3020_v16 = vld [vmem:[%s10153_s7 + $0x28] sm:$0xff] }
 0xa82   :  { %v2888_v1 = vpop.permute.xlu1 %2887 }
 0xa83   :  { %v2907_v49 = vmul.f32 %v2888_v1, %v8975_v15  ;;  %v3032_v1 = vunpack.c.h.bf16 %v3019_v18 }
 0xa85   :  { %v2913_v31 = vadd.f32 %v2907_v49, %v2865_v61  ;;  %v3034_v61 = vunpack.c.h.bf16 %v3020_v16  ;;  %v3031_v49 = vunpack.c.l.bf16 %v3019_v18  ;;  %v6064_v18 = vld [vmem:[%s10153_s7 + $0x50] sm:$0xff] }
 0xa86   :  { %v2893_v32 = vpop.permute.xlu1 %2892 }
 0xa87   :  { %v2908_v52 = vmul.f32 %v8971_v56, %v2893_v32  ;;  %v2923_v63 = vsel %vm64_vm0, %v2913_v31, 0.0  ;;  %v3018_v32 = vld [vmem:[%s10153_s7 + $0x18] sm:$0xff]  ;;  %3206 = vmatprep.subr.mxu0 %v3034_v61 }
 0xa88   :  { %2924 = vadd.xlane.f32.xlu0 %v2923_v63  ;;  %v3027_v63 = vunpack.c.l.bf16 %v3017_v44 }
 0xa89   :  { %v2914_v57 = vadd.f32 %v2908_v52, %v2866_v12  ;;  %v3028_v12 = vunpack.c.h.bf16 %v3017_v44  ;;  %v3030_v52 = vunpack.c.h.bf16 %v3018_v32  ;;  %v6062_v44 = vld [vmem:[%s10153_s7 + $0x40] sm:$0xff] }
 0xa8a   :  { %v2856_v36 = vpop.permute.xlu1 %2855 }
 0xa8b   :  { %v2867_v48 = vmul.f32 %v2856_v36, %v8973_v55  ;;  %v2926_v22 = vsel %vm64_vm0, %v2914_v57, 0.0  ;;  %v3015_v36 = vld [vmem:[%s10153_s7] sm:$0xff] }
 0xa8c   :  { %2927 = vadd.xlane.f32.xlu1 %v2926_v22  ;;  %v3023_v25 = vunpack.c.l.bf16 %v3015_v36 }
 0xa8d   :  { %v2915_v15 = vadd.f32 %v2909_v26, %v2867_v48  ;;  %v3016_v26 = vld [vmem:[%s10153_s7 + $0x8] sm:$0xff]  ;;  %v3024_v48 = vunpack.c.h.bf16 %v3015_v36 }
 0xa8e   :  { %v2861_v28 = vpop.permute.xlu1 %2860  ;;  %v3026_v22 = vunpack.c.h.bf16 %v3016_v26 }
 0xa8f   :  { %v2868_v14 = vmul.f32 %v8969_v23, %v2861_v28  ;;  %v2929_v56 = vsel %vm64_vm0, %v2915_v15, 0.0  ;;  %v10164_v28 = vmov 0.0  }
 0xa90   :  { %2930 = vadd.xlane.f32.xlu0 %v2929_v56  ;;  %3143 = vmatprep.mubr.f32.mxu1 %v10164_v28 }
 0xa91   :  { %v2916_v30 = vadd.f32 %v2910_v29, %v2868_v14  ;;  %3244 = vmatprep.mubr.f32.mxu0 %v10164_v28  ;;  %v6068_v29 = vld [vmem:[%s10153_s7 + $0x70] sm:$0xff]  ;;  %v6069_v14 = vld [vmem:[%s10153_s7 + $0x78] sm:$0xff] }
 0xa92   :  { %v3455_v56 = vunpack.c.h.bf16 %v6068_v29  ;;  %v3456_v53 = vunpack.c.l.bf16 %v6069_v14 }
 0xa93   :  { %v2932_v21 = vsel %vm64_vm0, %v2916_v30, 0.0 }
 0xa94   :  { %2933 = vadd.xlane.f32.xlu1 %v2932_v21 }
 0xb01   :  { %v2922_v40 = vpop.xlane.xlu0 %2921 }
 0xb02   :  { %v2936_v34 = vmul.f32 0.03125, %v2922_v40 }
 0xb04   :  { %v8999_v55 = vsub.f32 %v2912_v27, %v2936_v34 }
 0xb05   :  { %v2919_v33 = vpop.xlane.xlu1 %2918 }
 0xb06   :  { %v2935_v35 = vmul.f32 0.03125, %v2919_v33  ;;  %v2948_v37 = vmul.f32 %v8999_v55, %v8999_v55 }
 0xb08   :  { %v9003_v5 = vsub.f32 %v2911_v10, %v2935_v35  ;;  %v2956_v23 = vsel %vm64_vm0, %v2948_v37, 0.0  ;;  %v3035_v10 = vunpack.c.l.bf16 %v3021_v11 }
 0xb09   :  { %2957 = vadd.xlane.f32.xlu1 %v2956_v23 }
 0xb0a   :  { %v2947_v2 = vmul.f32 %v9003_v5, %v9003_v5  ;;  %3104 = vmatpush1.msra.mxu1 %v3035_v10 }
 0xb0b   :  { %3105 = vmatprep.subr.mxu1 %v3032_v1 }
 0xb0c   :  { %v2953_v38 = vsel %vm64_vm0, %v2947_v2, 0.0  ;;  %3106 = vmatpush1.msra.mxu1 %v3031_v49 }
 0xb0d   :  { %2954 = vadd.xlane.f32.xlu0 %v2953_v38  ;;  %3107 = vmatprep.subr.mxu1 %v3028_v12  ;;  %v9062_v38 = vsub.s32 2, %v8823_v4  ;;  %v3447_v12 = vunpack.c.h.bf16 %v6064_v18 }
 0xb0e   :  { %3108 = vmatpush1.msra.mxu1 %v3027_v63  ;;  %v3446_v63 = vunpack.c.l.bf16 %v6064_v18  ;;  %v6904_v18 = vld [vmem:[%s10155_s9 + $0x1e8] sm:$0xff]  }
 0xb0f   :  { %3109 = vmatprep.subr.mxu1 %v3024_v48 }
 0xb10   :  { %3110 = vmatpush1.msra.mxu1 %v3023_v25  ;;  %v3442_v25 = vunpack.c.l.bf16 %v6062_v44 }
 0xb11   :  { %v2925_v39 = vpop.xlane.xlu0 %2924  ;;  %3505 = vmatprep.subr.mxu1 %v3455_v56 }
 0xb12   :  { %v2937_v3 = vmul.f32 0.03125, %v2925_v39 }
 0xb14   :  { %v9009_v0 = vsub.f32 %v2913_v31, %v2937_v3  ;;  %v3033_v31 = vunpack.c.l.bf16 %v3020_v16  ;;  %v6065_v16 = vld [vmem:[%s10153_s7 + $0x58] sm:$0xff] }
 0xb15   :  { %v2928_v41 = vpop.xlane.xlu1 %2927 }
 0xb16   :  { %v2938_v24 = vmul.f32 0.03125, %v2928_v41  ;;  %v2949_v62 = vmul.f32 %v9009_v0, %v9009_v0  ;;  %3207 = vmatpush1.msra.mxu0 %v3033_v31 }
 0xb17   :  { %3208 = vmatprep.subr.mxu0 %v3030_v52  ;;  %v3449_v52 = vunpack.c.h.bf16 %v6065_v16 }
 0xb18   :  { %v9013_v43 = vsub.f32 %v2914_v57, %v2938_v24  ;;  %v2959_v45 = vsel %vm64_vm0, %v2949_v62, 0.0  ;;  %v3029_v57 = vunpack.c.l.bf16 %v3018_v32  ;;  %v9065_v24 = vsub.s32 3, %v8823_v4  ;;  %v6063_v32 = vld [vmem:[%s10153_s7 + $0x48] sm:$0xff] }
 0xb19   :  { %v2931_v50 = vpop.xlane.xlu0 %2930  ;;  %2960 = vadd.xlane.f32.xlu0 %v2959_v45  ;;  %v3445_v48 = vunpack.c.h.bf16 %v6063_v32 }
 0xb1a   :  { %v2939_v58 = vmul.f32 0.03125, %v2931_v50  ;;  %v2950_v59 = vmul.f32 %v9013_v43, %v9013_v43  ;;  %3209 = vmatpush1.msra.mxu0 %v3029_v57  ;;  %v9069_v50 = vrot.slane %v8832_v51, %v9062_v38  ;;  %v3448_v57 = vunpack.c.l.bf16 %v6065_v16 }
 0xb1b   :  { %3210 = vmatprep.subr.mxu0 %v3026_v22 }
 0xb1c   :  { %v9018_v19 = vsub.f32 %v2915_v15, %v2939_v58  ;;  %v2962_v42 = vsel %vm64_vm0, %v2950_v59, 0.0  ;;  %v3025_v15 = vunpack.c.l.bf16 %v3016_v26  ;;  %v3443_v26 = vunpack.c.h.bf16 %v6062_v44 }
 0xb1d   :  { %2963 = vadd.xlane.f32.xlu1 %v2962_v42  ;;  %v2934_v8 = vpop.xlane.xlu1 %2933 }
 0xb1e   :  { %v2940_v20 = vmul.f32 0.03125, %v2934_v8  ;;  %v2951_v9 = vmul.f32 %v9018_v19, %v9018_v19  ;;  %3211 = vmatpush1.msra.mxu0 %v3025_v15  ;;  %v3444_v15 = vunpack.c.l.bf16 %v6063_v32 }
 0xb20   :  { %v9023_v7 = vsub.f32 %v2916_v30, %v2940_v20  ;;  %v2965_v13 = vsel %vm64_vm0, %v2951_v9, 0.0  ;;  %v3457_v30 = vunpack.c.h.bf16 %v6069_v14  ;;  %v9075_v20 = vrot.slane %v8832_v51, %v9065_v24 }
 0xb21   :  { %2966 = vadd.xlane.f32.xlu0 %v2965_v13 }
 0xb22   :  { %v2952_v46 = vmul.f32 %v9023_v7, %v9023_v7  ;;  %3606 = vmatprep.subr.mxu0 %v3457_v30 }
 0xb24   :  { %v2968_v27 = vsel %vm64_vm0, %v2952_v46, 0.0  ;;  %v6066_v46 = vld [vmem:[%s10153_s7 + $0x60] sm:$0xff] }
 0xb25   :  { %2969 = vadd.xlane.f32.xlu1 %v2968_v27  ;;  %v3454_v27 = vunpack.c.l.bf16 %v6068_v29  ;;  %v3451_v17 = vunpack.c.h.bf16 %v6066_v46  ;;  %v3450_v49 = vunpack.c.l.bf16 %v6066_v46 }
 0xb92   :  { %v2958_v21 = vpop.xlane.xlu1 %2957 }
 0xb93   :  { %v2972_v40 = vmul.f32 0.03125, %v2958_v21 }
 0xb95   :  { %v2978_v34 = vadd.f32 1e-06, %v2972_v40 }
 0xb96   :  { %v2955_v33 = vpop.xlane.xlu0 %2954 }
 0xb97   :  { %v2971_v35 = vmul.f32 0.03125, %v2955_v33  ;;  %8063 = vrsqrt.f32 %v2978_v34 }
 0xb99   :  { %v2977_v37 = vadd.f32 1e-06, %v2971_v35 }
 0xb9b   :  { %8065 = vrsqrt.f32 %v2977_v37 }
 0xba2   :  { %v2961_v23 = vpop.xlane.xlu0 %2960 }
 0xba3   :  { %v2973_v2 = vmul.f32 0.03125, %v2961_v23 }
 0xba4   :  { %v8064_v3 = vpop.eup %8063 }
 0xba5   :  { %v2979_v39 = vadd.f32 1e-06, %v2973_v2  ;;  %v2990_v58 = vmul.f32 %v8064_v3, %v8999_v55  ;;  %v6067_v55 = vld [vmem:[%s10153_s7 + $0x68] sm:$0xff]  ;;  %v6906_v2 = vld [vmem:[%s10155_s9 + $0x1f8] sm:$0xff]  }
 0xba6   :  { %v2964_v41 = vpop.xlane.xlu1 %2963  ;;  %v3453_v10 = vunpack.c.h.bf16 %v6067_v55  ;;  %v3452_v31 = vunpack.c.l.bf16 %v6067_v55  ;;  %v6587_v3 = vunpack.c.h.bf16 %v6906_v2  ;;  %v6881_v55 = vld [vmem:[%s10155_s9 + $0x130] sm:$0xff]  }
 0xba7   :  { %8067 = vrsqrt.f32 %v2979_v39  ;;  %v2974_v62 = vmul.f32 0.03125, %v2964_v41  ;;  %v6882_v41 = vld [vmem:[%s10155_s9 + $0x138] sm:$0xff]  }
 0xba8   :  { %v8066_v45 = vpop.eup %8065 }
 0xba9   :  { %v2989_v59 = vmul.f32 %v8066_v45, %v9003_v5  ;;  %v2980_v42 = vadd.f32 1e-06, %v2974_v62  ;;  %v3000_v5 = vmul.f32 %v9069_v50, %v2990_v58  ;;  %v6898_v62 = vld [vmem:[%s10155_s9 + $0x1b8] sm:$0xff]   ;;  %v6491_v45 = vunpack.c.h.bf16 %v6882_v41 }
 0xbaa   :  { %v2967_v8 = vpop.xlane.xlu0 %2966 }
 0xbab   :  { %v2999_v9 = vmul.f32 %v9069_v50, %v2989_v59  ;;  %8069 = vrsqrt.f32 %v2980_v42  ;;  %v2975_v13 = vmul.f32 0.03125, %v2967_v8  ;;  %v9101_v1 = vadd.f32 %v9075_v20, %v3000_v5 }
 0xbac   :  { %v6586_v59 = vunpack.c.l.bf16 %v6906_v2  ;;  %v6490_v42 = vunpack.c.l.bf16 %v6882_v41  ;;  %v6554_v8 = vunpack.c.l.bf16 %v6898_v62  ;;  %v6487_v5 = vunpack.c.h.bf16 %v6881_v55  ;;  %v6894_v2 = vld [vmem:[%s10155_s9 + $0x198] sm:$0xff]  }
 0xbad   :  { %v9086_v11 = vadd.f32 %v9075_v20, %v2999_v9  ;;  %v2981_v51 = vadd.f32 1e-06, %v2975_v13  ;;  %v6905_v9 = vld [vmem:[%s10155_s9 + $0x1f0] sm:$0xff]  }
 0xbae   :  { %v2970_v54 = vpop.xlane.xlu1 %2969  ;;  %v6583_v46 = vunpack.c.h.bf16 %v6905_v9 }
 0xbaf   :  { %8071 = vrsqrt.f32 %v2981_v51  ;;  %v2976_v47 = vmul.f32 0.03125, %v2970_v54  ;;  %6050 = vmatmul.mubr.msk.f32.vlgmr.msra.gmra.mxu1 %vm64_vm0, %v9086_v11  ;;  %6056 = vmatmul.mubr.msk.f32.vlgmr.msra.gmra.mxu0 %vm64_vm0, %v9086_v11  ;;  %v6582_v54 = vunpack.c.l.bf16 %v6905_v9  ;;  %v6893_v9 = vld [vmem:[%s10155_s9 + $0x190] sm:$0xff]  }
 0xbb0   :  { %3149 = vmatprep.mubr.f32.mxu1 %v10164_v28  ;;  %3250 = vmatprep.mubr.f32.mxu0 %v10164_v28 }
 0xbb1   :  { %v2982_v61 = vadd.f32 1e-06, %v2976_v47  ;;  %3506 = vmatpush1.msra.mxu1 %v3454_v27  ;;  %3607 = vmatpush1.msra.mxu0 %v3456_v53  ;;  %v6897_v27 = vld [vmem:[%s10155_s9 + $0x1b0] sm:$0xff]   ;;  %v6888_v47 = vld [vmem:[%s10155_s9 + $0x168] sm:$0xff]  }
 0xbb2   :  { %3507 = vmatprep.subr.mxu1 %v3451_v17  ;;  %3608 = vmatprep.subr.mxu0 %v3453_v10  ;;  %v6551_v51 = vunpack.c.h.bf16 %v6897_v27  ;;  %v6486_v17 = vunpack.c.l.bf16 %v6881_v55  ;;  %v6550_v10 = vunpack.c.l.bf16 %v6897_v27  ;;  %v6515_v16 = vunpack.c.h.bf16 %v6888_v47 }
 0xbb3   :  { %8073 = vrsqrt.f32 %v2982_v61  ;;  %6051 = vmatmul.mubr.msk.f32.gmra.mxu1 %vm64_vm0, %v9101_v1  ;;  %6057 = vmatmul.mubr.msk.f32.gmra.mxu0 %vm64_vm0, %v9101_v1  ;;  %v6579_v61 = vunpack.c.h.bf16 %v6904_v18 }
 0xbb4   :  { %v8068_v36 = vpop.eup %8067  ;;  %3155 = vmatprep.mubr.f32.mxu1 %v10164_v28  ;;  %3256 = vmatprep.mubr.f32.mxu0 %v10164_v28 }
 0xbb5   :  { %v2991_v22 = vmul.f32 %v8068_v36, %v9009_v0  ;;  %3508 = vmatpush1.msra.mxu1 %v3450_v49  ;;  %3609 = vmatpush1.msra.mxu0 %v3452_v31  ;;  %v6880_v49 = vld [vmem:[%s10155_s9 + $0x128] sm:$0xff]   ;;  %v6887_v36 = vld [vmem:[%s10155_s9 + $0x160] sm:$0xff]  }
 0xbb6   :  { %3509 = vmatprep.subr.mxu1 %v3447_v12  ;;  %3610 = vmatprep.subr.mxu0 %v3449_v52  ;;  %v6896_v31 = vld [vmem:[%s10155_s9 + $0x1a8] sm:$0xff]   ;;  %v6483_v44 = vunpack.c.h.bf16 %v6880_v49  ;;  %v6514_v12 = vunpack.c.l.bf16 %v6888_v47  ;;  %v6578_v52 = vunpack.c.l.bf16 %v6904_v18 }
 0xbb7   :  { %v3001_v29 = vmul.f32 %v9069_v50, %v2991_v22  ;;  %3510 = vmatpush1.msra.mxu1 %v3446_v63  ;;  %3611 = vmatpush1.msra.mxu0 %v3448_v57  ;;  %v6547_v32 = vunpack.c.h.bf16 %v6896_v31  ;;  %v6482_v63 = vunpack.c.l.bf16 %v6880_v49  ;;  %v6546_v57 = vunpack.c.l.bf16 %v6896_v31  ;;  %v6876_v47 = vld [vmem:[%s10155_s9 + $0x108] sm:$0xff]  }
 0xbb8   :  { %v8070_v14 = vpop.eup %8069  ;;  %3511 = vmatprep.subr.mxu1 %v3443_v26  ;;  %3612 = vmatprep.subr.mxu0 %v3445_v48  ;;  %v6903_v26 = vld [vmem:[%s10155_s9 + $0x1e0] sm:$0xff]   ;;  %v6511_v48 = vunpack.c.h.bf16 %v6887_v36  ;;  %v6892_v18 = vld [vmem:[%s10155_s9 + $0x188] sm:$0xff]  }
 0xbb9   :  { %v9118_v56 = vadd.f32 %v9075_v20, %v3001_v29  ;;  %v2992_v30 = vmul.f32 %v8070_v14, %v9013_v43  ;;  %3512 = vmatpush1.msra.mxu1 %v3442_v25  ;;  %3613 = vmatpush1.msra.mxu0 %v3444_v15  ;;  %v6575_v22 = vunpack.c.h.bf16 %v6903_v26  ;;  %v6879_v25 = vld [vmem:[%s10155_s9 + $0x120] sm:$0xff]  }
 0xbba   :  { %7191 = vmatprep.subr.mxu0 %v6587_v3  ;;  %v6895_v15 = vld [vmem:[%s10155_s9 + $0x1a0] sm:$0xff]   ;;  %v6479_v29 = vunpack.c.h.bf16 %v6879_v25  ;;  %v6539_v3 = vunpack.c.h.bf16 %v6894_v2 }
 0xbbb   :  { %10179 = vst [vmem:[#allocation6_spill] sm:$0xff] %v9118_v56  ;;  %v3002_v0 = vmul.f32 %v9069_v50, %v2992_v30  ;;  %6052 = vmatmul.mubr.msk.f32.gmra.mxu1 %vm64_vm0, %v9118_v56  ;;  %6058 = vmatmul.mubr.msk.f32.gmra.mxu0 %vm64_vm0, %v9118_v56  ;;  %v6543_v14 = vunpack.c.h.bf16 %v6895_v15  ;;  %v6510_v30 = vunpack.c.l.bf16 %v6887_v36  ;;  %v6875_v36 = vld [vmem:[%s10155_s9 + $0x100] sm:$0xff]  }
 0xbbc   :  { %v8072_v21 = vpop.eup %8071  ;;  %3161 = vmatprep.mubr.f32.mxu1 %v10164_v28  ;;  %3262 = vmatprep.mubr.f32.mxu0 %v10164_v28 }
 0xbbd   :  { %v9129_v40 = vadd.f32 %v9075_v20, %v3002_v0  ;;  %v2993_v43 = vmul.f32 %v8072_v21, %v9018_v19  ;;  %v6574_v0 = vunpack.c.l.bf16 %v6903_v26  ;;  %v6478_v21 = vunpack.c.l.bf16 %v6879_v25  ;;  %v6891_v26 = vld [vmem:[%s10155_s9 + $0x180] sm:$0xff]  }
 0xbbf   :  { %10180 = vst [vmem:[#allocation7_spill] sm:$0xff] %v9129_v40  ;;  %v3003_v34 = vmul.f32 %v9069_v50, %v2993_v43  ;;  %6053 = vmatmul.mubr.msk.f32.gmra.mxu1 %vm64_vm0, %v9129_v40  ;;  %6059 = vmatmul.mubr.msk.f32.gmra.mxu0 %vm64_vm0, %v9129_v40  ;;  %v6542_v43 = vunpack.c.l.bf16 %v6895_v15 }
 0xbc0   :  { %v8074_v33 = vpop.eup %8073  ;;  %3167 = vmatprep.mubr.f32.mxu1 %v10164_v28  ;;  %3268 = vmatprep.mubr.f32.mxu0 %v10164_v28 }
 0xbc1   :  { %v9140_v35 = vadd.f32 %v9075_v20, %v3003_v34  ;;  %v2994_v37 = vmul.f32 %v8074_v33, %v9023_v7  ;;  %v6890_v7 = vld [vmem:[%s10155_s9 + $0x178] sm:$0xff]  }
 0xbc2   :  { %v6523_v39 = vunpack.c.h.bf16 %v6890_v7  ;;  %v6522_v58 = vunpack.c.l.bf16 %v6890_v7  ;;  %v6886_v34 = vld [vmem:[%s10155_s9 + $0x158] sm:$0xff]  }
 0xbc3   :  { %10181 = vst [vmem:[#allocation8_spill] sm:$0xff] %v9140_v35  ;;  %v3004_v19 = vmul.f32 %v9069_v50, %v2994_v37  ;;  %6054 = vmatmul.mubr.msk.f32.gmra.mxu1 %vm64_vm0, %v9140_v35  ;;  %6060 = vmatmul.mubr.msk.f32.gmra.mxu0 %vm64_vm0, %v9140_v35  ;;  %v6555_v50 = vunpack.c.h.bf16 %v6898_v62  ;;  %v6902_v33 = vld [vmem:[%s10155_s9 + $0x1d8] sm:$0xff]   ;;  %v6507_v37 = vunpack.c.h.bf16 %v6886_v34  ;;  %v6506_v41 = vunpack.c.l.bf16 %v6886_v34 }
 0xbc4   :  { %3173 = vmatprep.mubr.f32.mxu1 %v10164_v28  ;;  %3274 = vmatprep.mubr.f32.mxu0 %v10164_v28  ;;  %v6878_v7 = vld [vmem:[%s10155_s9 + $0x118] sm:$0xff]   ;;  %v6570_v62 = vunpack.c.l.bf16 %v6902_v33 }
 0xbc5   :  { %v9151_v23 = vadd.f32 %v9075_v20, %v3004_v19  ;;  %7141 = vmatprep.subr.mxu1 %v6523_v39  ;;  %v6889_v20 = vld [vmem:[%s10155_s9 + $0x170] sm:$0xff]   ;;  %v6571_v19 = vunpack.c.h.bf16 %v6902_v33  ;;  %v6475_v39 = vunpack.c.h.bf16 %v6878_v7 }
 0xbc6   :  { %v6519_v13 = vunpack.c.h.bf16 %v6889_v20  ;;  %v6518_v53 = vunpack.c.l.bf16 %v6889_v20  ;;  %v6877_v20 = vld [vmem:[%s10155_s9 + $0x110] sm:$0xff]  }
 0xbc7   :  { %10182 = vst [vmem:[#allocation9_spill] sm:$0xff] %v9151_v23  ;;  %6055 = vmatmul.mubr.msk.f32.gmra.mxu1 %vm64_vm0, %v9151_v23  ;;  %6061 = vmatmul.mubr.msk.f32.gmra.mxu0 %vm64_vm0, %v9151_v23 }
 0xbc8   :  { %3545 = vmatprep.mubr.f32.mxu1 %v10164_v28  ;;  %3646 = vmatprep.mubr.f32.mxu0 %v10164_v28 }
 0xbcb   :  { %6071 = vmatmul.mubr.msk.f32.vlgmr.msra.gmra.mxu1 %vm64_vm0, %v9086_v11  ;;  %6077 = vmatmul.mubr.msk.f32.vlgmr.msra.gmra.mxu0 %vm64_vm0, %v9086_v11 }
 0xbcc   :  { %3551 = vmatprep.mubr.f32.mxu1 %v10164_v28  ;;  %3652 = vmatprep.mubr.f32.mxu0 %v10164_v28 }
 0xbcd   :  { %7142 = vmatpush3.msra.mxu1 %v6491_v45  ;;  %7192 = vmatpush3.msra.mxu0 %v6555_v50  ;;  %v6474_v45 = vunpack.c.l.bf16 %v6878_v7  ;;  %v6538_v50 = vunpack.c.l.bf16 %v6894_v2 }
 0xbce   :  { %7143 = vmatprep.subr.mxu1 %v6522_v58  ;;  %7193 = vmatprep.subr.mxu0 %v6586_v59  ;;  %v6885_v58 = vld [vmem:[%s10155_s9 + $0x150] sm:$0xff]  }
 0xbcf   :  { %6072 = vmatmul.mubr.msk.f32.gmra.mxu1 %vm64_vm0, %v9101_v1  ;;  %6078 = vmatmul.mubr.msk.f32.gmra.mxu0 %vm64_vm0, %v9101_v1  ;;  %v6901_v59 = vld [vmem:[%s10155_s9 + $0x1d0] sm:$0xff]   ;;  %v6502_v55 = vunpack.c.l.bf16 %v6885_v58 }
 0xbd0   :  { %3557 = vmatprep.mubr.f32.mxu1 %v10164_v28  ;;  %3658 = vmatprep.mubr.f32.mxu0 %v10164_v28  ;;  %v6566_v27 = vunpack.c.l.bf16 %v6901_v59 }
 0xbd1   :  { %7144 = vmatpush3.msra.mxu1 %v6490_v42  ;;  %7194 = vmatpush3.msra.mxu0 %v6554_v8  ;;  %v6503_v42 = vunpack.c.h.bf16 %v6885_v58  ;;  %v6567_v8 = vunpack.c.h.bf16 %v6901_v59 }
 0xbd2   :  { %7145 = vmatprep.subr.mxu1 %v6519_v13  ;;  %7195 = vmatprep.subr.mxu0 %v6583_v46  ;;  %v6471_v13 = vunpack.c.h.bf16 %v6877_v20  ;;  %v6535_v46 = vunpack.c.h.bf16 %v6893_v9 }
 0xbd3   :  { %6073 = vmatmul.mubr.msk.f32.gmra.mxu1 %vm64_vm0, %v9118_v56  ;;  %6079 = vmatmul.mubr.msk.f32.gmra.mxu0 %vm64_vm0, %v9118_v56 }
 0xbd4   :  { %3563 = vmatprep.mubr.f32.mxu1 %v10164_v28  ;;  %3664 = vmatprep.mubr.f32.mxu0 %v10164_v28 }
 0xbd5   :  { %7146 = vmatpush3.msra.mxu1 %v6487_v5  ;;  %7196 = vmatpush3.msra.mxu0 %v6551_v51  ;;  %v6470_v5 = vunpack.c.l.bf16 %v6877_v20  ;;  %v6534_v51 = vunpack.c.l.bf16 %v6893_v9 }
 0xbd6   :  { %7147 = vmatprep.subr.mxu1 %v6518_v53  ;;  %7197 = vmatprep.subr.mxu0 %v6582_v54  ;;  %v6884_v53 = vld [vmem:[%s10155_s9 + $0x148] sm:$0xff]  }
 0xbd7   :  { %6074 = vmatmul.mubr.msk.f32.gmra.mxu1 %vm64_vm0, %v9129_v40  ;;  %6080 = vmatmul.mubr.msk.f32.gmra.mxu0 %vm64_vm0, %v9129_v40  ;;  %v6900_v54 = vld [vmem:[%s10155_s9 + $0x1c8] sm:$0xff]   ;;  %v6498_v49 = vunpack.c.l.bf16 %v6884_v53 }
 0xbd8   :  { %3569 = vmatprep.mubr.f32.mxu1 %v10164_v28  ;;  %3670 = vmatprep.mubr.f32.mxu0 %v10164_v28  ;;  %v6562_v31 = vunpack.c.l.bf16 %v6900_v54 }
 0xbd9   :  { %7148 = vmatpush3.msra.mxu1 %v6486_v17  ;;  %7198 = vmatpush3.msra.mxu0 %v6550_v10  ;;  %v6499_v17 = vunpack.c.h.bf16 %v6884_v53  ;;  %v6563_v10 = vunpack.c.h.bf16 %v6900_v54 }
 0xbda   :  { %7149 = vmatprep.subr.mxu1 %v6515_v16  ;;  %7199 = vmatprep.subr.mxu0 %v6579_v61  ;;  %v6467_v16 = vunpack.c.h.bf16 %v6876_v47  ;;  %v6531_v61 = vunpack.c.h.bf16 %v6892_v18 }
 0xbdb   :  { %6075 = vmatmul.mubr.msk.f32.gmra.mxu1 %vm64_vm0, %v9140_v35  ;;  %6081 = vmatmul.mubr.msk.f32.gmra.mxu0 %vm64_vm0, %v9140_v35 }
 0xbdc   :  { %3575 = vmatprep.mubr.f32.mxu1 %v10164_v28  ;;  %3676 = vmatprep.mubr.f32.mxu0 %v10164_v28  ;;  %v6849_v28 = vld [vmem:[%s10155_s9 + $0x30] sm:$0xff]  }
 0xbdd   :  { %7150 = vmatpush3.msra.mxu1 %v6483_v44  ;;  %7200 = vmatpush3.msra.mxu0 %v6547_v32  ;;  %v6466_v44 = vunpack.c.l.bf16 %v6876_v47  ;;  %v6530_v32 = vunpack.c.l.bf16 %v6892_v18 }
 0xbde   :  { %7151 = vmatprep.subr.mxu1 %v6514_v12  ;;  %7201 = vmatprep.subr.mxu0 %v6578_v52  ;;  %v6883_v12 = vld [vmem:[%s10155_s9 + $0x140] sm:$0xff]  }
 0xbdf   :  { %6076 = vmatmul.mubr.msk.f32.gmra.mxu1 %vm64_vm0, %v9151_v23  ;;  %6082 = vmatmul.mubr.msk.f32.gmra.mxu0 %vm64_vm0, %v9151_v23  ;;  %v6899_v52 = vld [vmem:[%s10155_s9 + $0x1c0] sm:$0xff]   ;;  %v6494_v25 = vunpack.c.l.bf16 %v6883_v12 }
 0xbe0   :  { %7152 = vmatpush3.msra.mxu1 %v6482_v63  ;;  %7202 = vmatpush3.msra.mxu0 %v6546_v57  ;;  %v6495_v63 = vunpack.c.h.bf16 %v6883_v12  ;;  %v6559_v57 = vunpack.c.h.bf16 %v6899_v52  ;;  %v6558_v15 = vunpack.c.l.bf16 %v6899_v52  ;;  %v6866_v12 = vld [vmem:[%s10155_s9 + $0xb8] sm:$0xff]  }
 0xbe1   :  { %7153 = vmatprep.subr.mxu1 %v6511_v48  ;;  %7203 = vmatprep.subr.mxu0 %v6575_v22  ;;  %v6463_v48 = vunpack.c.h.bf16 %v6875_v36  ;;  %v6527_v22 = vunpack.c.h.bf16 %v6891_v26 }
 0xbe2   :  { %7154 = vmatpush3.msra.mxu1 %v6479_v29  ;;  %7204 = vmatpush3.msra.mxu0 %v6543_v14  ;;  %v6462_v29 = vunpack.c.l.bf16 %v6875_v36  ;;  %v6526_v14 = vunpack.c.l.bf16 %v6891_v26 }
 0xbe3   :  { %7155 = vmatprep.subr.mxu1 %v6510_v30  ;;  %7205 = vmatprep.subr.mxu0 %v6574_v0  ;;  %v9292_v30 = vld [vmem:[%s10155_s9 + $0x78] sm:$0xff]  }
 0xbe4   :  { %7156 = vmatpush3.msra.mxu1 %v6478_v21  ;;  %7206 = vmatpush3.msra.mxu0 %v6542_v43  ;;  %v9297_v0 = vld [vmem:[%s10155_s9 + $0xf8] sm:$0xff]   ;;  %v6395_v21 = vunpack.c.h.bf16 %v9292_v30 }
 0xbe5   :  { %7157 = vmatprep.subr.mxu1 %v6507_v37  ;;  %7207 = vmatprep.subr.mxu0 %v6571_v19  ;;  %v6459_v43 = vunpack.c.h.bf16 %v9297_v0 }
 0xbe6   :  { %7158 = vmatpush3.msra.mxu1 %v6475_v39  ;;  %7208 = vmatpush3.msra.mxu0 %v6539_v3 }
 0xbe7   :  { %7159 = vmatprep.subr.mxu1 %v6506_v41  ;;  %7209 = vmatprep.subr.mxu0 %v6570_v62 }
 0xbe8   :  { %7160 = vmatpush3.msra.mxu1 %v6474_v45  ;;  %7210 = vmatpush3.msra.mxu0 %v6538_v50 }
 0xbe9   :  { %7161 = vmatprep.subr.mxu1 %v6503_v42  ;;  %7211 = vmatprep.subr.mxu0 %v6567_v8 }
 0xbea   :  { %7162 = vmatpush3.msra.mxu1 %v6471_v13  ;;  %7212 = vmatpush3.msra.mxu0 %v6535_v46 }
 0xbeb   :  { %7163 = vmatprep.subr.mxu1 %v6502_v55  ;;  %7213 = vmatprep.subr.mxu0 %v6566_v27  ;;  %v6070_v55 = vld [vmem:[%s10154_s8 + $0x4] sm:$0xf] }
 0xbec   :  { %7164 = vmatpush3.msra.mxu1 %v6470_v5  ;;  %7214 = vmatpush3.msra.mxu0 %v6534_v51  ;;  %v9353_v54 = vrot.slane %v6070_v55, %v8827_v6  ;;  %v9362_v47 = vrot.slane %v6070_v55, %v9065_v24 }
 0xbed   :  { %7165 = vmatprep.subr.mxu1 %v6499_v17  ;;  %7215 = vmatprep.subr.mxu0 %v6563_v10  ;;  %v9356_v17 = vrot.slane %v6070_v55, %v9062_v38  ;;  %v9359_v10 = vrot.slane %v6070_v55, %v8835_v60  ;;  %v6458_v55 = vunpack.c.l.bf16 %v9297_v0 }
 0xbee   :  { %7166 = vmatpush3.msra.mxu1 %v6467_v16  ;;  %7216 = vmatpush3.msra.mxu0 %v6531_v61 }
 0xbef   :  { %7167 = vmatprep.subr.mxu1 %v6498_v49  ;;  %7217 = vmatprep.subr.mxu0 %v6562_v31 }
 0xbf0   :  { %7168 = vmatpush3.msra.mxu1 %v6466_v44  ;;  %7218 = vmatpush3.msra.mxu0 %v6530_v32  ;;  %v6850_v32 = vld [vmem:[%s10155_s9 + $0x38] sm:$0xff]  }
 0xbf1   :  { %7169 = vmatprep.subr.mxu1 %v6495_v63  ;;  %7219 = vmatprep.subr.mxu0 %v6559_v57 }
 0xbf2   :  { %7170 = vmatpush3.msra.mxu1 %v6463_v48  ;;  %7220 = vmatpush3.msra.mxu0 %v6527_v22  ;;  %v6363_v22 = vunpack.c.h.bf16 %v6850_v32 }
 0xbf3   :  { %7171 = vmatprep.subr.mxu1 %v6494_v25  ;;  %7221 = vmatprep.subr.mxu0 %v6558_v15  ;;  %v6427_v25 = vunpack.c.h.bf16 %v6866_v12 }
 0xbf4   :  { %7172 = vmatpush3.msra.mxu1 %v6462_v29  ;;  %7222 = vmatpush3.msra.mxu0 %v6526_v14 }
 0xbf5   :  { %7241 = vmatprep.subr.mxu1 %v6395_v21  ;;  %7291 = vmatprep.subr.mxu0 %v6459_v43  ;;  %v6394_v43 = vunpack.c.l.bf16 %v9292_v30 }
 0xc6f   :  { %v9301_v34 = vpop.f32.mrf.mxu1  ;;  %v9303_v33 = vpop.f32.mrf.mxu0 }
 0xc71   :  { %v9305_v37 = vpop.f32.mrf.mxu1  ;;  %v9307_v19 = vpop.f32.mrf.mxu0 }
 0xc73   :  { %v9309_v7 = vpop.f32.mrf.mxu1  ;;  %v9311_v2 = vpop.f32.mrf.mxu0 }
 0xc75   :  { %v9313_v39 = vpop.f32.mrf.mxu1  ;;  %v9315_v3 = vpop.f32.mrf.mxu0 }
 0xc7b   :  { %v9317_v41 = vpop.f32.mrf.mxu1  ;;  %v9319_v62 = vpop.f32.mrf.mxu0 }
 0xc7d   :  { %v9321_v45 = vpop.f32.mrf.mxu1  ;;  %v9323_v50 = vpop.f32.mrf.mxu0 }
 0xc7f   :  { %v9325_v58 = vpop.f32.mrf.mxu1  ;;  %v9327_v59 = vpop.f32.mrf.mxu0 }
 0xc81   :  { %v9329_v42 = vpop.f32.mrf.mxu1  ;;  %v9331_v8 = vpop.f32.mrf.mxu0 }
 0xc83   :  { %v9333_v20 = vpop.f32.mrf.mxu1  ;;  %v9335_v9 = vpop.f32.mrf.mxu0 }
 0xc85   :  { %v9337_v13 = vpop.f32.mrf.mxu1  ;;  %v9339_v46 = vpop.f32.mrf.mxu0 }
 0xc87   :  { %v9344_v27 = vpop.f32.mrf.mxu1  ;;  %v9346_v5 = vpop.f32.mrf.mxu0 }
 0xc89   :  { %v9348_v51 = vpop.f32.mrf.mxu1  ;;  %v9350_v53 = vpop.f32.mrf.mxu0 }
 0xc8b   :  { %v3547_v18 = vpop.f32.mrf.mxu1  ;;  %v3648_v16 = vpop.f32.mrf.mxu0 }
 0xc8c   :  { %v3548_v61 = vadd.f32 %v3547_v18, %v9353_v54  ;;  %v3649_v49 = vadd.f32 %v3648_v16, %v9356_v17  ;;  %v6857_v18 = vld [vmem:[%s10155_s9 + $0x70] sm:$0xff]  }
 0xc8d   :  { %v3549_v31 = vpop.f32.mrf.mxu1  ;;  %v3650_v44 = vpop.f32.mrf.mxu0  ;;  %v6873_v16 = vld [vmem:[%s10155_s9 + $0xf0] sm:$0xff]  }
 0xc8e   :  { %v3550_v52 = vadd.f32 %v3549_v31, %v9359_v10  ;;  %v3651_v63 = vadd.f32 %v3650_v44, %v9362_v47  ;;  %v3683_v15 = vmax.f32 %v3548_v61, 0.0  ;;  %v3685_v29 = vmax.f32 %v3649_v49, 0.0 }
 0xc8f   :  { %v3553_v57 = vpop.f32.mrf.mxu1  ;;  %v3654_v36 = vpop.f32.mrf.mxu0  ;;  %v6362_v61 = vunpack.c.l.bf16 %v6850_v32  ;;  %v6426_v49 = vunpack.c.l.bf16 %v6866_v12  ;;  %v6391_v32 = vunpack.c.h.bf16 %v6857_v18  ;;  %v6455_v12 = vunpack.c.h.bf16 %v6873_v16 }
 0xc90   :  { %v3684_v26 = vmax.f32 %v3550_v52, 0.0  ;;  %v3686_v48 = vmax.f32 %v3651_v63, 0.0  ;;  %v3554_v30 = vadd.f32 %v3553_v57, %v9353_v54  ;;  %v3655_v0 = vadd.f32 %v3654_v36, %v9356_v17 }
 0xc91   :  { %v3555_v14 = vpop.f32.mrf.mxu1  ;;  %v3656_v21 = vpop.f32.mrf.mxu0 }
 0xc92   :  { %v3556_v31 = vadd.f32 %v3555_v14, %v9359_v10  ;;  %v3657_v44 = vadd.f32 %v3656_v21, %v9362_v47  ;;  %3900 = vmatprep.mubr.f32.mxu1 %v3684_v26  ;;  %3995 = vmatprep.mubr.f32.mxu0 %v3686_v48  ;;  %v6865_v14 = vld [vmem:[%s10155_s9 + $0xb0] sm:$0xff]   ;;  %v6359_v21 = vunpack.c.h.bf16 %v6849_v28  ;;  %v3687_v23 = vmax.f32 %v3554_v30, 0.0 }
 0xc93   :  { %v3559_v52 = vpop.f32.mrf.mxu1  ;;  %v3660_v63 = vpop.f32.mrf.mxu0  ;;  %3901 = vmatmul.mubr.f32.vlgmr.msra.gmra.mxu1 %v3683_v15  ;;  %3996 = vmatmul.mubr.f32.vlgmr.msra.gmra.mxu0 %v3685_v29  ;;  %v6423_v4 = vunpack.c.h.bf16 %v6865_v14  ;;  %v3689_v35 = vmax.f32 %v3655_v0, 0.0 }
 0xc94   :  { %v3688_v26 = vmax.f32 %v3556_v31, 0.0  ;;  %v3690_v48 = vmax.f32 %v3657_v44, 0.0  ;;  %7242 = vmatpush3.msra.mxu1 %v6363_v22  ;;  %7292 = vmatpush3.msra.mxu0 %v6427_v25  ;;  %v6390_v31 = vunpack.c.l.bf16 %v6857_v18  ;;  %v6454_v44 = vunpack.c.l.bf16 %v6873_v16 }
 0xc95   :  { %7243 = vmatprep.subr.mxu1 %v6394_v43  ;;  %7293 = vmatprep.subr.mxu0 %v6458_v55  ;;  %v3561_v57 = vpop.f32.mrf.mxu1  ;;  %v3662_v36 = vpop.f32.mrf.mxu0  ;;  %v6856_v43 = vld [vmem:[%s10155_s9 + $0x68] sm:$0xff]   ;;  %v3560_v30 = vadd.f32 %v3559_v52, %v9353_v54  ;;  %v3661_v0 = vadd.f32 %v3660_v63, %v9356_v17 }
 0xc96   :  { %v3562_v15 = vadd.f32 %v3561_v57, %v9359_v10  ;;  %v3663_v29 = vadd.f32 %v3662_v36, %v9362_v47  ;;  %7244 = vmatpush3.msra.mxu1 %v6362_v61  ;;  %7294 = vmatpush3.msra.mxu0 %v6426_v49  ;;  %v6872_v55 = vld [vmem:[%s10155_s9 + $0xe8] sm:$0xff]   ;;  %v6358_v61 = vunpack.c.l.bf16 %v6849_v28  ;;  %v6422_v49 = vunpack.c.l.bf16 %v6865_v14 }
 0xc97   :  { %3905 = vmatprep.mubr.f32.mxu1 %v3688_v26  ;;  %4000 = vmatprep.mubr.f32.mxu0 %v3690_v48  ;;  %v3565_v22 = vpop.f32.mrf.mxu1  ;;  %v3666_v25 = vpop.f32.mrf.mxu0  ;;  %v6848_v57 = vld [vmem:[%s10155_s9 + $0x28] sm:$0xff]   ;;  %v6387_v28 = vunpack.c.h.bf16 %v6856_v43  ;;  %v6451_v52 = vunpack.c.h.bf16 %v6872_v55 }
 0xc98   :  { %7245 = vmatprep.subr.mxu1 %v6391_v32  ;;  %7295 = vmatprep.subr.mxu0 %v6455_v12  ;;  %v3692_v26 = vmax.f32 %v3562_v15, 0.0  ;;  %v3694_v48 = vmax.f32 %v3663_v29, 0.0  ;;  %v6864_v32 = vld [vmem:[%s10155_s9 + $0xa8] sm:$0xff]   ;;  %v6355_v12 = vunpack.c.h.bf16 %v6848_v57  ;;  %v3691_v15 = vmax.f32 %v3560_v30, 0.0 }
 0xc99   :  { %3906 = vmatmul.mubr.f32.gmra.mxu1 %v3687_v23  ;;  %4001 = vmatmul.mubr.f32.gmra.mxu0 %v3689_v35  ;;  %v3567_v18 = vpop.f32.mrf.mxu1  ;;  %v3668_v16 = vpop.f32.mrf.mxu0  ;;  %v6419_v36 = vunpack.c.h.bf16 %v6864_v32  ;;  %v3693_v29 = vmax.f32 %v3661_v0, 0.0  ;;  %v3566_v30 = vadd.f32 %v3565_v22, %v9353_v54  ;;  %v3667_v0 = vadd.f32 %v3666_v25, %v9356_v17 }
 0xc9a   :  { %7246 = vmatpush3.msra.mxu1 %v6359_v21  ;;  %7296 = vmatpush3.msra.mxu0 %v6423_v4  ;;  %v3568_v63 = vadd.f32 %v3567_v18, %v9359_v10  ;;  %v3669_v35 = vadd.f32 %v3668_v16, %v9362_v47  ;;  %v6386_v21 = vunpack.c.l.bf16 %v6856_v43  ;;  %v6450_v4 = vunpack.c.l.bf16 %v6872_v55 }
 0xc9b   :  { %7247 = vmatprep.subr.mxu1 %v6390_v31  ;;  %7297 = vmatprep.subr.mxu0 %v6454_v44  ;;  %v3571_v23 = vpop.f32.mrf.mxu1  ;;  %v3672_v14 = vpop.f32.mrf.mxu0  ;;  %v6855_v31 = vld [vmem:[%s10155_s9 + $0x60] sm:$0xff]  }
 0xc9c   :  { %7248 = vmatpush3.msra.mxu1 %v6358_v61  ;;  %7298 = vmatpush3.msra.mxu0 %v6422_v49  ;;  %v6871_v44 = vld [vmem:[%s10155_s9 + $0xe0] sm:$0xff]   ;;  %v6354_v61 = vunpack.c.l.bf16 %v6848_v57  ;;  %v6418_v49 = vunpack.c.l.bf16 %v6864_v32  ;;  %v3696_v43 = vmax.f32 %v3568_v63, 0.0  ;;  %v3698_v55 = vmax.f32 %v3669_v35, 0.0 }
 0xc9d   :  { %3910 = vmatprep.mubr.f32.mxu1 %v3692_v26  ;;  %4005 = vmatprep.mubr.f32.mxu0 %v3694_v48  ;;  %v3573_v40 = vpop.f32.mrf.mxu1  ;;  %v3674_v56 = vpop.f32.mrf.mxu0  ;;  %v6847_v26 = vld [vmem:[%s10155_s9 + $0x20] sm:$0xff]   ;;  %v6383_v18 = vunpack.c.h.bf16 %v6855_v31  ;;  %v6447_v16 = vunpack.c.h.bf16 %v6871_v44  ;;  %v3695_v63 = vmax.f32 %v3566_v30, 0.0  ;;  %v3697_v35 = vmax.f32 %v3667_v0, 0.0  ;;  %v6846_v30 = vld [vmem:[%s10155_s9 + $0x18] sm:$0xff]  }
 0xc9e   :  { %7249 = vmatprep.subr.mxu1 %v6387_v28  ;;  %7299 = vmatprep.subr.mxu0 %v6451_v52  ;;  %v6863_v48 = vld [vmem:[%s10155_s9 + $0xa0] sm:$0xff]   ;;  %v3574_v25 = vadd.f32 %v3573_v40, %v9359_v10  ;;  %v3675_v32 = vadd.f32 %v3674_v56, %v9362_v47  ;;  %v6351_v28 = vunpack.c.h.bf16 %v6847_v26  ;;  %v6870_v40 = vld [vmem:[%s10155_s9 + $0xd8] sm:$0xff]  }
 0xc9f   :  { %3911 = vmatmul.mubr.f32.gmra.mxu1 %v3691_v15  ;;  %4006 = vmatmul.mubr.f32.gmra.mxu0 %v3693_v29  ;;  %v3577_v57 = vpop.f32.mrf.mxu1  ;;  %v3678_v22 = vpop.f32.mrf.mxu0  ;;  %v6415_v52 = vunpack.c.h.bf16 %v6863_v48  ;;  %v6854_v15 = vld [vmem:[%s10155_s9 + $0x58] sm:$0xff]  }
 0xca0   :  { %7250 = vmatpush3.msra.mxu1 %v6355_v12  ;;  %7300 = vmatpush3.msra.mxu0 %v6419_v36  ;;  %v6382_v12 = vunpack.c.l.bf16 %v6855_v31  ;;  %v6446_v36 = vunpack.c.l.bf16 %v6871_v44  ;;  %v3700_v31 = vmax.f32 %v3574_v25, 0.0  ;;  %v3702_v44 = vmax.f32 %v3675_v32, 0.0  ;;  %v6862_v0 = vld [vmem:[%s10155_s9 + $0x98] sm:$0xff]  }
 0xca1   :  { %7251 = vmatprep.subr.mxu1 %v6386_v21  ;;  %7301 = vmatprep.subr.mxu0 %v6450_v4  ;;  %v3579_v56 = vpop.f32.mrf.mxu1  ;;  %v3680_v29 = vpop.f32.mrf.mxu0  ;;  %v6350_v21 = vunpack.c.l.bf16 %v6847_v26  ;;  %v6414_v4 = vunpack.c.l.bf16 %v6863_v48 }
 0xca2   :  { %7252 = vmatpush3.msra.mxu1 %v6354_v61  ;;  %7302 = vmatpush3.msra.mxu0 %v6418_v49  ;;  %v3572_v61 = vadd.f32 %v3571_v23, %v9353_v54  ;;  %v3673_v49 = vadd.f32 %v3672_v14, %v9356_v17  ;;  %v9443_v23 = vld [vmem:[%s10154_s8] sm:$0xf]  ;;  %v3580_v14 = vadd.f32 %v3579_v56, %v9359_v10  ;;  %v6853_v10 = vld [vmem:[%s10155_s9 + $0x50] sm:$0xff]  }
 0xca3   :  { %3915 = vmatprep.mubr.f32.mxu1 %v3696_v43  ;;  %4010 = vmatprep.mubr.f32.mxu0 %v3698_v55  ;;  %v6379_v43 = vunpack.c.h.bf16 %v6854_v15  ;;  %v6443_v55 = vunpack.c.h.bf16 %v6870_v40  ;;  %v3681_v26 = vadd.f32 %v3680_v29, %v9362_v47  ;;  %v9449_v48 = vrot.slane %v9443_v23, %v8835_v60  ;;  %v6869_v47 = vld [vmem:[%s10155_s9 + $0xd0] sm:$0xff]  }
 0xca4   :  { %7253 = vmatprep.subr.mxu1 %v6383_v18  ;;  %7303 = vmatprep.subr.mxu0 %v6447_v16  ;;  %v6347_v18 = vunpack.c.h.bf16 %v6846_v30  ;;  %v6411_v16 = vunpack.c.h.bf16 %v6862_v0  ;;  %v3699_v25 = vmax.f32 %v3572_v61, 0.0  ;;  %v3701_v32 = vmax.f32 %v3673_v49, 0.0  ;;  %v6845_v29 = vld [vmem:[%s10155_s9 + $0x10] sm:$0xff]  }
 0xca5   :  { %3916 = vmatmul.mubr.f32.gmra.mxu1 %v3695_v63  ;;  %4011 = vmatmul.mubr.f32.gmra.mxu0 %v3697_v35  ;;  %v9459_v63 = vrot.slane %v9443_v23, %v9065_v24  ;;  %v6346_v35 = vunpack.c.l.bf16 %v6846_v30  ;;  %v3706_v56 = vmax.f32 %v3681_v26, 0.0  ;;  %v6439_v61 = vunpack.c.h.bf16 %v6869_v47  ;;  %v6852_v30 = vld [vmem:[%s10155_s9 + $0x48] sm:$0xff]  }
 0xca6   :  { %7254 = vmatpush3.msra.mxu1 %v6351_v28  ;;  %7304 = vmatpush3.msra.mxu0 %v6415_v52  ;;  %v6378_v28 = vunpack.c.l.bf16 %v6854_v15  ;;  %v6442_v52 = vunpack.c.l.bf16 %v6870_v40  ;;  %v3679_v15 = vadd.f32 %v3678_v22, %v9356_v17  ;;  %v3704_v40 = vmax.f32 %v3580_v14, 0.0 }
 0xca7   :  { %7255 = vmatprep.subr.mxu1 %v6382_v12  ;;  %7305 = vmatprep.subr.mxu0 %v6446_v36  ;;  %v6410_v12 = vunpack.c.l.bf16 %v6862_v0  ;;  %v3578_v36 = vadd.f32 %v3577_v57, %v9353_v54  ;;  %v3148_v54 = vadd.f32 %v9305_v37, %v9449_v48  ;;  %v3249_v17 = vadd.f32 %v9307_v19, %v9459_v63  ;;  %v6868_v37 = vld [vmem:[%s10155_s9 + $0xc8] sm:$0xff]  }
 0xca8   :  { %7256 = vmatpush3.msra.mxu1 %v6350_v21  ;;  %7306 = vmatpush3.msra.mxu0 %v6414_v4  ;;  %v6861_v21 = vld [vmem:[%s10155_s9 + $0x90] sm:$0xff]   ;;  %v6375_v4 = vunpack.c.h.bf16 %v6853_v10  ;;  %v6343_v57 = vunpack.c.h.bf16 %v6845_v29  ;;  %v6438_v19 = vunpack.c.l.bf16 %v6869_v47  ;;  %v6844_v0 = vld [vmem:[%s10155_s9 + $0x8] sm:$0xff]   ;;  %v6342_v14 = vunpack.c.l.bf16 %v6845_v29 }
 0xca9   :  { %3920 = vmatprep.mubr.f32.mxu1 %v3700_v31  ;;  %4015 = vmatprep.mubr.f32.mxu0 %v3702_v44  ;;  %v6407_v22 = vunpack.c.h.bf16 %v6861_v21  ;;  %v3703_v49 = vmax.f32 %v3578_v36, 0.0  ;;  %v3705_v31 = vmax.f32 %v3679_v15, 0.0  ;;  %v6374_v44 = vunpack.c.l.bf16 %v6853_v10  ;;  %v6867_v10 = vld [vmem:[%s10155_s9 + $0xc0] sm:$0xff]  }
 0xcaa   :  { %7257 = vmatprep.subr.mxu1 %v6379_v43  ;;  %7307 = vmatprep.subr.mxu0 %v6443_v55  ;;  %v6860_v43 = vld [vmem:[%s10155_s9 + $0x88] sm:$0xff]   ;;  %v3282_v55 = vmax.f32 %v3148_v54, 0.0  ;;  %v6406_v26 = vunpack.c.l.bf16 %v6861_v21  ;;  %v9493_v47 = vrot.slane %v9443_v23, %v8827_v6  ;;  %v6434_v36 = vunpack.c.l.bf16 %v6868_v37  ;;  %v6333_v15 = vld [vmem:[%s10155_s9] sm:$0xff]  }
 0xcab   :  { %3921 = vmatmul.mubr.f32.gmra.mxu1 %v3699_v25  ;;  %4016 = vmatmul.mubr.f32.gmra.mxu0 %v3701_v32  ;;  %v6435_v25 = vunpack.c.h.bf16 %v6868_v37  ;;  %v6339_v32 = vunpack.c.h.bf16 %v6844_v0  ;;  %v6402_v29 = vunpack.c.l.bf16 %v6860_v43  ;;  %v6431_v21 = vunpack.c.h.bf16 %v6867_v10 }
 0xcac   :  { %7258 = vmatpush3.msra.mxu1 %v6347_v18  ;;  %7308 = vmatpush3.msra.mxu0 %v6411_v16  ;;  %v3284_v18 = vmax.f32 %v3249_v17, 0.0  ;;  %v6371_v16 = vunpack.c.h.bf16 %v6852_v30  ;;  %v3146_v54 = vadd.f32 %v9301_v34, %v9493_v47  ;;  %v3255_v34 = vadd.f32 %v9315_v3, %v9459_v63 }
 0xcad   :  { %7259 = vmatprep.subr.mxu1 %v6378_v28  ;;  %7309 = vmatprep.subr.mxu0 %v6442_v52  ;;  %v6403_v28 = vunpack.c.h.bf16 %v6860_v43  ;;  %v6851_v52 = vld [vmem:[%s10155_s9 + $0x40] sm:$0xff]  }
 0xcae   :  { %7260 = vmatpush3.msra.mxu1 %v6346_v35  ;;  %7310 = vmatpush3.msra.mxu0 %v6410_v12  ;;  %v9497_v35 = vrot.slane %v9443_v23, %v9062_v38  ;;  %v6370_v12 = vunpack.c.l.bf16 %v6852_v30  ;;  %v6367_v23 = vunpack.c.h.bf16 %v6851_v52 }
 0xcaf   :  { %3925 = vmatprep.mubr.f32.mxu1 %v3704_v40  ;;  %4020 = vmatprep.mubr.f32.mxu0 %v3706_v56  ;;  %v6859_v40 = vld [vmem:[%s10155_s9 + $0x80] sm:$0xff]   ;;  %v6338_v56 = vunpack.c.l.bf16 %v6844_v0 }
 0xcb0   :  { %7261 = vmatprep.subr.mxu1 %v6375_v4  ;;  %7311 = vmatprep.subr.mxu0 %v6439_v61  ;;  %v6335_v4 = vunpack.c.h.bf16 %v6333_v15  ;;  %v6399_v61 = vunpack.c.h.bf16 %v6859_v40  ;;  %v3247_v17 = vadd.f32 %v9303_v33, %v9497_v35  ;;  %v6334_v33 = vunpack.c.l.bf16 %v6333_v15 }
 0xcb1   :  { %3926 = vmatmul.mubr.f32.gmra.mxu1 %v3703_v49  ;;  %4021 = vmatmul.mubr.f32.gmra.mxu0 %v3705_v31  ;;  %v6153_v49 = vld [vmem:[%s10153_s7 + $0xb0] sm:$0xff]  ;;  %v6154_v31 = vld [vmem:[%s10153_s7 + $0xb8] sm:$0xff]  ;;  %v6398_v30 = vunpack.c.l.bf16 %v6859_v40  ;;  %v3253_v3 = vadd.f32 %v9311_v2, %v9497_v35  ;;  %v3158_v15 = vadd.f32 %v9317_v41, %v9493_v47  ;;  %v3267_v41 = vadd.f32 %v9331_v8, %v9459_v63  ;;  %v6147_v8 = vld [vmem:[%s10153_s7 + $0x80] sm:$0xff] }
 0xcb2   :  { %7262 = vmatpush3.msra.mxu1 %v6343_v57  ;;  %7312 = vmatpush3.msra.mxu0 %v6407_v22  ;;  %v6366_v57 = vunpack.c.l.bf16 %v6851_v52  ;;  %v6430_v22 = vunpack.c.l.bf16 %v6867_v10  ;;  %v4237_v37 = vunpack.c.l.bf16 %v6153_v49  ;;  %v4239_v0 = vunpack.c.l.bf16 %v6154_v31  ;;  %v6150_v40 = vld [vmem:[%s10153_s7 + $0x98] sm:$0xff] }
 0xcb3   :  { %7263 = vmatprep.subr.mxu1 %v6374_v44  ;;  %4090 = vmatprep.mubr.f32.mxu1 %v3282_v55  ;;  %v3154_v44 = vadd.f32 %v9313_v39, %v9449_v48  ;;  %v4240_v43 = vunpack.c.h.bf16 %v6154_v31  ;;  %v3281_v55 = vmax.f32 %v3146_v54, 0.0  ;;  %v3152_v39 = vadd.f32 %v9309_v7, %v9493_v47 }
 0xcb4   :  { %7313 = vmatprep.subr.mxu0 %v6438_v19  ;;  %4185 = vmatprep.mubr.f32.mxu0 %v3284_v18  ;;  %v4238_v19 = vunpack.c.h.bf16 %v6153_v49  ;;  %v6152_v18 = vld [vmem:[%s10153_s7 + $0xa8] sm:$0xff]  ;;  %v3261_v7 = vadd.f32 %v9323_v50, %v9459_v63  ;;  %v6149_v50 = vld [vmem:[%s10153_s7 + $0x90] sm:$0xff]  ;;  %v3289_v54 = vmax.f32 %v3158_v15, 0.0  ;;  %v3296_v31 = vmax.f32 %v3267_v41, 0.0 }
 0xcb5   :  { %7264 = vmatpush3.msra.mxu1 %v6342_v14  ;;  %7314 = vmatpush3.msra.mxu0 %v6406_v26  ;;  %v3283_v14 = vmax.f32 %v3247_v17, 0.0  ;;  %v6151_v26 = vld [vmem:[%s10153_s7 + $0xa0] sm:$0xff]  ;;  %v4235_v52 = vunpack.c.l.bf16 %v6152_v18  ;;  %v4236_v10 = vunpack.c.h.bf16 %v6152_v18  ;;  %v6922_v18 = vld [vmem:[%s10155_s9 + $0x278] sm:$0xff]  }
 0xcb6   :  { %7265 = vmatprep.subr.mxu1 %v6371_v16  ;;  %7315 = vmatprep.subr.mxu0 %v6435_v25  ;;  %v3286_v16 = vmax.f32 %v3154_v44, 0.0  ;;  %v3288_v25 = vmax.f32 %v3255_v34, 0.0  ;;  %v4233_v2 = vunpack.c.l.bf16 %v6151_v26  ;;  %v3172_v44 = vadd.f32 %v9337_v13, %v9449_v48 }
 0xcb7   :  { %7266 = vmatpush3.msra.mxu1 %v6339_v32  ;;  %7316 = vmatpush3.msra.mxu0 %v6403_v28  ;;  %v3160_v32 = vadd.f32 %v9321_v45, %v9449_v48  ;;  %v4234_v28 = vunpack.c.h.bf16 %v6151_v26  ;;  %v3259_v45 = vadd.f32 %v9319_v62, %v9497_v35  ;;  %v4229_v62 = vunpack.c.l.bf16 %v6149_v50 }
 0xcb8   :  { %7267 = vmatprep.subr.mxu1 %v6370_v12  ;;  %7317 = vmatprep.subr.mxu0 %v6434_v36  ;;  %v3285_v12 = vmax.f32 %v3152_v39, 0.0  ;;  %v3287_v36 = vmax.f32 %v3253_v3, 0.0  ;;  %v4226_v34 = vunpack.c.h.bf16 %v6147_v8  ;;  %v3271_v13 = vadd.f32 %v9335_v9, %v9497_v35 }
 0xcb9   :  { %7268 = vmatpush3.msra.mxu1 %v6338_v56  ;;  %7318 = vmatpush3.msra.mxu0 %v6402_v29  ;;  %v3290_v56 = vmax.f32 %v3160_v32, 0.0  ;;  %v3292_v29 = vmax.f32 %v3261_v7, 0.0  ;;  %v3291_v17 = vmax.f32 %v3259_v45, 0.0  ;;  %v3176_v9 = vadd.f32 %v9344_v27, %v9493_v47  ;;  %v10184_v27 = vld [vmem:[#allocation6_spill] sm:$0xff]  ;;  %v6921_v45 = vld [vmem:[%s10155_s9 + $0x270] sm:$0xff]  }
 0xcba   :  { %7269 = vmatprep.subr.mxu1 %v6367_v23  ;;  %7319 = vmatprep.subr.mxu0 %v6431_v21  ;;  %v3166_v23 = vadd.f32 %v9329_v42, %v9449_v48  ;;  %v4230_v21 = vunpack.c.h.bf16 %v6149_v50  ;;  %v3265_v42 = vadd.f32 %v9327_v59, %v9497_v35  ;;  %v4225_v59 = vunpack.c.l.bf16 %v6147_v8  ;;  %v6914_v7 = vld [vmem:[%s10155_s9 + $0x238] sm:$0xff]   ;;  %v6937_v50 = vld [vmem:[%s10155_s9 + $0x2f0] sm:$0xff]  }
 0xcbb   :  { %7270 = vmatpush3.msra.mxu1 %v6335_v4  ;;  %7320 = vmatpush3.msra.mxu0 %v6399_v61  ;;  %v4231_v4 = vunpack.c.l.bf16 %v6150_v40  ;;  %v4232_v61 = vunpack.c.h.bf16 %v6150_v40  ;;  %v3299_v39 = vmax.f32 %v3271_v13, 0.0  ;;  %v3277_v3 = vadd.f32 %v9346_v5, %v9497_v35  ;;  %v10185_v5 = vld [vmem:[#allocation7_spill] sm:$0xff]  ;;  %v10187_v35 = vld [vmem:[#allocation9_spill] sm:$0xff] }
 0xcbc   :  { %7271 = vmatprep.subr.mxu1 %v6366_v57  ;;  %7321 = vmatprep.subr.mxu0 %v6430_v22  ;;  %v3164_v57 = vadd.f32 %v9325_v58, %v9493_v47  ;;  %v6148_v22 = vld [vmem:[%s10153_s7 + $0x88] sm:$0xff]  ;;  %v3294_v49 = vmax.f32 %v3166_v23, 0.0  ;;  %v3273_v58 = vadd.f32 %v9339_v46, %v9459_v63  ;;  %v3298_v46 = vmax.f32 %v3172_v44, 0.0  ;;  %v6929_v23 = vld [vmem:[%s10155_s9 + $0x2b0] sm:$0xff]   ;;  %v6911_v13 = vld [vmem:[%s10155_s9 + $0x220] sm:$0xff]  }
 0xcbd   :  { %7272 = vmatpush3.msra.mxu1 %v6334_v33  ;;  %7322 = vmatpush3.msra.mxu0 %v6398_v30  ;;  %v4227_v33 = vunpack.c.l.bf16 %v6148_v22  ;;  %v4228_v30 = vunpack.c.h.bf16 %v6148_v22  ;;  %v10183_v26 = vmov 0.0   ;;  %v6647_v40 = vunpack.c.h.bf16 %v6921_v45  ;;  %v6912_v22 = vld [vmem:[%s10155_s9 + $0x228] sm:$0xff]  }
 0xcbe   :  { %4091 = vmatmul.mubr.f32.vlgmr.msra.gmra.mxu1 %v3281_v55  ;;  %4186 = vmatmul.mubr.f32.vlgmr.msra.gmra.mxu0 %v3283_v14  ;;  %v3178_v55 = vadd.f32 %v9348_v51, %v9449_v48  ;;  %v3279_v14 = vadd.f32 %v9350_v53, %v9459_v63  ;;  %v3301_v53 = vmax.f32 %v3176_v9, 0.0  ;;  %v3303_v63 = vmax.f32 %v3277_v3, 0.0  ;;  %v6918_v3 = vld [vmem:[%s10155_s9 + $0x258] sm:$0xff]  }
 0xcbf   :  { %4095 = vmatprep.mubr.f32.mxu1 %v3286_v16  ;;  %4190 = vmatprep.mubr.f32.mxu0 %v3288_v25  ;;  %v6938_v16 = vld [vmem:[%s10155_s9 + $0x2f8] sm:$0xff]   ;;  %v6651_v25 = vunpack.c.h.bf16 %v6922_v18 }
 0xcc0   :  { %4288 = vmatprep.subr.mxu1 %v4238_v19  ;;  %4389 = vmatprep.subr.mxu0 %v4240_v43  ;;  %v3295_v19 = vmax.f32 %v3265_v42, 0.0  ;;  %v3300_v43 = vmax.f32 %v3273_v58, 0.0  ;;  %v3302_v51 = vmax.f32 %v3178_v55, 0.0  ;;  %v3304_v48 = vmax.f32 %v3279_v14, 0.0 }
 0xcc1   :  { %4289 = vmatpush1.msra.mxu1 %v4237_v37  ;;  %4390 = vmatpush1.msra.mxu0 %v4239_v0  ;;  %v3293_v37 = vmax.f32 %v3164_v57, 0.0  ;;  %v3170_v0 = vadd.f32 %v9333_v20, %v9493_v47  ;;  %v10186_v47 = vld [vmem:[#allocation8_spill] sm:$0xff]  ;;  %v6715_v32 = vunpack.c.h.bf16 %v6938_v16 }
 0xcc2   :  { %4096 = vmatmul.mubr.f32.gmra.mxu1 %v3285_v12  ;;  %4191 = vmatmul.mubr.f32.gmra.mxu0 %v3287_v36  ;;  %v6714_v12 = vunpack.c.l.bf16 %v6938_v16  ;;  %v6618_v36 = vunpack.c.l.bf16 %v6914_v7  ;;  %v6936_v57 = vld [vmem:[%s10155_s9 + $0x2e8] sm:$0xff]  }
 0xcc3   :  { %4100 = vmatprep.mubr.f32.mxu1 %v3290_v56  ;;  %4195 = vmatprep.mubr.f32.mxu0 %v3292_v29  ;;  %v3297_v20 = vmax.f32 %v3170_v0, 0.0  ;;  %v6711_v56 = vunpack.c.h.bf16 %v6937_v50  ;;  %v6913_v29 = vld [vmem:[%s10155_s9 + $0x230] sm:$0xff]   ;;  %v6707_v8 = vunpack.c.h.bf16 %v6936_v57 }
 0xcc4   :  { %4290 = vmatprep.subr.mxu1 %v4234_v28  ;;  %4391 = vmatprep.subr.mxu0 %v4236_v10  ;;  %v6619_v28 = vunpack.c.h.bf16 %v6914_v7  ;;  %v6650_v10 = vunpack.c.l.bf16 %v6922_v18  ;;  %v6615_v41 = vunpack.c.h.bf16 %v6913_v29  ;;  %v6926_v18 = vld [vmem:[%s10155_s9 + $0x298] sm:$0xff]  }
 0xcc5   :  { %4291 = vmatpush1.msra.mxu1 %v4233_v2  ;;  %4392 = vmatpush1.msra.mxu0 %v4235_v52  ;;  %v6930_v2 = vld [vmem:[%s10155_s9 + $0x2b8] sm:$0xff]  }
 0xcc6   :  { %4101 = vmatmul.mubr.f32.gmra.mxu1 %v3289_v54  ;;  %4196 = vmatmul.mubr.f32.gmra.mxu0 %v3291_v17  ;;  %v6683_v52 = vunpack.c.h.bf16 %v6930_v2  ;;  %v6682_v15 = vunpack.c.l.bf16 %v6930_v2  ;;  %v6678_v54 = vunpack.c.l.bf16 %v6929_v23  ;;  %v6920_v17 = vld [vmem:[%s10155_s9 + $0x268] sm:$0xff]  }
 0xcc7   :  { %4105 = vmatprep.mubr.f32.mxu1 %v3294_v49  ;;  %4200 = vmatprep.mubr.f32.mxu0 %v3296_v31  ;;  %v6643_v42 = vunpack.c.h.bf16 %v6920_v17  ;;  %v6928_v49 = vld [vmem:[%s10155_s9 + $0x2a8] sm:$0xff]   ;;  %v6611_v31 = vunpack.c.h.bf16 %v6912_v22  ;;  %v6642_v58 = vunpack.c.l.bf16 %v6920_v17 }
 0xcc8   :  { %4292 = vmatprep.subr.mxu1 %v4230_v21  ;;  %4393 = vmatprep.subr.mxu0 %v4232_v61  ;;  %v6646_v21 = vunpack.c.l.bf16 %v6921_v45  ;;  %v6614_v61 = vunpack.c.l.bf16 %v6913_v29  ;;  %v6675_v44 = vunpack.c.h.bf16 %v6928_v49  ;;  %v6925_v45 = vld [vmem:[%s10155_s9 + $0x290] sm:$0xff]   ;;  %v6924_v17 = vld [vmem:[%s10155_s9 + $0x288] sm:$0xff]  }
 0xcc9   :  { %4293 = vmatpush1.msra.mxu1 %v4229_v62  ;;  %4394 = vmatpush1.msra.mxu0 %v4231_v4  ;;  %v6679_v62 = vunpack.c.h.bf16 %v6929_v23  ;;  %v6710_v4 = vunpack.c.l.bf16 %v6937_v50 }
 0xcca   :  { %4106 = vmatmul.mubr.f32.gmra.mxu1 %v3293_v37  ;;  %4201 = vmatmul.mubr.f32.gmra.mxu0 %v3295_v19  ;;  %v6935_v37 = vld [vmem:[%s10155_s9 + $0x2e0] sm:$0xff]  }
 0xccb   :  { %4110 = vmatprep.mubr.f32.mxu1 %v3298_v46  ;;  %4205 = vmatprep.mubr.f32.mxu0 %v3300_v43  ;;  %v6703_v0 = vunpack.c.h.bf16 %v6935_v37  ;;  %v6927_v46 = vld [vmem:[%s10155_s9 + $0x2a0] sm:$0xff]   ;;  %v6607_v43 = vunpack.c.h.bf16 %v6911_v13 }
 0xccc   :  { %4294 = vmatprep.subr.mxu1 %v4226_v34  ;;  %4395 = vmatprep.subr.mxu0 %v4228_v30  ;;  %v6610_v34 = vunpack.c.l.bf16 %v6912_v22  ;;  %v6919_v30 = vld [vmem:[%s10155_s9 + $0x260] sm:$0xff]   ;;  %v6671_v55 = vunpack.c.h.bf16 %v6927_v46  ;;  %v6670_v9 = vunpack.c.l.bf16 %v6927_v46 }
 0xccd   :  { %4295 = vmatpush1.msra.mxu1 %v4225_v59  ;;  %4396 = vmatpush1.msra.mxu0 %v4227_v33  ;;  %v6706_v59 = vunpack.c.l.bf16 %v6936_v57  ;;  %v6674_v33 = vunpack.c.l.bf16 %v6928_v49  ;;  %v6639_v19 = vunpack.c.h.bf16 %v6919_v30  ;;  %v6638_v14 = vunpack.c.l.bf16 %v6919_v30  ;;  %v6923_v30 = vld [vmem:[%s10155_s9 + $0x280] sm:$0xff]  }
 0xcce   :  { %4111 = vmatmul.mubr.f32.gmra.mxu1 %v3297_v20  ;;  %4206 = vmatmul.mubr.f32.gmra.mxu0 %v3299_v39  ;;  %v6702_v20 = vunpack.c.l.bf16 %v6935_v37  ;;  %v6606_v39 = vunpack.c.l.bf16 %v6911_v13 }
 0xccf   :  { %4115 = vmatprep.mubr.f32.mxu1 %v3302_v51  ;;  %4210 = vmatprep.mubr.f32.mxu0 %v3304_v48  ;;  %v6934_v51 = vld [vmem:[%s10155_s9 + $0x2d8] sm:$0xff]   ;;  %v6635_v48 = vunpack.c.h.bf16 %v6918_v3 }
 0xcd0   :  { %7341 = vmatprep.subr.mxu1 %v6651_v25  ;;  %7391 = vmatprep.subr.mxu0 %v6715_v32  ;;  %v6667_v25 = vunpack.c.h.bf16 %v6926_v18  ;;  %v6634_v32 = vunpack.c.l.bf16 %v6918_v3  ;;  %v6698_v7 = vunpack.c.l.bf16 %v6934_v51 }
 0xcd2   :  { %4116 = vmatmul.mubr.f32.gmra.mxu1 %v3301_v53  ;;  %4211 = vmatmul.mubr.f32.gmra.mxu0 %v3303_v63  ;;  %v6699_v53 = vunpack.c.h.bf16 %v6934_v51  ;;  %v6910_v63 = vld [vmem:[%s10155_s9 + $0x218] sm:$0xff]  }
 0xcd3   :  { %4328 = vmatprep.mubr.f32.mxu1 %v10183_v26  ;;  %4429 = vmatprep.mubr.f32.mxu0 %v10183_v26  ;;  %v6603_v16 = vunpack.c.h.bf16 %v6910_v63  ;;  %v6602_v2 = vunpack.c.l.bf16 %v6910_v63 }
 0xcd6   :  { %6156 = vmatmul.mubr.msk.f32.vlgmr.msra.gmra.mxu1 %vm64_vm0, %v9086_v11  ;;  %6162 = vmatmul.mubr.msk.f32.vlgmr.msra.gmra.mxu0 %vm64_vm0, %v9086_v11 }
 0xcd7   :  { %4334 = vmatprep.mubr.f32.mxu1 %v10183_v26  ;;  %4435 = vmatprep.mubr.f32.mxu0 %v10183_v26 }
 0xcd8   :  { %7342 = vmatpush3.msra.mxu1 %v6619_v28  ;;  %7392 = vmatpush3.msra.mxu0 %v6683_v52  ;;  %v6666_v28 = vunpack.c.l.bf16 %v6926_v18  ;;  %v6917_v52 = vld [vmem:[%s10155_s9 + $0x250] sm:$0xff]  }
 0xcd9   :  { %7343 = vmatprep.subr.mxu1 %v6650_v10  ;;  %7393 = vmatprep.subr.mxu0 %v6714_v12  ;;  %v6933_v10 = vld [vmem:[%s10155_s9 + $0x2d0] sm:$0xff]   ;;  %v6631_v12 = vunpack.c.h.bf16 %v6917_v52 }
 0xcda   :  { %6157 = vmatmul.mubr.msk.f32.gmra.mxu1 %vm64_vm0, %v9101_v1  ;;  %6163 = vmatmul.mubr.msk.f32.gmra.mxu0 %vm64_vm0, %v9101_v1  ;;  %v6694_v29 = vunpack.c.l.bf16 %v6933_v10 }
 0xcdb   :  { %4340 = vmatprep.mubr.f32.mxu1 %v10183_v26  ;;  %4441 = vmatprep.mubr.f32.mxu0 %v10183_v26 }
 0xcdc   :  { %7344 = vmatpush3.msra.mxu1 %v6618_v36  ;;  %7394 = vmatpush3.msra.mxu0 %v6682_v15  ;;  %v6695_v36 = vunpack.c.h.bf16 %v6933_v10  ;;  %v6909_v15 = vld [vmem:[%s10155_s9 + $0x210] sm:$0xff]  }
 0xcdd   :  { %7345 = vmatprep.subr.mxu1 %v6647_v40  ;;  %7395 = vmatprep.subr.mxu0 %v6711_v56  ;;  %v6599_v50 = vunpack.c.h.bf16 %v6909_v15  ;;  %v6663_v40 = vunpack.c.h.bf16 %v6925_v45  ;;  %v6630_v56 = vunpack.c.l.bf16 %v6917_v52  ;;  %v6598_v23 = vunpack.c.l.bf16 %v6909_v15 }
 0xcde   :  { %6158 = vmatmul.mubr.msk.f32.gmra.mxu1 %vm64_vm0, %v10184_v27  ;;  %6164 = vmatmul.mubr.msk.f32.gmra.mxu0 %vm64_vm0, %v10184_v27 }
 0xcdf   :  { %4346 = vmatprep.mubr.f32.mxu1 %v10183_v26  ;;  %4447 = vmatprep.mubr.f32.mxu0 %v10183_v26 }
 0xce0   :  { %7346 = vmatpush3.msra.mxu1 %v6615_v41  ;;  %7396 = vmatpush3.msra.mxu0 %v6679_v62  ;;  %v6662_v41 = vunpack.c.l.bf16 %v6925_v45  ;;  %v6916_v62 = vld [vmem:[%s10155_s9 + $0x248] sm:$0xff]  }
 0xce1   :  { %7347 = vmatprep.subr.mxu1 %v6646_v21  ;;  %7397 = vmatprep.subr.mxu0 %v6710_v4  ;;  %v6932_v21 = vld [vmem:[%s10155_s9 + $0x2c8] sm:$0xff]   ;;  %v6627_v4 = vunpack.c.h.bf16 %v6916_v62 }
 0xce2   :  { %6159 = vmatmul.mubr.msk.f32.gmra.mxu1 %vm64_vm0, %v10185_v5  ;;  %6165 = vmatmul.mubr.msk.f32.gmra.mxu0 %vm64_vm0, %v10185_v5  ;;  %v6690_v22 = vunpack.c.l.bf16 %v6932_v21 }
 0xce3   :  { %4352 = vmatprep.mubr.f32.mxu1 %v10183_v26  ;;  %4453 = vmatprep.mubr.f32.mxu0 %v10183_v26 }
 0xce4   :  { %7348 = vmatpush3.msra.mxu1 %v6614_v61  ;;  %7398 = vmatpush3.msra.mxu0 %v6678_v54  ;;  %v6691_v61 = vunpack.c.h.bf16 %v6932_v21  ;;  %v6908_v54 = vld [vmem:[%s10155_s9 + $0x208] sm:$0xff]  }
 0xce5   :  { %7349 = vmatprep.subr.mxu1 %v6643_v42  ;;  %7399 = vmatprep.subr.mxu0 %v6707_v8  ;;  %v6595_v57 = vunpack.c.h.bf16 %v6908_v54  ;;  %v6659_v42 = vunpack.c.h.bf16 %v6924_v17  ;;  %v6626_v8 = vunpack.c.l.bf16 %v6916_v62  ;;  %v6594_v49 = vunpack.c.l.bf16 %v6908_v54 }
 0xce6   :  { %6160 = vmatmul.mubr.msk.f32.gmra.mxu1 %vm64_vm0, %v10186_v47  ;;  %6166 = vmatmul.mubr.msk.f32.gmra.mxu0 %vm64_vm0, %v10186_v47 }
 0xce7   :  { %4358 = vmatprep.mubr.f32.mxu1 %v10183_v26  ;;  %4459 = vmatprep.mubr.f32.mxu0 %v10183_v26 }
 0xce8   :  { %7350 = vmatpush3.msra.mxu1 %v6611_v31  ;;  %7400 = vmatpush3.msra.mxu0 %v6675_v44  ;;  %v6658_v31 = vunpack.c.l.bf16 %v6924_v17  ;;  %v6915_v44 = vld [vmem:[%s10155_s9 + $0x240] sm:$0xff]  }
 0xce9   :  { %7351 = vmatprep.subr.mxu1 %v6642_v58  ;;  %7401 = vmatprep.subr.mxu0 %v6706_v59  ;;  %v6931_v58 = vld [vmem:[%s10155_s9 + $0x2c0] sm:$0xff]   ;;  %v6623_v59 = vunpack.c.h.bf16 %v6915_v44 }
 0xcea   :  { %6161 = vmatmul.mubr.msk.f32.gmra.mxu1 %vm64_vm0, %v10187_v35  ;;  %6167 = vmatmul.mubr.msk.f32.gmra.mxu0 %vm64_vm0, %v10187_v35  ;;  %v6686_v13 = vunpack.c.l.bf16 %v6931_v58 }
 0xceb   :  { %7352 = vmatpush3.msra.mxu1 %v6610_v34  ;;  %7402 = vmatpush3.msra.mxu0 %v6674_v33  ;;  %v6687_v34 = vunpack.c.h.bf16 %v6931_v58  ;;  %v6907_v33 = vld [vmem:[%s10155_s9 + $0x200] sm:$0xff]  }
 0xcec   :  { %7353 = vmatprep.subr.mxu1 %v6639_v19  ;;  %7403 = vmatprep.subr.mxu0 %v6703_v0  ;;  %v6591_v37 = vunpack.c.h.bf16 %v6907_v33  ;;  %v6655_v19 = vunpack.c.h.bf16 %v6923_v30  ;;  %v6622_v0 = vunpack.c.l.bf16 %v6915_v44  ;;  %v6590_v46 = vunpack.c.l.bf16 %v6907_v33 }
 0xced   :  { %7354 = vmatpush3.msra.mxu1 %v6607_v43  ;;  %7404 = vmatpush3.msra.mxu0 %v6671_v55  ;;  %v6654_v43 = vunpack.c.l.bf16 %v6923_v30  ;;  %v9708_v55 = vld [vmem:[%s10153_s7 + $0xf0] sm:$0xff] }
 0xcee   :  { %7355 = vmatprep.subr.mxu1 %v6638_v14  ;;  %7405 = vmatprep.subr.mxu0 %v6702_v20  ;;  %v9713_v14 = vld [vmem:[%s10153_s7 + $0xf8] sm:$0xff]  ;;  %v4837_v20 = vunpack.c.h.bf16 %v9708_v55 }
 0xcef   :  { %7356 = vmatpush3.msra.mxu1 %v6606_v39  ;;  %7406 = vmatpush3.msra.mxu0 %v6670_v9  ;;  %v4839_v39 = vunpack.c.h.bf16 %v9713_v14 }
 0xcf0   :  { %7357 = vmatprep.subr.mxu1 %v6635_v48  ;;  %7407 = vmatprep.subr.mxu0 %v6699_v53 }
 0xcf1   :  { %7358 = vmatpush3.msra.mxu1 %v6603_v16  ;;  %7408 = vmatpush3.msra.mxu0 %v6667_v25 }
 0xcf2   :  { %7359 = vmatprep.subr.mxu1 %v6634_v32  ;;  %7409 = vmatprep.subr.mxu0 %v6698_v7 }
 0xcf3   :  { %7360 = vmatpush3.msra.mxu1 %v6602_v2  ;;  %7410 = vmatpush3.msra.mxu0 %v6666_v28 }
 0xcf4   :  { %7361 = vmatprep.subr.mxu1 %v6631_v12  ;;  %7411 = vmatprep.subr.mxu0 %v6695_v36 }
 0xcf5   :  { %7362 = vmatpush3.msra.mxu1 %v6599_v50  ;;  %7412 = vmatpush3.msra.mxu0 %v6663_v40 }
 0xcf6   :  { %7363 = vmatprep.subr.mxu1 %v6630_v56  ;;  %7413 = vmatprep.subr.mxu0 %v6694_v29 }
 0xcf7   :  { %7364 = vmatpush3.msra.mxu1 %v6598_v23  ;;  %7414 = vmatpush3.msra.mxu0 %v6662_v41 }
 0xcf8   :  { %7365 = vmatprep.subr.mxu1 %v6627_v4  ;;  %7415 = vmatprep.subr.mxu0 %v6691_v61 }
 0xcf9   :  { %7366 = vmatpush3.msra.mxu1 %v6595_v57  ;;  %7416 = vmatpush3.msra.mxu0 %v6659_v42 }
 0xcfa   :  { %7367 = vmatprep.subr.mxu1 %v6626_v8  ;;  %7417 = vmatprep.subr.mxu0 %v6690_v22 }
 0xcfb   :  { %7368 = vmatpush3.msra.mxu1 %v6594_v49  ;;  %7418 = vmatpush3.msra.mxu0 %v6658_v31 }
 0xcfc   :  { %7369 = vmatprep.subr.mxu1 %v6623_v59  ;;  %7419 = vmatprep.subr.mxu0 %v6687_v34 }
 0xcfd   :  { %7370 = vmatpush3.msra.mxu1 %v6591_v37  ;;  %7420 = vmatpush3.msra.mxu0 %v6655_v19 }
 0xcfe   :  { %7371 = vmatprep.subr.mxu1 %v6622_v0  ;;  %7421 = vmatprep.subr.mxu0 %v6686_v13 }
 0xcff   :  { %7372 = vmatpush3.msra.mxu1 %v6590_v46  ;;  %7422 = vmatpush3.msra.mxu0 %v6654_v43 }
 0xd00   :  { %4887 = vmatprep.subr.mxu1 %v4837_v20  ;;  %4988 = vmatprep.subr.mxu0 %v4839_v39 }
 0xd53   :  { %v7173_v9 = vpop.f32.mrf.mxu1  ;;  %v7223_v3 = vpop.f32.mrf.mxu0 }
 0xd55   :  { %v7174_v51 = vpop.f32.mrf.mxu1  ;;  %v7224_v48 = vpop.f32.mrf.mxu0 }
 0xd56   :  { %v7175_v53 = vadd.f32 %v7174_v51, %v7173_v9  ;;  %v7225_v63 = vadd.f32 %v7224_v48, %v7223_v3 }
 0xd58   :  { %v3998_v18 = vadd.f32 %v7225_v63, %v7175_v53 }
 0xd59   :  { %v7176_v16 = vpop.f32.mrf.mxu1  ;;  %v7226_v25 = vpop.f32.mrf.mxu0 }
 0xd5b   :  { %v7177_v32 = vpop.f32.mrf.mxu1  ;;  %v7227_v7 = vpop.f32.mrf.mxu0 }
 0xd5c   :  { %v7178_v2 = vadd.f32 %v7177_v32, %v7176_v16  ;;  %v7228_v28 = vadd.f32 %v7227_v7, %v7226_v25 }
 0xd5e   :  { %v4003_v52 = vadd.f32 %v7228_v28, %v7178_v2 }
 0xd5f   :  { %v7179_v10 = vpop.f32.mrf.mxu1  ;;  %v7229_v12 = vpop.f32.mrf.mxu0 }
 0xd61   :  { %v7180_v36 = vpop.f32.mrf.mxu1  ;;  %v7230_v15 = vpop.f32.mrf.mxu0 }
 0xd62   :  { %v7181_v45 = vadd.f32 %v7180_v36, %v7179_v10  ;;  %v7231_v50 = vadd.f32 %v7230_v15, %v7229_v12 }
 0xd64   :  { %v4008_v40 = vadd.f32 %v7231_v50, %v7181_v45 }
 0xd65   :  { %v7182_v56 = vpop.f32.mrf.mxu1  ;;  %v7232_v29 = vpop.f32.mrf.mxu0 }
 0xd67   :  { %v7183_v23 = vpop.f32.mrf.mxu1  ;;  %v7233_v41 = vpop.f32.mrf.mxu0 }
 0xd68   :  { %v7184_v62 = vadd.f32 %v7183_v23, %v7182_v56  ;;  %v7234_v21 = vadd.f32 %v7233_v41, %v7232_v29 }
 0xd6a   :  { %v4013_v4 = vadd.f32 %v7234_v21, %v7184_v62 }
 0xd6b   :  { %v7185_v61 = vpop.f32.mrf.mxu1  ;;  %v7235_v54 = vpop.f32.mrf.mxu0 }
 0xd6d   :  { %v7186_v17 = vpop.f32.mrf.mxu1  ;;  %v7236_v57 = vpop.f32.mrf.mxu0 }
 0xd6e   :  { %v7187_v42 = vadd.f32 %v7186_v17, %v7185_v61  ;;  %v7237_v8 = vadd.f32 %v7236_v57, %v7235_v54  ;;  %v6155_v57 = vld [vmem:[%s10154_s8 + $0x8] sm:$0xf] }
 0xd70   :  { %v4018_v22 = vadd.f32 %v7237_v8, %v7187_v42 }
 0xd71   :  { %v7188_v49 = vpop.f32.mrf.mxu1  ;;  %v7238_v31 = vpop.f32.mrf.mxu0 }
 0xd73   :  { %v7189_v44 = vpop.f32.mrf.mxu1  ;;  %v7239_v58 = vpop.f32.mrf.mxu0 }
 0xd74   :  { %v7190_v59 = vadd.f32 %v7189_v44, %v7188_v49  ;;  %v7240_v34 = vadd.f32 %v7239_v58, %v7238_v31  ;;  %v9729_v44 = vrot.slane %v6155_v57, %v8827_v6 }
 0xd76   :  { %v4023_v33 = vadd.f32 %v7240_v34, %v7190_v59 }
 0xd7e   :  { %v7273_v30 = vpop.f32.mrf.mxu1  ;;  %v7323_v37 = vpop.f32.mrf.mxu0 }
 0xd80   :  { %v7274_v19 = vpop.f32.mrf.mxu1  ;;  %v7324_v0 = vpop.f32.mrf.mxu0 }
 0xd81   :  { %v7275_v13 = vadd.f32 %v7274_v19, %v7273_v30  ;;  %v7325_v46 = vadd.f32 %v7324_v0, %v7323_v37  ;;  %v9737_v30 = vrot.slane %v6155_v57, %v8835_v60  ;;  %v9740_v0 = vrot.slane %v6155_v57, %v9065_v24 }
 0xd82   :  { %v7276_v43 = vpop.f32.mrf.mxu1  ;;  %v7326_v20 = vpop.f32.mrf.mxu0 }
 0xd83   :  { %v4093_v39 = vadd.f32 %v7275_v13, %v3998_v18 }
 0xd84   :  { %v7277_v9 = vpop.f32.mrf.mxu1  ;;  %v7327_v3 = vpop.f32.mrf.mxu0 }
 0xd85   :  { %v9717_v51 = vadd.f32 %v7325_v46, %v4093_v39  ;;  %v7278_v48 = vadd.f32 %v7277_v9, %v7276_v43  ;;  %v7328_v53 = vadd.f32 %v7327_v3, %v7326_v20  ;;  %v6236_v3 = vld [vmem:[%s10153_s7 + $0xe0] sm:$0xff] }
 0xd86   :  { %v7279_v63 = vpop.f32.mrf.mxu1  ;;  %v7329_v16 = vpop.f32.mrf.mxu0 }
 0xd87   :  { %v4098_v25 = vadd.f32 %v7278_v48, %v4003_v52 }
 0xd88   :  { %v7280_v32 = vpop.f32.mrf.mxu1  ;;  %v7330_v7 = vpop.f32.mrf.mxu0 }
 0xd89   :  { %v9719_v2 = vadd.f32 %v7328_v53, %v4098_v25  ;;  %v7281_v28 = vadd.f32 %v7280_v32, %v7279_v63  ;;  %v7331_v10 = vadd.f32 %v7330_v7, %v7329_v16  ;;  %v4838_v25 = vunpack.c.l.bf16 %v9713_v14  ;;  %v6237_v32 = vld [vmem:[%s10153_s7 + $0xe8] sm:$0xff]  ;;  %v6234_v14 = vld [vmem:[%s10153_s7 + $0xd0] sm:$0xff] }
 0xd8a   :  { %v7282_v12 = vpop.f32.mrf.mxu1  ;;  %v7332_v36 = vpop.f32.mrf.mxu0 }
 0xd8b   :  { %v4103_v15 = vadd.f32 %v7281_v28, %v4008_v40 }
 0xd8c   :  { %v7283_v45 = vpop.f32.mrf.mxu1  ;;  %v7333_v18 = vpop.f32.mrf.mxu0 }
 0xd8d   :  { %v9721_v50 = vadd.f32 %v7331_v10, %v4103_v15  ;;  %v7284_v56 = vadd.f32 %v7283_v45, %v7282_v12  ;;  %v7334_v29 = vadd.f32 %v7333_v18, %v7332_v36  ;;  %v4833_v15 = vunpack.c.h.bf16 %v6236_v3 }
 0xd8e   :  { %v7285_v23 = vpop.f32.mrf.mxu1  ;;  %v7335_v41 = vpop.f32.mrf.mxu0 }
 0xd8f   :  { %v4108_v62 = vadd.f32 %v7284_v56, %v4013_v4  ;;  %v9732_v4 = vrot.slane %v6155_v57, %v9062_v38 }
 0xd90   :  { %v7286_v21 = vpop.f32.mrf.mxu1  ;;  %v7336_v52 = vpop.f32.mrf.mxu0 }
 0xd91   :  { %v9723_v61 = vadd.f32 %v7334_v29, %v4108_v62  ;;  %v7287_v54 = vadd.f32 %v7286_v21, %v7285_v23  ;;  %v7337_v17 = vadd.f32 %v7336_v52, %v7335_v41  ;;  %v4835_v41 = vunpack.c.h.bf16 %v6237_v32 }
 0xd92   :  { %v7288_v40 = vpop.f32.mrf.mxu1  ;;  %v7338_v42 = vpop.f32.mrf.mxu0  ;;  %v4832_v52 = vunpack.c.l.bf16 %v6236_v3  ;;  %v6233_v3 = vld [vmem:[%s10153_s7 + $0xc8] sm:$0xff] }
 0xd93   :  { %v4113_v8 = vadd.f32 %v7287_v54, %v4018_v22  ;;  %v6235_v54 = vld [vmem:[%s10153_s7 + $0xd8] sm:$0xff] }
 0xd94   :  { %v7289_v49 = vpop.f32.mrf.mxu1  ;;  %v7339_v31 = vpop.f32.mrf.mxu0 }
 0xd95   :  { %v9734_v58 = vadd.f32 %v7337_v17, %v4113_v8  ;;  %v7290_v59 = vadd.f32 %v7289_v49, %v7288_v40  ;;  %v7340_v34 = vadd.f32 %v7339_v31, %v7338_v42  ;;  %v4834_v8 = vunpack.c.l.bf16 %v6237_v32 }
 0xd96   :  { %v4330_v37 = vpop.f32.mrf.mxu1  ;;  %v4431_v19 = vpop.f32.mrf.mxu0  ;;  %v4829_v49 = vunpack.c.h.bf16 %v6234_v14 }
 0xd97   :  { %v4118_v22 = vadd.f32 %v7290_v59, %v4023_v33  ;;  %v4331_v13 = vadd.f32 %v4330_v37, %v9729_v44  ;;  %v4432_v39 = vadd.f32 %v4431_v19, %v9732_v4  ;;  %v4836_v33 = vunpack.c.l.bf16 %v9708_v55  ;;  %v6232_v19 = vld [vmem:[%s10153_s7 + $0xc0] sm:$0xff] }
 0xd98   :  { %v4332_v46 = vpop.f32.mrf.mxu1  ;;  %v4433_v43 = vpop.f32.mrf.mxu0 }
 0xd99   :  { %v9743_v20 = vadd.f32 %v7340_v34, %v4118_v22  ;;  %v4333_v9 = vadd.f32 %v4332_v46, %v9737_v30  ;;  %v4434_v48 = vadd.f32 %v4433_v43, %v9740_v0  ;;  %v4466_v7 = vmax.f32 %v4331_v13, 0.0 }
 0xd9a   :  { %v4336_v53 = vpop.f32.mrf.mxu1  ;;  %v4437_v63 = vpop.f32.mrf.mxu0  ;;  %v4468_v45 = vmax.f32 %v4432_v39, 0.0  ;;  %v4831_v46 = vunpack.c.h.bf16 %v6235_v54 }
 0xd9b   :  { %v4467_v16 = vmax.f32 %v4333_v9, 0.0  ;;  %v4469_v28 = vmax.f32 %v4434_v48, 0.0  ;;  %v4337_v10 = vadd.f32 %v4336_v53, %v9729_v44  ;;  %v4438_v18 = vadd.f32 %v4437_v63, %v9732_v4 }
 0xd9c   :  { %v4338_v12 = vpop.f32.mrf.mxu1  ;;  %v4439_v36 = vpop.f32.mrf.mxu0  ;;  %v4828_v9 = vunpack.c.l.bf16 %v6234_v14 }
 0xd9d   :  { %v4339_v56 = vadd.f32 %v4338_v12, %v9737_v30  ;;  %v4440_v55 = vadd.f32 %v4439_v36, %v9740_v0  ;;  %4683 = vmatprep.mubr.f32.mxu1 %v4467_v16  ;;  %4778 = vmatprep.mubr.f32.mxu0 %v4469_v28  ;;  %v4470_v17 = vmax.f32 %v4337_v10, 0.0  ;;  %v4472_v31 = vmax.f32 %v4438_v18, 0.0 }
 0xd9e   :  { %v4342_v29 = vpop.f32.mrf.mxu1  ;;  %v4443_v23 = vpop.f32.mrf.mxu0  ;;  %4684 = vmatmul.mubr.f32.vlgmr.msra.gmra.mxu1 %v4466_v7  ;;  %4779 = vmatmul.mubr.f32.vlgmr.msra.gmra.mxu0 %v4468_v45 }
 0xd9f   :  { %v4471_v62 = vmax.f32 %v4339_v56, 0.0  ;;  %v4473_v21 = vmax.f32 %v4440_v55, 0.0  ;;  %4888 = vmatpush1.msra.mxu1 %v4836_v33  ;;  %v4343_v57 = vadd.f32 %v4342_v29, %v9729_v44  ;;  %4989 = vmatpush1.msra.mxu0 %v4838_v25  ;;  %v4444_v59 = vadd.f32 %v4443_v23, %v9732_v4 }
 0xda0   :  { %v4344_v40 = vpop.f32.mrf.mxu1  ;;  %v4445_v42 = vpop.f32.mrf.mxu0  ;;  %4889 = vmatprep.subr.mxu1 %v4833_v15  ;;  %4990 = vmatprep.subr.mxu0 %v4835_v41  ;;  %v4830_v33 = vunpack.c.l.bf16 %v6235_v54  ;;  %v4825_v25 = vunpack.c.h.bf16 %v6232_v19  ;;  %v4827_v15 = vunpack.c.h.bf16 %v6233_v3  ;;  %v4824_v56 = vunpack.c.l.bf16 %v6232_v19 }
 0xda1   :  { %v4345_v34 = vadd.f32 %v4344_v40, %v9737_v30  ;;  %v4446_v37 = vadd.f32 %v4445_v42, %v9740_v0  ;;  %4688 = vmatprep.mubr.f32.mxu1 %v4471_v62  ;;  %4783 = vmatprep.mubr.f32.mxu0 %v4473_v21  ;;  %v4474_v48 = vmax.f32 %v4343_v57, 0.0  ;;  %v4476_v32 = vmax.f32 %v4444_v59, 0.0 }
 0xda2   :  { %v4348_v22 = vpop.f32.mrf.mxu1  ;;  %v4449_v13 = vpop.f32.mrf.mxu0  ;;  %4689 = vmatmul.mubr.f32.gmra.mxu1 %v4470_v17  ;;  %4784 = vmatmul.mubr.f32.gmra.mxu0 %v4472_v31  ;;  %v4826_v41 = vunpack.c.l.bf16 %v6233_v3 }
 0xda3   :  { %v4475_v43 = vmax.f32 %v4345_v34, 0.0  ;;  %v4477_v39 = vmax.f32 %v4446_v37, 0.0  ;;  %4890 = vmatpush1.msra.mxu1 %v4832_v52  ;;  %v4349_v53 = vadd.f32 %v4348_v22, %v9729_v44  ;;  %4991 = vmatpush1.msra.mxu0 %v4834_v8  ;;  %v4450_v7 = vadd.f32 %v4449_v13, %v9732_v4 }
 0xda4   :  { %v4350_v63 = vpop.f32.mrf.mxu1  ;;  %v4451_v16 = vpop.f32.mrf.mxu0  ;;  %4891 = vmatprep.subr.mxu1 %v4829_v49  ;;  %4992 = vmatprep.subr.mxu0 %v4831_v46 }
 0xda5   :  { %v4351_v28 = vadd.f32 %v4350_v63, %v9737_v30  ;;  %v4452_v10 = vadd.f32 %v4451_v16, %v9740_v0  ;;  %4693 = vmatprep.mubr.f32.mxu1 %v4475_v43  ;;  %4788 = vmatprep.mubr.f32.mxu0 %v4477_v39  ;;  %v4478_v55 = vmax.f32 %v4349_v53, 0.0  ;;  %v4480_v62 = vmax.f32 %v4450_v7, 0.0 }
 0xda6   :  { %v4354_v12 = vpop.f32.mrf.mxu1  ;;  %v4455_v36 = vpop.f32.mrf.mxu0  ;;  %4694 = vmatmul.mubr.f32.gmra.mxu1 %v4474_v48  ;;  %4789 = vmatmul.mubr.f32.gmra.mxu0 %v4476_v32  ;;  %v6969_v32 = vld [vmem:[%s10155_s9 + $0x3f0] sm:$0xff]  }
 0xda7   :  { %v4479_v45 = vmax.f32 %v4351_v28, 0.0  ;;  %v4481_v18 = vmax.f32 %v4452_v10, 0.0  ;;  %4892 = vmatpush1.msra.mxu1 %v4828_v9  ;;  %v4355_v14 = vadd.f32 %v4354_v12, %v9729_v44  ;;  %4993 = vmatpush1.msra.mxu0 %v4830_v33  ;;  %v4456_v21 = vadd.f32 %v4455_v36, %v9732_v4  ;;  %v6962_v9 = vld [vmem:[%s10155_s9 + $0x3b8] sm:$0xff]   ;;  %v6945_v10 = vld [vmem:[%s10155_s9 + $0x330] sm:$0xff]  }
 0xda8   :  { %v4356_v29 = vpop.f32.mrf.mxu1  ;;  %v4457_v23 = vpop.f32.mrf.mxu0  ;;  %4893 = vmatprep.subr.mxu1 %v4825_v25  ;;  %4994 = vmatprep.subr.mxu0 %v4827_v15  ;;  %v6811_v48 = vunpack.c.h.bf16 %v6962_v9  ;;  %v6810_v33 = vunpack.c.l.bf16 %v6962_v9  ;;  %v6953_v25 = vld [vmem:[%s10155_s9 + $0x370] sm:$0xff]   ;;  %v6839_v28 = vunpack.c.h.bf16 %v6969_v32  ;;  %v6743_v36 = vunpack.c.h.bf16 %v6945_v10  ;;  %v6958_v9 = vld [vmem:[%s10155_s9 + $0x398] sm:$0xff]  }
 0xda9   :  { %v4357_v52 = vadd.f32 %v4356_v29, %v9737_v30  ;;  %v4458_v54 = vadd.f32 %v4457_v23, %v9740_v0  ;;  %4698 = vmatprep.mubr.f32.mxu1 %v4479_v45  ;;  %4793 = vmatprep.mubr.f32.mxu0 %v4481_v18  ;;  %v4482_v8 = vmax.f32 %v4355_v14, 0.0  ;;  %v4484_v34 = vmax.f32 %v4456_v21, 0.0  ;;  %v6961_v12 = vld [vmem:[%s10155_s9 + $0x3b0] sm:$0xff]   ;;  %v6952_v14 = vld [vmem:[%s10155_s9 + $0x368] sm:$0xff]  }
 0xdaa   :  { %v4360_v17 = vpop.f32.mrf.mxu1  ;;  %v4461_v57 = vpop.f32.mrf.mxu0  ;;  %4699 = vmatmul.mubr.f32.gmra.mxu1 %v4478_v55  ;;  %4794 = vmatmul.mubr.f32.gmra.mxu0 %v4480_v62  ;;  %v6775_v7 = vunpack.c.h.bf16 %v6953_v25  ;;  %v6807_v15 = vunpack.c.h.bf16 %v6961_v12  ;;  %v6774_v45 = vunpack.c.l.bf16 %v6953_v25  ;;  %v6838_v18 = vunpack.c.l.bf16 %v6969_v32  ;;  %v6968_v29 = vld [vmem:[%s10155_s9 + $0x3e8] sm:$0xff]   ;;  %v6949_v25 = vld [vmem:[%s10155_s9 + $0x350] sm:$0xff]  }
 0xdab   :  { %v4483_v40 = vmax.f32 %v4357_v52, 0.0  ;;  %v4485_v42 = vmax.f32 %v4458_v54, 0.0  ;;  %4894 = vmatpush1.msra.mxu1 %v4824_v56  ;;  %v4361_v49 = vadd.f32 %v4360_v17, %v9729_v44  ;;  %4995 = vmatpush1.msra.mxu0 %v4826_v41  ;;  %v4462_v37 = vadd.f32 %v4461_v57, %v9732_v4  ;;  %v6954_v44 = vld [vmem:[%s10155_s9 + $0x378] sm:$0xff]   ;;  %v6944_v62 = vld [vmem:[%s10155_s9 + $0x328] sm:$0xff]   ;;  %v6965_v32 = vld [vmem:[%s10155_s9 + $0x3d0] sm:$0xff]  }
 0xdac   :  { %v4362_v31 = vpop.f32.mrf.mxu1  ;;  %v4463_v59 = vpop.f32.mrf.mxu0  ;;  %v6970_v4 = vld [vmem:[%s10155_s9 + $0x3f8] sm:$0xff]   ;;  %v6778_v53 = vunpack.c.l.bf16 %v6954_v44  ;;  %v6742_v56 = vunpack.c.l.bf16 %v6945_v10  ;;  %v6806_v55 = vunpack.c.l.bf16 %v6961_v12  ;;  %v6771_v23 = vunpack.c.h.bf16 %v6952_v14  ;;  %v6960_v21 = vld [vmem:[%s10155_s9 + $0x3a8] sm:$0xff]   ;;  %v6941_v10 = vld [vmem:[%s10155_s9 + $0x310] sm:$0xff]  }
 0xdad   :  { %v4363_v19 = vadd.f32 %v4362_v31, %v9737_v30  ;;  %v4464_v22 = vadd.f32 %v4463_v59, %v9740_v0  ;;  %4703 = vmatprep.mubr.f32.mxu1 %v4483_v40  ;;  %4798 = vmatprep.mubr.f32.mxu0 %v4485_v42  ;;  %v4486_v43 = vmax.f32 %v4361_v49, 0.0  ;;  %v4488_v39 = vmax.f32 %v4462_v37, 0.0  ;;  %v6967_v49 = vld [vmem:[%s10155_s9 + $0x3e0] sm:$0xff]   ;;  %v6957_v12 = vld [vmem:[%s10155_s9 + $0x390] sm:$0xff]  }
 0xdae   :  { %4704 = vmatmul.mubr.f32.gmra.mxu1 %v4482_v8  ;;  %4799 = vmatmul.mubr.f32.gmra.mxu0 %v4484_v34  ;;  %v6779_v30 = vunpack.c.h.bf16 %v6954_v44  ;;  %v6843_v0 = vunpack.c.h.bf16 %v6970_v4  ;;  %v6842_v63 = vunpack.c.l.bf16 %v6970_v4  ;;  %v6835_v41 = vunpack.c.h.bf16 %v6968_v29  ;;  %v6951_v8 = vld [vmem:[%s10155_s9 + $0x360] sm:$0xff]   ;;  %v6950_v44 = vld [vmem:[%s10155_s9 + $0x358] sm:$0xff]  }
 0xdaf   :  { %v4487_v13 = vmax.f32 %v4363_v19, 0.0  ;;  %v4489_v46 = vmax.f32 %v4464_v22, 0.0  ;;  %v6739_v52 = vunpack.c.h.bf16 %v6944_v62  ;;  %v6803_v54 = vunpack.c.h.bf16 %v6960_v21  ;;  %v6943_v34 = vld [vmem:[%s10155_s9 + $0x320] sm:$0xff]   ;;  %v6966_v4 = vld [vmem:[%s10155_s9 + $0x3d8] sm:$0xff]  }
 0xdb0   :  { %7441 = vmatprep.subr.mxu1 %v6779_v30  ;;  %7491 = vmatprep.subr.mxu0 %v6843_v0  ;;  %v6770_v17 = vunpack.c.l.bf16 %v6952_v14  ;;  %v6834_v57 = vunpack.c.l.bf16 %v6968_v29  ;;  %v6738_v40 = vunpack.c.l.bf16 %v6944_v62  ;;  %v6802_v42 = vunpack.c.l.bf16 %v6960_v21  ;;  %v6959_v37 = vld [vmem:[%s10155_s9 + $0x3a0] sm:$0xff]   ;;  %v6948_v14 = vld [vmem:[%s10155_s9 + $0x348] sm:$0xff]  }
 0xdb1   :  { %4708 = vmatprep.mubr.f32.mxu1 %v4487_v13  ;;  %4803 = vmatprep.mubr.f32.mxu0 %v4489_v46  ;;  %v6767_v31 = vunpack.c.h.bf16 %v6951_v8  ;;  %v6831_v59 = vunpack.c.h.bf16 %v6967_v49  ;;  %v6735_v19 = vunpack.c.h.bf16 %v6943_v34  ;;  %v6799_v22 = vunpack.c.h.bf16 %v6959_v37  ;;  %v6964_v29 = vld [vmem:[%s10155_s9 + $0x3c8] sm:$0xff]  }
 0xdb2   :  { %4709 = vmatmul.mubr.f32.gmra.mxu1 %v4486_v43  ;;  %4804 = vmatmul.mubr.f32.gmra.mxu0 %v4488_v39  ;;  %v6766_v13 = vunpack.c.l.bf16 %v6951_v8  ;;  %v6830_v46 = vunpack.c.l.bf16 %v6967_v49  ;;  %v6734_v43 = vunpack.c.l.bf16 %v6943_v34  ;;  %v6798_v39 = vunpack.c.l.bf16 %v6959_v37  ;;  %v6940_v62 = vld [vmem:[%s10155_s9 + $0x308] sm:$0xff]   ;;  %v6947_v8 = vld [vmem:[%s10155_s9 + $0x340] sm:$0xff]  }
 0xdb3   :  { %4927 = vmatprep.mubr.f32.mxu1 %v10183_v26  ;;  %5028 = vmatprep.mubr.f32.mxu0 %v10183_v26  ;;  %v6763_v30 = vunpack.c.h.bf16 %v6950_v44  ;;  %v6827_v0 = vunpack.c.h.bf16 %v6966_v4  ;;  %v6956_v21 = vld [vmem:[%s10155_s9 + $0x388] sm:$0xff]   ;;  %v6963_v49 = vld [vmem:[%s10155_s9 + $0x3c0] sm:$0xff]  }
 0xdb4   :  { %v6939_v34 = vld [vmem:[%s10155_s9 + $0x300] sm:$0xff]  }
 0xdb5   :  { %v6955_v37 = vld [vmem:[%s10155_s9 + $0x380] sm:$0xff]  }
 0xdb6   :  { %6241 = vmatmul.mubr.msk.f32.vlgmr.msra.gmra.mxu1 %vm64_vm0, %v9086_v11  ;;  %6247 = vmatmul.mubr.msk.f32.vlgmr.msra.gmra.mxu0 %vm64_vm0, %v9086_v11 }
 0xdb7   :  { %4933 = vmatprep.mubr.f32.mxu1 %v10183_v26  ;;  %5034 = vmatprep.mubr.f32.mxu0 %v10183_v26 }
 0xdb8   :  { %7492 = vmatpush3.msra.mxu0 %v6811_v48  ;;  %v6795_v48 = vunpack.c.h.bf16 %v6958_v9 }
 0xdb9   :  { %7493 = vmatprep.subr.mxu0 %v6842_v63  ;;  %v6826_v63 = vunpack.c.l.bf16 %v6966_v4 }
 0xdba   :  { %6242 = vmatmul.mubr.msk.f32.gmra.mxu1 %vm64_vm0, %v9101_v1  ;;  %6248 = vmatmul.mubr.msk.f32.gmra.mxu0 %vm64_vm0, %v9101_v1 }
 0xdbb   :  { %4939 = vmatprep.mubr.f32.mxu1 %v10183_v26  ;;  %5040 = vmatprep.mubr.f32.mxu0 %v10183_v26 }
 0xdbc   :  { %7494 = vmatpush3.msra.mxu0 %v6810_v33  ;;  %v6794_v33 = vunpack.c.l.bf16 %v6958_v9 }
 0xdbd   :  { %7495 = vmatprep.subr.mxu0 %v6839_v28  ;;  %v6823_v28 = vunpack.c.h.bf16 %v6965_v32 }
 0xdbe   :  { %6243 = vmatmul.mubr.msk.f32.gmra.mxu1 %vm64_vm0, %v10184_v27  ;;  %6249 = vmatmul.mubr.msk.f32.gmra.mxu0 %vm64_vm0, %v10184_v27 }
 0xdbf   :  { %4945 = vmatprep.mubr.f32.mxu1 %v10183_v26  ;;  %5046 = vmatprep.mubr.f32.mxu0 %v10183_v26 }
 0xdc0   :  { %7496 = vmatpush3.msra.mxu0 %v6807_v15  ;;  %v6791_v15 = vunpack.c.h.bf16 %v6957_v12 }
 0xdc1   :  { %7497 = vmatprep.subr.mxu0 %v6838_v18  ;;  %v6822_v18 = vunpack.c.l.bf16 %v6965_v32 }
 0xdc2   :  { %6244 = vmatmul.mubr.msk.f32.gmra.mxu1 %vm64_vm0, %v10185_v5  ;;  %6250 = vmatmul.mubr.msk.f32.gmra.mxu0 %vm64_vm0, %v10185_v5 }
 0xdc3   :  { %4951 = vmatprep.mubr.f32.mxu1 %v10183_v26  ;;  %5052 = vmatprep.mubr.f32.mxu0 %v10183_v26 }
 0xdc4   :  { %7498 = vmatpush3.msra.mxu0 %v6806_v55  ;;  %v6790_v55 = vunpack.c.l.bf16 %v6957_v12 }
 0xdc5   :  { %7499 = vmatprep.subr.mxu0 %v6835_v41  ;;  %v6819_v41 = vunpack.c.h.bf16 %v6964_v29 }
 0xdc6   :  { %6245 = vmatmul.mubr.msk.f32.gmra.mxu1 %vm64_vm0, %v10186_v47  ;;  %6251 = vmatmul.mubr.msk.f32.gmra.mxu0 %vm64_vm0, %v10186_v47 }
 0xdc7   :  { %4957 = vmatprep.mubr.f32.mxu1 %v10183_v26  ;;  %5058 = vmatprep.mubr.f32.mxu0 %v10183_v26  ;;  %v6946_v26 = vld [vmem:[%s10155_s9 + $0x338] sm:$0xff]  }
 0xdc8   :  { %v6747_v3 = vunpack.c.h.bf16 %v6946_v26  ;;  %v6746_v16 = vunpack.c.l.bf16 %v6946_v26  ;;  %7500 = vmatpush3.msra.mxu0 %v6803_v54  ;;  %v6942_v26 = vld [vmem:[%s10155_s9 + $0x318] sm:$0xff]   ;;  %v6787_v54 = vunpack.c.h.bf16 %v6956_v21 }
 0xdc9   :  { %7501 = vmatprep.subr.mxu0 %v6834_v57  ;;  %v6818_v57 = vunpack.c.l.bf16 %v6964_v29 }
 0xdca   :  { %6246 = vmatmul.mubr.msk.f32.gmra.mxu1 %vm64_vm0, %v10187_v35  ;;  %6252 = vmatmul.mubr.msk.f32.gmra.mxu0 %vm64_vm0, %v10187_v35 }
 0xdcb   :  { %7442 = vmatpush3.msra.mxu1 %v6747_v3  ;;  %7502 = vmatpush3.msra.mxu0 %v6802_v42  ;;  %v6731_v3 = vunpack.c.h.bf16 %v6942_v26  ;;  %v6786_v42 = vunpack.c.l.bf16 %v6956_v21 }
 0xdcc   :  { %7443 = vmatprep.subr.mxu1 %v6778_v53  ;;  %7503 = vmatprep.subr.mxu0 %v6831_v59  ;;  %v6762_v53 = vunpack.c.l.bf16 %v6950_v44  ;;  %v6815_v59 = vunpack.c.h.bf16 %v6963_v49 }
 0xdcd   :  { %7444 = vmatpush3.msra.mxu1 %v6746_v16  ;;  %7504 = vmatpush3.msra.mxu0 %v6799_v22  ;;  %v6730_v16 = vunpack.c.l.bf16 %v6942_v26  ;;  %v6783_v22 = vunpack.c.h.bf16 %v6955_v37 }
 0xdce   :  { %7445 = vmatprep.subr.mxu1 %v6775_v7  ;;  %7505 = vmatprep.subr.mxu0 %v6830_v46  ;;  %v6759_v7 = vunpack.c.h.bf16 %v6949_v25  ;;  %v6814_v46 = vunpack.c.l.bf16 %v6963_v49 }
 0xdcf   :  { %7446 = vmatpush3.msra.mxu1 %v6743_v36  ;;  %7506 = vmatpush3.msra.mxu0 %v6798_v39  ;;  %v6727_v36 = vunpack.c.h.bf16 %v6941_v10  ;;  %v6782_v39 = vunpack.c.l.bf16 %v6955_v37 }
 0xdd0   :  { %7447 = vmatprep.subr.mxu1 %v6774_v45  ;;  %7507 = vmatprep.subr.mxu0 %v6827_v0  ;;  %v6758_v45 = vunpack.c.l.bf16 %v6949_v25 }
 0xdd1   :  { %7448 = vmatpush3.msra.mxu1 %v6742_v56  ;;  %7508 = vmatpush3.msra.mxu0 %v6795_v48  ;;  %v6726_v56 = vunpack.c.l.bf16 %v6941_v10 }
 0xdd2   :  { %7449 = vmatprep.subr.mxu1 %v6771_v23  ;;  %7509 = vmatprep.subr.mxu0 %v6826_v63  ;;  %v6755_v23 = vunpack.c.h.bf16 %v6948_v14 }
 0xdd3   :  { %7450 = vmatpush3.msra.mxu1 %v6739_v52  ;;  %7510 = vmatpush3.msra.mxu0 %v6794_v33  ;;  %v6723_v52 = vunpack.c.h.bf16 %v6940_v62 }
 0xdd4   :  { %7451 = vmatprep.subr.mxu1 %v6770_v17  ;;  %7511 = vmatprep.subr.mxu0 %v6823_v28  ;;  %v6754_v17 = vunpack.c.l.bf16 %v6948_v14 }
 0xdd5   :  { %7452 = vmatpush3.msra.mxu1 %v6738_v40  ;;  %7512 = vmatpush3.msra.mxu0 %v6791_v15  ;;  %v6722_v40 = vunpack.c.l.bf16 %v6940_v62 }
 0xdd6   :  { %7453 = vmatprep.subr.mxu1 %v6767_v31  ;;  %7513 = vmatprep.subr.mxu0 %v6822_v18  ;;  %v6751_v31 = vunpack.c.h.bf16 %v6947_v8 }
 0xdd7   :  { %7454 = vmatpush3.msra.mxu1 %v6735_v19  ;;  %7514 = vmatpush3.msra.mxu0 %v6790_v55  ;;  %v6719_v19 = vunpack.c.h.bf16 %v6939_v34 }
 0xdd8   :  { %7455 = vmatprep.subr.mxu1 %v6766_v13  ;;  %7515 = vmatprep.subr.mxu0 %v6819_v41  ;;  %v6750_v13 = vunpack.c.l.bf16 %v6947_v8 }
 0xdd9   :  { %7456 = vmatpush3.msra.mxu1 %v6734_v43  ;;  %7516 = vmatpush3.msra.mxu0 %v6787_v54  ;;  %v6718_v43 = vunpack.c.l.bf16 %v6939_v34 }
 0xdda   :  { %7457 = vmatprep.subr.mxu1 %v6763_v30  ;;  %7517 = vmatprep.subr.mxu0 %v6818_v57 }
 0xddb   :  { %7458 = vmatpush3.msra.mxu1 %v6731_v3  ;;  %7518 = vmatpush3.msra.mxu0 %v6786_v42 }
 0xddc   :  { %7459 = vmatprep.subr.mxu1 %v6762_v53  ;;  %7519 = vmatprep.subr.mxu0 %v6815_v59 }
 0xddd   :  { %7460 = vmatpush3.msra.mxu1 %v6730_v16  ;;  %7520 = vmatpush3.msra.mxu0 %v6783_v22 }
 0xdde   :  { %7461 = vmatprep.subr.mxu1 %v6759_v7  ;;  %7521 = vmatprep.subr.mxu0 %v6814_v46 }
 0xddf   :  { %7462 = vmatpush3.msra.mxu1 %v6727_v36  ;;  %7522 = vmatpush3.msra.mxu0 %v6782_v39 }
 0xde0   :  { %7463 = vmatprep.subr.mxu1 %v6758_v45 }
 0xde1   :  { %7464 = vmatpush3.msra.mxu1 %v6726_v56 }
 0xde2   :  { %7465 = vmatprep.subr.mxu1 %v6755_v23 }
 0xde3   :  { %7466 = vmatpush3.msra.mxu1 %v6723_v52 }
 0xde4   :  { %7467 = vmatprep.subr.mxu1 %v6754_v17 }
 0xde5   :  { %7468 = vmatpush3.msra.mxu1 %v6722_v40 }
 0xde6   :  { %7469 = vmatprep.subr.mxu1 %v6751_v31 }
 0xde7   :  { %7470 = vmatpush3.msra.mxu1 %v6719_v19 }
 0xde8   :  { %7471 = vmatprep.subr.mxu1 %v6750_v13 }
 0xde9   :  { %7472 = vmatpush3.msra.mxu1 %v6718_v43 }
 0xe5e   :  { %v7373_v44 = vpop.f32.mrf.mxu1  ;;  %v7423_v4 = vpop.f32.mrf.mxu0 }
 0xe60   :  { %v7374_v30 = vpop.f32.mrf.mxu1  ;;  %v7424_v26 = vpop.f32.mrf.mxu0 }
 0xe61   :  { %v7375_v0 = vadd.f32 %v7374_v30, %v7373_v44  ;;  %v7425_v9 = vadd.f32 %v7424_v26, %v7423_v4 }
 0xe62   :  { %v7376_v3 = vpop.f32.mrf.mxu1  ;;  %v7426_v48 = vpop.f32.mrf.mxu0 }
 0xe63   :  { %v4781_v53 = vadd.f32 %v7425_v9, %v7375_v0 }
 0xe64   :  { %v7377_v63 = vpop.f32.mrf.mxu1  ;;  %v7427_v33 = vpop.f32.mrf.mxu0 }
 0xe65   :  { %v7378_v16 = vadd.f32 %v7377_v63, %v7376_v3  ;;  %v9921_v25 = vadd.f32 %v4781_v53, %v9717_v51  ;;  %v7428_v32 = vadd.f32 %v7427_v33, %v7426_v48 }
 0xe66   :  { %v7379_v7 = vpop.f32.mrf.mxu1  ;;  %v7429_v28 = vpop.f32.mrf.mxu0 }
 0xe67   :  { %v4786_v10 = vadd.f32 %v7428_v32, %v7378_v16 }
 0xe68   :  { %v7380_v12 = vpop.f32.mrf.mxu1  ;;  %v7430_v15 = vpop.f32.mrf.mxu0 }
 0xe69   :  { %v7381_v36 = vadd.f32 %v7380_v12, %v7379_v7  ;;  %v9924_v45 = vadd.f32 %v4786_v10, %v9719_v2  ;;  %v7431_v18 = vadd.f32 %v7430_v15, %v7429_v28  ;;  %v6240_v2 = vld [vmem:[%s10154_s8 + $0xc] sm:$0xf] }
 0xe6a   :  { %v7382_v56 = vpop.f32.mrf.mxu1  ;;  %v7432_v55 = vpop.f32.mrf.mxu0  ;;  %v9936_v34 = vrot.slane %v6240_v2, %v8827_v6  ;;  %v9939_v22 = vrot.slane %v6240_v2, %v9062_v38  ;;  %v9942_v13 = vrot.slane %v6240_v2, %v8835_v60  ;;  %v9948_v39 = vrot.slane %v6240_v2, %v9065_v24 }
 0xe6b   :  { %v4791_v14 = vadd.f32 %v7431_v18, %v7381_v36 }
 0xe6c   :  { %v7383_v29 = vpop.f32.mrf.mxu1  ;;  %v7433_v41 = vpop.f32.mrf.mxu0 }
 0xe6d   :  { %v7384_v23 = vadd.f32 %v7383_v29, %v7382_v56  ;;  %v9927_v51 = vadd.f32 %v4791_v14, %v9721_v50  ;;  %v7434_v62 = vadd.f32 %v7433_v41, %v7432_v55 }
 0xe6e   :  { %v7385_v21 = vpop.f32.mrf.mxu1  ;;  %v7435_v52 = vpop.f32.mrf.mxu0 }
 0xe6f   :  { %v4796_v54 = vadd.f32 %v7434_v62, %v7384_v23 }
 0xe70   :  { %v7386_v17 = vpop.f32.mrf.mxu1  ;;  %v7436_v40 = vpop.f32.mrf.mxu0 }
 0xe71   :  { %v7387_v57 = vadd.f32 %v7386_v17, %v7385_v21  ;;  %v9933_v42 = vadd.f32 %v4796_v54, %v9723_v61  ;;  %v7437_v8 = vadd.f32 %v7436_v40, %v7435_v52 }
 0xe72   :  { %v7388_v49 = vpop.f32.mrf.mxu1  ;;  %v7438_v31 = vpop.f32.mrf.mxu0 }
 0xe73   :  { %v4801_v59 = vadd.f32 %v7437_v8, %v7387_v57 }
 0xe74   :  { %v7389_v50 = vpop.f32.mrf.mxu1  ;;  %v7439_v19 = vpop.f32.mrf.mxu0 }
 0xe75   :  { %v7390_v37 = vadd.f32 %v7389_v50, %v7388_v49  ;;  %v9945_v46 = vadd.f32 %v4801_v59, %v9734_v58  ;;  %v7440_v61 = vadd.f32 %v7439_v19, %v7438_v31 }
 0xe76   :  { %v4929_v43 = vpop.f32.mrf.mxu1  ;;  %v5030_v44 = vpop.f32.mrf.mxu0 }
 0xe77   :  { %v4806_v4 = vadd.f32 %v7440_v61, %v7390_v37  ;;  %v4930_v6 = vadd.f32 %v4929_v43, %v9936_v34  ;;  %v5031_v0 = vadd.f32 %v5030_v44, %v9939_v22 }
 0xe78   :  { %v4931_v30 = vpop.f32.mrf.mxu1  ;;  %v5032_v26 = vpop.f32.mrf.mxu0 }
 0xe79   :  { %v4932_v38 = vadd.f32 %v4931_v30, %v9942_v13  ;;  %v9954_v60 = vadd.f32 %v4806_v4, %v9743_v20  ;;  %v5033_v58 = vadd.f32 %v5032_v26, %v9948_v39  ;;  %v5065_v24 = vmax.f32 %v4930_v6, 0.0 }
 0xe7a   :  { %v4935_v9 = vpop.f32.mrf.mxu1  ;;  %v5036_v48 = vpop.f32.mrf.mxu0  ;;  %v5067_v33 = vmax.f32 %v5031_v0, 0.0 }
 0xe7b   :  { %v5066_v3 = vmax.f32 %v4932_v38, 0.0  ;;  %v5068_v53 = vmax.f32 %v5033_v58, 0.0  ;;  %v4936_v63 = vadd.f32 %v4935_v9, %v9936_v34  ;;  %v5037_v32 = vadd.f32 %v5036_v48, %v9939_v22 }
 0xe7c   :  { %v4937_v16 = vpop.f32.mrf.mxu1  ;;  %v5038_v28 = vpop.f32.mrf.mxu0 }
 0xe7d   :  { %v4938_v7 = vadd.f32 %v4937_v16, %v9942_v13  ;;  %5282 = vmatprep.mubr.f32.mxu1 %v5066_v3  ;;  %v5039_v20 = vadd.f32 %v5038_v28, %v9948_v39  ;;  %5377 = vmatprep.mubr.f32.mxu0 %v5068_v53  ;;  %v5069_v15 = vmax.f32 %v4936_v63, 0.0  ;;  %v5071_v14 = vmax.f32 %v5037_v32, 0.0 }
 0xe7e   :  { %v4941_v10 = vpop.f32.mrf.mxu1  ;;  %5283 = vmatmul.mubr.f32.vlgmr.msra.gmra.mxu1 %v5065_v24  ;;  %v5042_v36 = vpop.f32.mrf.mxu0  ;;  %5378 = vmatmul.mubr.f32.vlgmr.msra.gmra.mxu0 %v5067_v33 }
 0xe7f   :  { %v5070_v12 = vmax.f32 %v4938_v7, 0.0  ;;  %v5072_v18 = vmax.f32 %v5039_v20, 0.0  ;;  %v4942_v56 = vadd.f32 %v4941_v10, %v9936_v34  ;;  %v5043_v29 = vadd.f32 %v5042_v36, %v9939_v22 }
 0xe80   :  { %v4943_v55 = vpop.f32.mrf.mxu1  ;;  %v5044_v41 = vpop.f32.mrf.mxu0 }
 0xe81   :  { %v4944_v23 = vadd.f32 %v4943_v55, %v9942_v13  ;;  %5287 = vmatprep.mubr.f32.mxu1 %v5070_v12  ;;  %v5045_v62 = vadd.f32 %v5044_v41, %v9948_v39  ;;  %5382 = vmatprep.mubr.f32.mxu0 %v5072_v18  ;;  %v5073_v17 = vmax.f32 %v4942_v56, 0.0  ;;  %v5075_v8 = vmax.f32 %v5043_v29, 0.0 }
 0xe82   :  { %v4947_v21 = vpop.f32.mrf.mxu1  ;;  %5288 = vmatmul.mubr.f32.gmra.mxu1 %v5069_v15  ;;  %v5048_v54 = vpop.f32.mrf.mxu0  ;;  %5383 = vmatmul.mubr.f32.gmra.mxu0 %v5071_v14 }
 0xe83   :  { %v5074_v52 = vmax.f32 %v4944_v23, 0.0  ;;  %v5076_v57 = vmax.f32 %v5045_v62, 0.0  ;;  %v4948_v40 = vadd.f32 %v4947_v21, %v9936_v34  ;;  %v5049_v49 = vadd.f32 %v5048_v54, %v9939_v22  ;;  %v6317_v21 = vld [vmem:[%s10156_s10] ss:$0 sm:$0xff] }
 0xe84   :  { %v4949_v2 = vpop.f32.mrf.mxu1  ;;  %v5050_v59 = vpop.f32.mrf.mxu0 }
 0xe85   :  { %v4950_v31 = vadd.f32 %v4949_v2, %v9942_v13  ;;  %5292 = vmatprep.mubr.f32.mxu1 %v5074_v52  ;;  %v5051_v50 = vadd.f32 %v5050_v59, %v9948_v39  ;;  %5387 = vmatprep.mubr.f32.mxu0 %v5076_v57  ;;  %v5077_v43 = vmax.f32 %v4948_v40, 0.0  ;;  %v5079_v30 = vmax.f32 %v5049_v49, 0.0 }
 0xe86   :  { %v4953_v37 = vpop.f32.mrf.mxu1  ;;  %5293 = vmatmul.mubr.f32.gmra.mxu1 %v5073_v17  ;;  %v5054_v61 = vpop.f32.mrf.mxu0  ;;  %5388 = vmatmul.mubr.f32.gmra.mxu0 %v5075_v8 }
 0xe87   :  { %v5078_v19 = vmax.f32 %v4950_v31, 0.0  ;;  %v5080_v44 = vmax.f32 %v5051_v50, 0.0  ;;  %v4954_v4 = vadd.f32 %v4953_v37, %v9936_v34  ;;  %v5055_v0 = vadd.f32 %v5054_v61, %v9939_v22 }
 0xe88   :  { %v4955_v6 = vpop.f32.mrf.mxu1  ;;  %v5056_v26 = vpop.f32.mrf.mxu0 }
 0xe89   :  { %v4956_v38 = vadd.f32 %v4955_v6, %v9942_v13  ;;  %5297 = vmatprep.mubr.f32.mxu1 %v5078_v19  ;;  %v5057_v58 = vadd.f32 %v5056_v26, %v9948_v39  ;;  %5392 = vmatprep.mubr.f32.mxu0 %v5080_v44  ;;  %v5081_v24 = vmax.f32 %v4954_v4, 0.0  ;;  %v5083_v33 = vmax.f32 %v5055_v0, 0.0 }
 0xe8a   :  { %v4959_v9 = vpop.f32.mrf.mxu1  ;;  %5298 = vmatmul.mubr.f32.gmra.mxu1 %v5077_v43  ;;  %v5060_v48 = vpop.f32.mrf.mxu0  ;;  %5393 = vmatmul.mubr.f32.gmra.mxu0 %v5079_v30 }
 0xe8b   :  { %v5082_v3 = vmax.f32 %v4956_v38, 0.0  ;;  %v5084_v53 = vmax.f32 %v5057_v58, 0.0  ;;  %v4960_v63 = vadd.f32 %v4959_v9, %v9936_v34  ;;  %v5061_v32 = vadd.f32 %v5060_v48, %v9939_v22 }
 0xe8c   :  { %v4961_v16 = vpop.f32.mrf.mxu1  ;;  %v5062_v28 = vpop.f32.mrf.mxu0 }
 0xe8d   :  { %v4962_v7 = vadd.f32 %v4961_v16, %v9942_v13  ;;  %5302 = vmatprep.mubr.f32.mxu1 %v5082_v3  ;;  %v5063_v20 = vadd.f32 %v5062_v28, %v9948_v39  ;;  %5397 = vmatprep.mubr.f32.mxu0 %v5084_v53  ;;  %v5085_v12 = vmax.f32 %v4960_v63, 0.0  ;;  %v5087_v15 = vmax.f32 %v5061_v32, 0.0 }
 0xe8e   :  { %5303 = vmatmul.mubr.f32.gmra.mxu1 %v5081_v24  ;;  %5398 = vmatmul.mubr.f32.gmra.mxu0 %v5083_v33 }
 0xe8f   :  { %v5086_v10 = vmax.f32 %v4962_v7, 0.0  ;;  %v5088_v36 = vmax.f32 %v5063_v20, 0.0 }
 0xe91   :  { %5307 = vmatprep.mubr.f32.mxu1 %v5086_v10  ;;  %5402 = vmatprep.mubr.f32.mxu0 %v5088_v36 }
 0xe92   :  { %5308 = vmatmul.mubr.f32.gmra.mxu1 %v5085_v12  ;;  %5403 = vmatmul.mubr.f32.gmra.mxu0 %v5087_v15 }
 0xf3e   :  { %v7473_v34 = vpop.f32.mrf.mxu1  ;;  %v7523_v18 = vpop.f32.mrf.mxu0 }
 0xf40   :  { %v7474_v22 = vpop.f32.mrf.mxu1  ;;  %v7524_v13 = vpop.f32.mrf.mxu0 }
 0xf41   :  { %v7475_v56 = vadd.f32 %v7474_v22, %v7473_v34  ;;  %v7525_v55 = vadd.f32 %v7524_v13, %v7523_v18 }
 0xf42   :  { %v7476_v14 = vpop.f32.mrf.mxu1  ;;  %v7526_v29 = vpop.f32.mrf.mxu0 }
 0xf43   :  { %v5380_v39 = vadd.f32 %v7525_v55, %v7475_v56 }
 0xf44   :  { %v7477_v23 = vpop.f32.mrf.mxu1  ;;  %v7527_v62 = vpop.f32.mrf.mxu0 }
 0xf45   :  { %v7478_v41 = vadd.f32 %v7477_v23, %v7476_v14  ;;  %v5408_v52 = vadd.f32 %v5380_v39, %v9921_v25  ;;  %v7528_v54 = vadd.f32 %v7527_v62, %v7526_v29 }
 0xf46   :  { %v7479_v17 = vpop.f32.mrf.mxu1  ;;  %v7529_v57 = vpop.f32.mrf.mxu0 }
 0xf47   :  { %v5385_v40 = vadd.f32 %v7528_v54, %v7478_v41  ;;  %v5421_v8 = vadd.f32 %v6317_v21, %v5408_v52 }
 0xf48   :  { %v7480_v2 = vpop.f32.mrf.mxu1  ;;  %v7530_v31 = vpop.f32.mrf.mxu0 }
 0xf49   :  { %v7481_v49 = vadd.f32 %v7480_v2, %v7479_v17  ;;  %v5409_v59 = vadd.f32 %v5385_v40, %v9924_v45  ;;  %v7531_v50 = vadd.f32 %v7530_v31, %v7529_v57  ;;  %v5427_v19 = vadd.f32 %v5421_v8, %v9086_v11 }
 0xf4a   :  { %v7482_v37 = vpop.f32.mrf.mxu1  ;;  %v7532_v61 = vpop.f32.mrf.mxu0 }
 0xf4b   :  { %v5390_v43 = vadd.f32 %v7531_v50, %v7481_v49  ;;  %v5433_v4 = vsel %vm64_vm0, %v5427_v19, 0.0  ;;  %v5422_v25 = vadd.f32 %v6317_v21, %v5409_v59 }
 0xf4c   :  { %v7483_v44 = vpop.f32.mrf.mxu1  ;;  %v7533_v30 = vpop.f32.mrf.mxu0  ;;  %5434 = vadd.xlane.f32.xlu0 %v5433_v4 }
 0xf4d   :  { %v7484_v6 = vadd.f32 %v7483_v44, %v7482_v37  ;;  %v5410_v0 = vadd.f32 %v5390_v43, %v9927_v51  ;;  %v7534_v38 = vadd.f32 %v7533_v30, %v7532_v61  ;;  %v5428_v58 = vadd.f32 %v5422_v25, %v9101_v1 }
 0xf4e   :  { %v7485_v26 = vpop.f32.mrf.mxu1  ;;  %v7535_v45 = vpop.f32.mrf.mxu0 }
 0xf4f   :  { %v5395_v9 = vadd.f32 %v7534_v38, %v7484_v6  ;;  %v5436_v11 = vsel %vm64_vm0, %v5428_v58, 0.0  ;;  %v5423_v48 = vadd.f32 %v6317_v21, %v5410_v0  ;;  %v5534_v0 = vld [vmem:[%s10157_s11 + $0x18] sm:$0xff]  ;;  %v5533_v38 = vld [vmem:[%s10157_s11 + $0x10] sm:$0xff] }
 0xf50   :  { %v7486_v3 = vpop.f32.mrf.mxu1  ;;  %v7536_v53 = vpop.f32.mrf.mxu0  ;;  %5437 = vadd.xlane.f32.xlu1 %v5436_v11  ;;  %7854 = vmatprep.subr.mxu1 %v5534_v0  ;;  %v5665_v11 = vld [vmem:[%s10159_s13 + $0x20] sm:$0xff] }
 0xf51   :  { %v7487_v24 = vadd.f32 %v7486_v3, %v7485_v26  ;;  %v5411_v63 = vadd.f32 %v5395_v9, %v9933_v42  ;;  %v7537_v16 = vadd.f32 %v7536_v53, %v7535_v45  ;;  %v5429_v32 = vadd.f32 %v5423_v48, %v10184_v27  ;;  %7855 = vmatpush3.msra.mxu1 %v5534_v0  ;;  %v5532_v26 = vld [vmem:[%s10157_s11 + $0x8] sm:$0xff]  ;;  %v5668_v45 = vld [vmem:[%s10159_s13 + $0x38] sm:$0xff]  ;;  %v5667_v9 = vld [vmem:[%s10159_s13 + $0x30] sm:$0xff] }
 0xf52   :  { %v7488_v33 = vpop.f32.mrf.mxu1  ;;  %v7538_v51 = vpop.f32.mrf.mxu0  ;;  %7856 = vmatprep.subr.mxu1 %v5533_v38  ;;  %7871 = vmatprep.subr.mxu0 %v5668_v45  ;;  %v5666_v3 = vld [vmem:[%s10159_s13 + $0x28] sm:$0xff] }
 0xf53   :  { %v5400_v7 = vadd.f32 %v7537_v16, %v7487_v24  ;;  %v5439_v1 = vsel %vm64_vm0, %v5429_v32, 0.0  ;;  %v5424_v20 = vadd.f32 %v6317_v21, %v5411_v63  ;;  %7857 = vmatpush3.msra.mxu1 %v5533_v38  ;;  %7872 = vmatpush3.msra.mxu0 %v5668_v45 }
 0xf54   :  { %v7489_v28 = vpop.f32.mrf.mxu1  ;;  %v7539_v12 = vpop.f32.mrf.mxu0  ;;  %5440 = vadd.xlane.f32.xlu0 %v5439_v1  ;;  %7858 = vmatprep.subr.mxu1 %v5532_v26  ;;  %v10188_v1 = vld [vmem:[#allocation5_spill] sm:$0xff] }
 0xf55   :  { %v7490_v10 = vadd.f32 %v7489_v28, %v7488_v33  ;;  %v5412_v36 = vadd.f32 %v5400_v7, %v9945_v46  ;;  %v7540_v15 = vadd.f32 %v7539_v12, %v7538_v51  ;;  %v5430_v34 = vadd.f32 %v5424_v20, %v10185_v5  ;;  %7859 = vmatpush3.msra.mxu1 %v5532_v26 }
 0xf56   :  { %7873 = vmatprep.subr.mxu0 %v5667_v9  ;;  %v5513_v20 = vsub.s32 4, %v10188_v1  ;;  %v5523_v12 = vsub.s32 5, %v10188_v1 }
 0xf57   :  { %v5405_v18 = vadd.f32 %v7540_v15, %v7490_v10  ;;  %v5442_v42 = vsel %vm64_vm0, %v5430_v34, 0.0  ;;  %v5425_v22 = vadd.f32 %v6317_v21, %v5412_v36  ;;  %7874 = vmatpush3.msra.mxu0 %v5667_v9 }
 0xf58   :  { %5443 = vadd.xlane.f32.xlu1 %v5442_v42  ;;  %7875 = vmatprep.subr.mxu0 %v5666_v3 }
 0xf59   :  { %v5413_v27 = vadd.f32 %v5405_v18, %v9954_v60  ;;  %v5431_v56 = vadd.f32 %v5425_v22, %v10186_v47  ;;  %7876 = vmatpush3.msra.mxu0 %v5666_v3 }
 0xf5a   :  { %7877 = vmatprep.subr.mxu0 %v5665_v11 }
 0xf5b   :  { %v5445_v13 = vsel %vm64_vm0, %v5431_v56, 0.0  ;;  %v5426_v55 = vadd.f32 %v6317_v21, %v5413_v27  ;;  %7878 = vmatpush3.msra.mxu0 %v5665_v11 }
 0xf5c   :  { %5446 = vadd.xlane.f32.xlu0 %v5445_v13 }
 0xf5d   :  { %v5432_v14 = vadd.f32 %v5426_v55, %v10187_v35 }
 0xf5f   :  { %v5448_v46 = vsel %vm64_vm0, %v5432_v14, 0.0 }
 0xf60   :  { %5449 = vadd.xlane.f32.xlu1 %v5448_v46 }
 0xfd5   :  { %v5435_v29 = vpop.xlane.xlu0 %5434 }
 0xfd6   :  { %v5451_v5 = vmul.f32 0.03125, %v5435_v29 }
 0xfd8   :  { %v9998_v39 = vsub.f32 %v5427_v19, %v5451_v5 }
 0xfd9   :  { %v5438_v23 = vpop.xlane.xlu1 %5437 }
 0xfda   :  { %v5452_v41 = vmul.f32 0.03125, %v5438_v23  ;;  %v5463_v60 = vmul.f32 %v9998_v39, %v9998_v39 }
 0xfdc   :  { %v10002_v62 = vsub.f32 %v5428_v58, %v5452_v41  ;;  %v5469_v47 = vsel %vm64_vm0, %v5463_v60, 0.0  ;;  %v5531_v58 = vld [vmem:[%s10157_s11] sm:$0xff] }
 0xfdd   :  { %5470 = vadd.xlane.f32.xlu0 %v5469_v47  ;;  %v5441_v21 = vpop.xlane.xlu0 %5440  ;;  %7860 = vmatprep.subr.mxu1 %v5531_v58 }
 0xfde   :  { %v5453_v52 = vmul.f32 0.03125, %v5441_v21  ;;  %v5464_v35 = vmul.f32 %v10002_v62, %v10002_v62  ;;  %7861 = vmatpush3.msra.mxu1 %v5531_v58 }
 0xfe0   :  { %v10007_v54 = vsub.f32 %v5429_v32, %v5453_v52  ;;  %v5472_v17 = vsel %vm64_vm0, %v5464_v35, 0.0 }
 0xfe1   :  { %v5444_v57 = vpop.xlane.xlu1 %5443  ;;  %5473 = vadd.xlane.f32.xlu1 %v5472_v17 }
 0xfe2   :  { %v5454_v40 = vmul.f32 0.03125, %v5444_v57  ;;  %v5465_v2 = vmul.f32 %v10007_v54, %v10007_v54 }
 0xfe4   :  { %v10012_v8 = vsub.f32 %v5430_v34, %v5454_v40  ;;  %v5475_v49 = vsel %vm64_vm0, %v5465_v2, 0.0  ;;  %v10057_v34 = vld [vmem:[%s10161_s15] sm:$0xff] }
 0xfe5   :  { %5476 = vadd.xlane.f32.xlu0 %v5475_v49  ;;  %v5447_v31 = vpop.xlane.xlu0 %5446  ;;  %v5514_v18 = vrot.slane %v10057_v34, %v5513_v20  ;;  %v5524_v27 = vrot.slane %v10057_v34, %v5523_v12 }
 0xfe6   :  { %v5455_v59 = vmul.f32 0.03125, %v5447_v31  ;;  %v5466_v50 = vmul.f32 %v10012_v8, %v10012_v8 }
 0xfe8   :  { %v10017_v37 = vsub.f32 %v5431_v56, %v5455_v59  ;;  %v5478_v19 = vsel %vm64_vm0, %v5466_v50, 0.0 }
 0xfe9   :  { %5479 = vadd.xlane.f32.xlu1 %v5478_v19  ;;  %v5450_v61 = vpop.xlane.xlu1 %5449 }
 0xfea   :  { %v5456_v43 = vmul.f32 0.03125, %v5450_v61  ;;  %v5467_v44 = vmul.f32 %v10017_v37, %v10017_v37  ;;  %v5663_v61 = vld [vmem:[%s10159_s13 + $0x10] sm:$0xff] }
 0xfec   :  { %v10022_v4 = vsub.f32 %v5432_v14, %v5456_v43  ;;  %v5481_v25 = vsel %vm64_vm0, %v5467_v44, 0.0  ;;  %v5662_v43 = vld [vmem:[%s10159_s13 + $0x8] sm:$0xff]  ;;  %v5661_v44 = vld [vmem:[%s10159_s13] sm:$0xff] }
 0xfed   :  { %5482 = vadd.xlane.f32.xlu0 %v5481_v25 }
 0xfee   :  { %v5468_v6 = vmul.f32 %v10022_v4, %v10022_v4 }
 0xff0   :  { %v5484_v30 = vsel %vm64_vm0, %v5468_v6, 0.0 }
 0xff1   :  { %5485 = vadd.xlane.f32.xlu1 %v5484_v30 }
0x1066   :  { %v5471_v48 = vpop.xlane.xlu0 %5470 }
0x1067   :  { %v5487_v24 = vmul.f32 0.03125, %v5471_v48 }
0x1069   :  { %v5493_v53 = vadd.f32 1e-06, %v5487_v24 }
0x106a   :  { %v5474_v63 = vpop.xlane.xlu1 %5473 }
0x106b   :  { %8075 = vrsqrt.f32 %v5493_v53  ;;  %v5488_v16 = vmul.f32 0.03125, %v5474_v63 }
0x106d   :  { %v5494_v33 = vadd.f32 1e-06, %v5488_v16 }
0x106e   :  { %v5477_v32 = vpop.xlane.xlu0 %5476 }
0x106f   :  { %8077 = vrsqrt.f32 %v5494_v33  ;;  %v5489_v51 = vmul.f32 0.03125, %v5477_v32 }
0x1071   :  { %v5495_v7 = vadd.f32 1e-06, %v5489_v51  ;;  %v6325_v51 = vld [vmem:[%s10160_s14] ss:$0 sm:$0xff]  ;;  %s8124_s14 = smov [#allocation2]  }
0x1072   :  { %v5480_v28 = vpop.xlane.xlu1 %5479  ;;  %s5905_s7 = sshll.u32 %s8124_s14, 4  ;;  %s5906_s7 = int_to_ptr.vmem [resolvable:$true] %s5905_s7 }
0x1073   :  { %8079 = vrsqrt.f32 %v5495_v7  ;;  %v5490_v10 = vmul.f32 0.03125, %v5480_v28  ;;  %s8100_s29 = scalar_lea.vmem %s5906_s7, 768  ;;  %p8105_p1 = scmp.lt.s32.totalorder %s5906_s7, %s5906_s7 }
0x1074   :  { %p8101_p0 = scmp.ne.s32.totalorder %s5906_s7, %s8100_s29  ;;  %p8106_p2 = scmp.lt.s32.totalorder %s8100_s29, %s8100_s29 }
0x1075   :  { %v5496_v36 = vadd.f32 1e-06, %v5490_v10 }
0x1076   :  { %v5483_v15 = vpop.xlane.xlu0 %5482  ;;  %p8107_p3 = por %p8106_p2, %p8105_p1 }
0x1077   :  { %8081 = vrsqrt.f32 %v5496_v36  ;;  %v5491_v42 = vmul.f32 0.03125, %v5483_v15 }
0x1078   :  { %v8076_v22 = vpop.eup %8075  ;;  %p8108_p4 = pnand %p8107_p3, %p8101_p0 }
0x1079   :  { %v5497_v56 = vadd.f32 1e-06, %v5491_v42  ;;  %v5505_v13 = vmul.f32 %v8076_v22, %v9998_v39 }
0x107a   :  { %v5486_v55 = vpop.xlane.xlu1 %5485 }
0x107b   :  { %8083 = vrsqrt.f32 %v5497_v56  ;;  %v5492_v14 = vmul.f32 0.03125, %v5486_v55  ;;  %v5515_v46 = vmul.f32 %v5514_v18, %v5505_v13 }
0x107c   :  { %v8078_v29 = vpop.eup %8077 }
0x107d   :  { %v5506_v5 = vmul.f32 %v8078_v29, %v10002_v62  ;;  %v5498_v23 = vadd.f32 1e-06, %v5492_v14  ;;  %v10063_v41 = vadd.f32 %v5524_v27, %v5515_v46 }
0x107f   :  { %v5516_v60 = vmul.f32 %v5514_v18, %v5506_v5  ;;  %8085 = vrsqrt.f32 %v5498_v23  ;;  %7862 = vmatprep.mubr.msk.f32.mxu1 %vm64_vm0, %v10063_v41 }
0x1080   :  { %v8080_v47 = vpop.eup %8079 }
0x1081   :  { %v10067_v21 = vadd.f32 %v5524_v27, %v5516_v60  ;;  %v5507_v39 = vmul.f32 %v8080_v47, %v10007_v54 }
0x1083   :  { %7863 = vmatmul.mubr.msk.f32.vlgmr.msra.gmra.mxu1 %vm64_vm0, %v10067_v21  ;;  %v5517_v52 = vmul.f32 %v5514_v18, %v5507_v39 }
0x1084   :  { %v8082_v35 = vpop.eup %8081 }
0x1085   :  { %v5508_v62 = vmul.f32 %v8082_v35, %v10012_v8  ;;  %v10073_v17 = vadd.f32 %v5524_v27, %v5517_v52 }
0x1087   :  { %7865 = vmatprep.mubr.msk.f32.mxu1 %vm64_vm0, %v10073_v17  ;;  %v5518_v57 = vmul.f32 %v5514_v18, %v5508_v62 }
0x1088   :  { %v8084_v40 = vpop.eup %8083 }
0x1089   :  { %v10077_v2 = vadd.f32 %v5524_v27, %v5518_v57  ;;  %v5509_v49 = vmul.f32 %v8084_v40, %v10017_v37  ;;  %v5664_v37 = vld [vmem:[%s10159_s13 + $0x18] sm:$0xff] }
0x108a   :  { %7879 = vmatprep.subr.mxu0 %v5664_v37 }
0x108b   :  { %7866 = vmatmul.mubr.msk.f32.gmra.mxu1 %vm64_vm0, %v10077_v2  ;;  %v5519_v54 = vmul.f32 %v5514_v18, %v5509_v49  ;;  %7880 = vmatpush3.msra.mxu0 %v5664_v37 }
0x108c   :  { %v8086_v31 = vpop.eup %8085  ;;  %7881 = vmatprep.subr.mxu0 %v5663_v61 }
0x108d   :  { %v5510_v59 = vmul.f32 %v8086_v31, %v10022_v4  ;;  %v10083_v50 = vadd.f32 %v5524_v27, %v5519_v54  ;;  %7882 = vmatpush3.msra.mxu0 %v5663_v61  ;;  %v6318_v4 = vld [vmem:[%s10158_s12] ss:$0 sm:$0xff] }
0x108e   :  { %7883 = vmatprep.subr.mxu0 %v5662_v43 }
0x108f   :  { %7868 = vmatprep.mubr.msk.f32.mxu1 %vm64_vm0, %v10083_v50  ;;  %v5520_v8 = vmul.f32 %v5514_v18, %v5510_v59  ;;  %7884 = vmatpush3.msra.mxu0 %v5662_v43 }
0x1090   :  { %7885 = vmatprep.subr.mxu0 %v5661_v44 }
0x1091   :  { %v10087_v19 = vadd.f32 %v5524_v27, %v5520_v8  ;;  %7886 = vmatpush3.msra.mxu0 %v5661_v44 }
0x1093   :  { %7869 = vmatmul.mubr.msk.f32.gmra.mxu1 %vm64_vm0, %v10087_v19 }
0x1143   :  { %v7864_v25 = vpop.f32.mrf.mxu1 }
0x1144   :  { %v5632_v6 = vadd.f32 %v7864_v25, %v6318_v4 }
0x1145   :  { %v5626_v30 = vpop.f32.mrf.mxu1 }
0x1146   :  { %v5627_v0 = vadd.f32 %v6318_v4, %v5626_v30  ;;  %v5656_v26 = vmax.f32 %v5632_v6, 0.0 }
0x1148   :  { %v5655_v38 = vmax.f32 %v5627_v0, 0.0 }
0x114a   :  { %7887 = vmatprep.mubr.msk.f32.mxu0 %vm5676_vm2, %v5655_v38 }
0x114b   :  { %v7867_v58 = vpop.f32.mrf.mxu1  ;;  %7888 = vmatmul.mubr.msk.f32.vlgmr.msra.gmra.mxu0 %vm5676_vm2, %v5656_v26 }
0x114c   :  { %v5642_v45 = vadd.f32 %v7867_v58, %v6318_v4 }
0x114d   :  { %v5636_v9 = vpop.f32.mrf.mxu1 }
0x114e   :  { %v5637_v3 = vadd.f32 %v6318_v4, %v5636_v9  ;;  %v5658_v48 = vmax.f32 %v5642_v45, 0.0 }
0x1150   :  { %v5657_v11 = vmax.f32 %v5637_v3, 0.0 }
0x1152   :  { %7890 = vmatprep.mubr.msk.f32.mxu0 %vm5676_vm2, %v5657_v11 }
0x1153   :  { %v7870_v24 = vpop.f32.mrf.mxu1  ;;  %7891 = vmatmul.mubr.msk.f32.gmra.mxu0 %vm5676_vm2, %v5658_v48 }
0x1154   :  { %v5652_v53 = vadd.f32 %v7870_v24, %v6318_v4 }
0x1155   :  { %v5646_v63 = vpop.f32.mrf.mxu1 }
0x1156   :  { %v5647_v16 = vadd.f32 %v6318_v4, %v5646_v63  ;;  %v5660_v32 = vmax.f32 %v5652_v53, 0.0 }
0x1158   :  { %v5659_v33 = vmax.f32 %v5647_v16, 0.0 }
0x115a   :  { %7893 = vmatprep.mubr.msk.f32.mxu0 %vm5676_vm2, %v5659_v33 }
0x115b   :  { %7894 = vmatmul.mubr.msk.f32.gmra.mxu0 %vm5676_vm2, %v5660_v32 }
0x120b   :  { %v7889_v7 = vpop.f32.mrf.mxu0 }
0x120c   :  { %v5767_v28 = vadd.f32 %v7889_v7, %v6325_v51 }
0x120d   :  { %v5761_v20 = vpop.f32.mrf.mxu0 }
0x120e   :  { %v5791_v10 = vadd.f32 %v5767_v28, %v10067_v21  ;;  %v5762_v12 = vadd.f32 %v6325_v51, %v5761_v20 }
0x1210   :  { %v5790_v36 = vadd.f32 %v5762_v12, %v10063_v41  ;;  %v5799_v15 = vsel %vm64_vm0, %v5791_v10, 0.0 }
0x1211   :  { %5800 = vadd.xlane.f32.xlu1 %v5799_v15 }
0x1212   :  { %v5796_v18 = vsel %vm64_vm0, %v5790_v36, 0.0 }
0x1213   :  { %5797 = vadd.xlane.f32.xlu0 %v5796_v18  ;;  %v7892_v42 = vpop.f32.mrf.mxu0 }
0x1214   :  { %v5777_v22 = vadd.f32 %v7892_v42, %v6325_v51 }
0x1215   :  { %v5771_v27 = vpop.f32.mrf.mxu0 }
0x1216   :  { %v5793_v56 = vadd.f32 %v5777_v22, %v10077_v2  ;;  %v5772_v13 = vadd.f32 %v6325_v51, %v5771_v27 }
0x1218   :  { %v5792_v55 = vadd.f32 %v5772_v13, %v10073_v17  ;;  %v5805_v14 = vsel %vm64_vm0, %v5793_v56, 0.0 }
0x1219   :  { %5806 = vadd.xlane.f32.xlu1 %v5805_v14 }
0x121a   :  { %v5802_v46 = vsel %vm64_vm0, %v5792_v55, 0.0 }
0x121b   :  { %5803 = vadd.xlane.f32.xlu0 %v5802_v46  ;;  %v7895_v29 = vpop.f32.mrf.mxu0 }
0x121c   :  { %v5787_v5 = vadd.f32 %v7895_v29, %v6325_v51 }
0x121d   :  { %v5781_v23 = vpop.f32.mrf.mxu0 }
0x121e   :  { %v5795_v41 = vadd.f32 %v5787_v5, %v10087_v19  ;;  %v5782_v60 = vadd.f32 %v6325_v51, %v5781_v23 }
0x1220   :  { %v5794_v47 = vadd.f32 %v5782_v60, %v10083_v50  ;;  %v5811_v21 = vsel %vm64_vm0, %v5795_v41, 0.0 }
0x1221   :  { %5812 = vadd.xlane.f32.xlu1 %v5811_v21 }
0x1222   :  { %v5808_v39 = vsel %vm64_vm0, %v5794_v47, 0.0 }
0x1223   :  { %5809 = vadd.xlane.f32.xlu0 %v5808_v39 }
0x129a   :  { %v5801_v52 = vpop.xlane.xlu1 %5800 }
0x129b   :  { %v5815_v35 = vmul.f32 0.03125, %v5801_v52 }
0x129c   :  { %v5798_v62 = vpop.xlane.xlu0 %5797 }
0x129d   :  { %v5821_v17 = vsub.f32 %v5791_v10, %v5815_v35  ;;  %v5814_v57 = vmul.f32 0.03125, %v5798_v62  ;;  %v5876_v10 = vsub.s32 6, %v10188_v1 }
0x129f   :  { %v5820_v40 = vsub.f32 %v5790_v36, %v5814_v57  ;;  %v5827_v2 = vmul.f32 %v5821_v17, %v5821_v17  ;;  %v5886_v36 = vsub.s32 7, %v10188_v1  ;;  %v5877_v18 = vrot.slane %v10057_v34, %v5876_v10 }
0x12a1   :  { %v5835_v49 = vsel %vm64_vm0, %v5827_v2, 0.0  ;;  %v5826_v54 = vmul.f32 %v5820_v40, %v5820_v40 }
0x12a2   :  { %5836 = vadd.xlane.f32.xlu1 %v5835_v49  ;;  %v5807_v31 = vpop.xlane.xlu1 %5806 }
0x12a3   :  { %v5817_v59 = vmul.f32 0.03125, %v5807_v31  ;;  %v5832_v50 = vsel %vm64_vm0, %v5826_v54, 0.0 }
0x12a4   :  { %v5804_v8 = vpop.xlane.xlu0 %5803  ;;  %5833 = vadd.xlane.f32.xlu0 %v5832_v50 }
0x12a5   :  { %v5823_v19 = vsub.f32 %v5793_v56, %v5817_v59  ;;  %v5816_v37 = vmul.f32 0.03125, %v5804_v8  ;;  %v5887_v56 = vrot.slane %v10057_v34, %v5886_v36 }
0x12a7   :  { %v5822_v61 = vsub.f32 %v5792_v55, %v5816_v37  ;;  %v5829_v43 = vmul.f32 %v5823_v19, %v5823_v19 }
0x12a9   :  { %v5841_v44 = vsel %vm64_vm0, %v5829_v43, 0.0  ;;  %v5828_v4 = vmul.f32 %v5822_v61, %v5822_v61 }
0x12aa   :  { %5842 = vadd.xlane.f32.xlu1 %v5841_v44  ;;  %v5813_v25 = vpop.xlane.xlu1 %5812 }
0x12ab   :  { %v5819_v6 = vmul.f32 0.03125, %v5813_v25  ;;  %v5838_v30 = vsel %vm64_vm0, %v5828_v4, 0.0 }
0x12ac   :  { %5839 = vadd.xlane.f32.xlu0 %v5838_v30  ;;  %v5810_v0 = vpop.xlane.xlu0 %5809 }
0x12ad   :  { %v5825_v38 = vsub.f32 %v5795_v41, %v5819_v6  ;;  %v5818_v26 = vmul.f32 0.03125, %v5810_v0 }
0x12af   :  { %v5824_v58 = vsub.f32 %v5794_v47, %v5818_v26  ;;  %v5831_v45 = vmul.f32 %v5825_v38, %v5825_v38 }
0x12b1   :  { %v5847_v9 = vsel %vm64_vm0, %v5831_v45, 0.0  ;;  %v5830_v3 = vmul.f32 %v5824_v58, %v5824_v58 }
0x12b2   :  { %5848 = vadd.xlane.f32.xlu1 %v5847_v9 }
0x12b3   :  { %v5844_v11 = vsel %vm64_vm0, %v5830_v3, 0.0 }
0x12b4   :  { %5845 = vadd.xlane.f32.xlu0 %v5844_v11 }
0x132b   :  { %v5837_v48 = vpop.xlane.xlu1 %5836 }
0x132c   :  { %v5851_v24 = vmul.f32 0.03125, %v5837_v48 }
0x132d   :  { %v5834_v53 = vpop.xlane.xlu0 %5833 }
0x132e   :  { %v5857_v63 = vadd.f32 1e-06, %v5851_v24  ;;  %v5850_v16 = vmul.f32 0.03125, %v5834_v53 }
0x1330   :  { %8087 = vrsqrt.f32 %v5857_v63  ;;  %v5856_v33 = vadd.f32 1e-06, %v5850_v16 }
0x1332   :  { %8089 = vrsqrt.f32 %v5856_v33 }
0x1333   :  { %v5843_v32 = vpop.xlane.xlu1 %5842 }
0x1334   :  { %v5853_v51 = vmul.f32 0.03125, %v5843_v32 }
0x1335   :  { %v5840_v7 = vpop.xlane.xlu0 %5839 }
0x1336   :  { %v5859_v28 = vadd.f32 1e-06, %v5853_v51  ;;  %v5852_v20 = vmul.f32 0.03125, %v5840_v7 }
0x1338   :  { %8091 = vrsqrt.f32 %v5859_v28  ;;  %v5858_v12 = vadd.f32 1e-06, %v5852_v20 }
0x133a   :  { %8093 = vrsqrt.f32 %v5858_v12 }
0x133b   :  { %v5849_v15 = vpop.xlane.xlu1 %5848 }
0x133c   :  { %v5855_v42 = vmul.f32 0.03125, %v5849_v15 }
0x133d   :  { %v8088_v22 = vpop.eup %8087  ;;  %v5846_v27 = vpop.xlane.xlu0 %5845 }
0x133e   :  { %v5869_v13 = vmul.f32 %v8088_v22, %v5821_v17  ;;  %v5861_v55 = vadd.f32 1e-06, %v5855_v42  ;;  %v5854_v14 = vmul.f32 0.03125, %v5846_v27 }
0x133f   :  { %v8090_v46 = vpop.eup %8089 }
0x1340   :  { %v5879_v29 = vmul.f32 %v5877_v18, %v5869_v13  ;;  %v5868_v5 = vmul.f32 %v8090_v46, %v5820_v40  ;;  %8095 = vrsqrt.f32 %v5861_v55  ;;  %v5860_v23 = vadd.f32 1e-06, %v5854_v14 }
0x1342   :  { %v5889_v41 = vadd.f32 %v5887_v56, %v5879_v29  ;;  %v5878_v60 = vmul.f32 %v5877_v18, %v5868_v5  ;;  %8097 = vrsqrt.f32 %v5860_v23 }
0x1344   :  { %5895 = vst.msk [vmem:[#allocation2 + $0x8] sm:$0xff] %vm64_vm0, %v5889_v41  ;;  %v5888_v1 = vadd.f32 %v5887_v56, %v5878_v60 }
0x1345   :  { %v8092_v47 = vpop.eup %8091 }
0x1346   :  { %5894 = vst.msk [vmem:[#allocation2] sm:$0xff] %vm64_vm0, %v5888_v1  ;;  %v5871_v21 = vmul.f32 %v8092_v47, %v5823_v19 }
0x1347   :  { %v8094_v39 = vpop.eup %8093 }
0x1348   :  { %v5881_v34 = vmul.f32 %v5877_v18, %v5871_v21  ;;  %v5870_v52 = vmul.f32 %v8094_v39, %v5822_v61 }
0x134a   :  { %v5891_v35 = vadd.f32 %v5887_v56, %v5881_v34  ;;  %v5880_v62 = vmul.f32 %v5877_v18, %v5870_v52 }
0x134c   :  { %5897 = vst.msk [vmem:[#allocation2 + $0x18] sm:$0xff] %vm64_vm0, %v5891_v35  ;;  %v5890_v17 = vadd.f32 %v5887_v56, %v5880_v62 }
0x134d   :  { %v8096_v57 = vpop.eup %8095 }
0x134e   :  { %5896 = vst.msk [vmem:[#allocation2 + $0x10] sm:$0xff] %vm64_vm0, %v5890_v17  ;;  %v5873_v40 = vmul.f32 %v8096_v57, %v5825_v38 }
0x134f   :  { %v8098_v2 = vpop.eup %8097 }
0x1350   :  { %v5883_v49 = vmul.f32 %v5877_v18, %v5873_v40  ;;  %v5872_v54 = vmul.f32 %v8098_v2, %v5824_v58 }
0x1352   :  { %v5893_v31 = vadd.f32 %v5887_v56, %v5883_v49  ;;  %v5882_v59 = vmul.f32 %v5877_v18, %v5872_v54 }
0x1354   :  { %5899 = vst.msk [vmem:[#allocation2 + $0x28] sm:$0xff] %vm64_vm0, %v5893_v31  ;;  %v5892_v50 = vadd.f32 %v5887_v56, %v5882_v59 }
0x1356   :  { %5898 = vst.msk [vmem:[#allocation2 + $0x20] sm:$0xff] %vm64_vm0, %v5892_v50 }
0x1357   :  { %8111 = shalt.err (!%p8108_p4)
}
0x1358   :  { %s8125_s30 = smov 128   ;;  %s8126_s0 = smov 8  }
0x1359   :  { %5911 = dma.vmem_to_hbm [thread:$0]  %s5906_s7, 768, %s10162_s16, [#allocation3], %s8125_s30, %s8125_s30, %s8126_s0  }
0x135a   :  { %8120 = dma.done.wait [#allocation3], 768  }
0x135b   :  { %8121 = vsyncadd [#allocation3], 4294966528 }
0x135c   :  { %5915 = vsyncpa [#allocation3], 1 }

</bundles_post_ra>
